<compile_context>
chip_gen: v5e
topology: v5e:2x2
jax: 0.10.0
libtpu: 0.0.40
codegen_flags: <defaults>
</compile_context>

<pallas_src>
import math
from functools import partial

import numpy as np
import jax
import jax.numpy as jnp
from jax.experimental import pallas as pl
from jax.experimental.pallas import tpu as pltpu


# ----------------------------- config -----------------------------------
class Args:
    obs_seq_len = 8
    pred_seq_len = 12          # unused in forward
    tf_model_dim = 32
    tf_ff_dim = 64
    tf_nhead = 4
    tf_dropout = 0.0
    he_tf_layer = 2
    pooling = "mean"


IN_DIM = 2
LN_EPS = 1e-5


# --------------------------- shared math ---------------------------------
def _layer_norm(x, gamma, beta):
    mu = jnp.mean(x, axis=-1, keepdims=True)
    d = x - mu
    var = jnp.mean(d * d, axis=-1, keepdims=True)
    return d * jax.lax.rsqrt(var + LN_EPS) * gamma + beta


def sinusoidal_pe(num_t, d_model):
    pos = np.arange(num_t, dtype=np.float32)[:, None]
    div = np.exp(np.arange(0, d_model, 2, dtype=np.float32)
                 * (-math.log(10000.0) / d_model))
    pe = np.zeros((num_t, d_model), dtype=np.float32)
    pe[:, 0::2] = np.sin(pos * div)
    pe[:, 1::2] = np.cos(pos * div)
    return pe


# --------------------------- Pallas kernel -------------------------------
def history_encoder_kernel(
    # inputs
    x_ref,       # [1, L, in_dim]   per-scene trajectory (flattened tokens)
    mask_ref,    # [1, L, L]        additive attention mask (agent mask tiled)
    pe_ref,      # [L, D]           positional encoding + input-fc bias (folded)
    w_in_ref,    # [in_dim, D]
    wqkv_ref,    # [NL, D, 3D]      fused Q|K|V weights (Q pre-scaled by 1/sqrt(hd))
    wod_ref,     # [NL, D+F, D]     rows 0:D = Wo, rows D:D+F = W2
    w1_ref,      # [NL, D, F]
    vecs_ref,    # [NL, 8, VW]      rows: bqkv, bo, b1, b2, g1, be1, g2, be2
    # outputs
    enc_ref,     # [1, L, D]
    pool_ref,    # [1, N, D]
    *, nlayer, nhead, model_dim, ff_dim, obs_len, agent_num, pooling,
):
    D = model_dim
    F = ff_dim
    head_dim = D // nhead
    L = obs_len * agent_num

    x = x_ref[0]            # [L, in_dim]
    mask = mask_ref[0]      # [L, L]
    w_in = w_in_ref[...]    # [in_dim, D]

    # input_fc + positional encoding: K=2 contraction done as VPU FMAs
    # (pe_ref already contains b_in folded in).
    h = pe_ref[...]
    for c in range(x.shape[-1]):
        h = h + x[:, c:c + 1] * w_in[c:c + 1, :]

    for l in range(nlayer):
        vrow = vecs_ref[l]          # [8, VW]
        wod = wod_ref[l]            # [D+F, D]
        bqkv = vrow[0:1, :3 * D]
        bo = vrow[1:2, :D]
        b1 = vrow[2:3, :F]
        b2 = vrow[3:4, :D]
        g1, be1 = vrow[4:5, :D], vrow[5:6, :D]
        g2, be2 = vrow[6:7, :D], vrow[7:8, :D]

        # ---- multi-head self attention (fused QKV projection) ----
        qkv = jnp.dot(h, wqkv_ref[l], preferred_element_type=jnp.float32) + bqkv
        q = qkv[:, :D]                  # already scaled by 1/sqrt(head_dim)
        k = qkv[:, D:2 * D]
        v = qkv[:, 2 * D:3 * D]

        # Per-head attention with the output projection folded in:
        #   attn_out = sum_h P_h @ (V_h @ Wo_h) + bo
        # (avoids the lane-axis concatenate of 8-wide head outputs)
        acc = bo                        # [1, D], broadcasts on first add
        for hh in range(nhead):
            lo = hh * head_dim
            hi = lo + head_dim
            qh, kh, vh = q[:, lo:hi], k[:, lo:hi], v[:, lo:hi]
            sc = jnp.einsum("qd,kd->qk", qh, kh,
                            preferred_element_type=jnp.float32) + mask
            sc = sc - jnp.max(sc, axis=-1, keepdims=True)
            p = jnp.exp(sc)
            p = p * pl.reciprocal(jnp.sum(p, axis=-1, keepdims=True), approx=True)
            vo = jnp.dot(vh, wod[lo:hi, :],
                         preferred_element_type=jnp.float32)          # [L, D]
            acc = acc + jnp.dot(p, vo, preferred_element_type=jnp.float32)

        # residual + post-LN
        h = _layer_norm(h + acc, g1, be1)

        # ---- feed-forward (ReLU) ----
        ff = jnp.dot(h, w1_ref[l], preferred_element_type=jnp.float32) + b1
        ff = jnp.maximum(ff, 0.0)
        ff = jnp.dot(ff, wod[D:, :], preferred_element_type=jnp.float32) + b2
        h = _layer_norm(h + ff, g2, be2)

    enc_ref[0] = h

    # pooling over time
    if pooling == "mean":
        # mean over time as a constant pooling matmul: pool = P @ h with
        # P[n, t*N + n] = 1/T.  P is built from iota comparisons (no reshape,
        # no strided sublane reduction).
        col = jax.lax.broadcasted_iota(jnp.int32, (agent_num, L), 1)
        row = jax.lax.broadcasted_iota(jnp.int32, (agent_num, L), 0)
        sel = col == row
        for t in range(1, obs_len):
            sel = jnp.logical_or(sel, col == row + t * agent_num)
        pmat = jnp.where(sel, 1.0 / obs_len, 0.0).astype(jnp.float32)
        pool_ref[0] = jnp.dot(pmat, h, preferred_element_type=jnp.float32)
    else:
        # max over time via a short unrolled sublane-slice loop
        acc = h[0:agent_num, :]
        for t in range(1, obs_len):
            acc = jnp.maximum(acc, h[t * agent_num:(t + 1) * agent_num, :])
        pool_ref[0] = acc


# ------------------------------ params -----------------------------------
def make_params(args, key):
    """Logical parameters (shapes follow the PyTorch module)."""
    D, F, NL = args.tf_model_dim, args.tf_ff_dim, args.he_tf_layer
    ks = jax.random.split(key, 18)
    f32 = jnp.float32

    def lin(k, fan_in, shape):
        return jax.random.normal(k, shape, f32) / math.sqrt(fan_in)

    def small(k, shape):
        return 0.1 * jax.random.normal(k, shape, f32)

    return dict(
        w_in=lin(ks[0], IN_DIM, (IN_DIM, D)), b_in=small(ks[1], (D,)),
        wq=lin(ks[2], D, (NL, D, D)), bq=small(ks[3], (NL, D)),
        wk=lin(ks[4], D, (NL, D, D)), bk=small(ks[5], (NL, D)),
        wv=lin(ks[6], D, (NL, D, D)), bv=small(ks[7], (NL, D)),
        wo=lin(ks[8], D, (NL, D, D)), bo=small(ks[9], (NL, D)),
        w1=lin(ks[10], D, (NL, D, F)), b1=small(ks[11], (NL, F)),
        w2=lin(ks[12], F, (NL, F, D)), b2=small(ks[13], (NL, D)),
        g1=1.0 + small(ks[14], (NL, D)), be1=small(ks[15], (NL, D)),
        g2=1.0 + small(ks[16], (NL, D)), be2=small(ks[17], (NL, D)),
    )


def pack_params(args, params):
    """Pack logical params into the few stacked arrays the kernel consumes."""
    D, F = args.tf_model_dim, args.tf_ff_dim
    head_dim = D // args.tf_nhead
    scale = 1.0 / math.sqrt(head_dim)
    VW = ((max(3 * D, F) + 127) // 128) * 128

    # fold the attention scale into the Q projection (saves an in-kernel mul)
    wqkv = jnp.concatenate([params["wq"] * scale, params["wk"], params["wv"]],
                           axis=-1)                                              # [NL,D,3D]
    wod = jnp.concatenate([params["wo"], params["w2"]], axis=1)                  # [NL,D+F,D]
    bqkv = jnp.concatenate([params["bq"] * scale, params["bk"], params["bv"]],
                           axis=-1)                                              # [NL,3D]

    def pad_row(v):  # [NL, W] -> [NL, 1, VW]
        return jnp.pad(v, ((0, 0), (0, VW - v.shape[-1])))[:, None, :]

    vecs = jnp.concatenate(
        [pad_row(bqkv), pad_row(params["bo"]), pad_row(params["b1"]),
         pad_row(params["b2"]), pad_row(params["g1"]), pad_row(params["be1"]),
         pad_row(params["g2"]), pad_row(params["be2"])], axis=1)                 # [NL,8,VW]

    return dict(w_in=params["w_in"], b_in=params["b_in"],
                wqkv=wqkv, wod=wod, w1=params["w1"], vecs=vecs)


# ------------------------------ wrapper ----------------------------------
def history_encoder_forward(args, packed, traj_in, agent_mask):
    """traj_in: [B, obs_len, agent_num, in_dim]; agent_mask: [B, agent_num, agent_num] (additive)."""
    B, T, N, in_dim = traj_in.shape
    D, F = args.tf_model_dim, args.tf_ff_dim
    NL = packed["wqkv"].shape[0]
    VW = packed["vecs"].shape[-1]
    L = T * N

    x = traj_in.reshape(B, L, in_dim).astype(jnp.float32)

    # positional encoding (per-time sinusoid, repeat-interleaved over agents),
    # with the input-fc bias folded in.
    pe_tok = np.repeat(sinusoidal_pe(T, D), N, axis=0)                  # [L, D] (host-side)
    pe_b = jnp.asarray(pe_tok) + packed["b_in"][None, :]

    # agent mask tiled over time -> additive [L, L] attention mask per scene
    full_mask = jnp.tile(agent_mask.astype(jnp.float32), (1, T, T))

    kernel = partial(
        history_encoder_kernel,
        nlayer=args.he_tf_layer, nhead=args.tf_nhead, model_dim=D, ff_dim=F,
        obs_len=T, agent_num=N, pooling=args.pooling,
    )

    in_specs = [
        pl.BlockSpec((1, L, in_dim), lambda b: (b, 0, 0)),     # x (per scene)
        pl.BlockSpec((1, L, L), lambda b: (b, 0, 0)),          # mask (per scene)
        pl.BlockSpec((L, D), lambda b: (0, 0)),                # pe + b_in (shared)
        pl.BlockSpec((in_dim, D), lambda b: (0, 0)),           # w_in
        pl.BlockSpec((NL, D, 3 * D), lambda b: (0, 0, 0)),     # fused QKV weights
        pl.BlockSpec((NL, D + F, D), lambda b: (0, 0, 0)),     # Wo | W2 stack
        pl.BlockSpec((NL, D, F), lambda b: (0, 0, 0)),         # W1
        pl.BlockSpec((NL, 8, VW), lambda b: (0, 0, 0)),        # bias / LN bundle
    ]
    out_specs = (
        pl.BlockSpec((1, L, D), lambda b: (b, 0, 0)),
        pl.BlockSpec((1, N, D), lambda b: (b, 0, 0)),
    )

    enc, pool = pl.pallas_call(
        kernel,
        out_shape=(
            jax.ShapeDtypeStruct((B, L, D), jnp.float32),
            jax.ShapeDtypeStruct((B, N, D), jnp.float32),
        ),
        grid=(B,),
        in_specs=in_specs,
        out_specs=out_specs,
        compiler_params=pltpu.CompilerParams(dimension_semantics=("parallel",)),
    )(x, full_mask, pe_b, packed["w_in"], packed["wqkv"], packed["wod"],
      packed["w1"], packed["vecs"])

    # history_enc matches the torch reshape: [obs_len, agent_num, 1, model_dim] per scene
    history_enc = enc.reshape(B, T, N, 1, D)
    return history_enc, pool


# ------------------------- pure-JAX reference -----------------------------
def history_encoder_reference(args, params, traj_in, agent_mask):
    B, T, N, in_dim = traj_in.shape
    D, H = args.tf_model_dim, args.tf_nhead
    hd = D // H
    L = T * N
    pe_tok = jnp.asarray(np.repeat(sinusoidal_pe(T, D), N, axis=0))

    enc_list, pool_list = [], []
    for b in range(B):
        x = traj_in[b].reshape(L, in_dim).astype(jnp.float32)
        h = x @ params["w_in"] + params["b_in"][None, :] + pe_tok
        mask = jnp.tile(agent_mask[b].astype(jnp.float32), (T, T))
        for l in range(args.he_tf_layer):
            q = h @ params["wq"][l] + params["bq"][l]
            k = h @ params["wk"][l] + params["bk"][l]
            v = h @ params["wv"][l] + params["bv"][l]
            heads = []
            for hh in range(H):
                sl = slice(hh * hd, (hh + 1) * hd)
                sc = (q[:, sl] @ k[:, sl].T) / math.sqrt(hd) + mask
                heads.append(jax.nn.softmax(sc, axis=-1) @ v[:, sl])
            attn = jnp.concatenate(heads, axis=-1) @ params["wo"][l] + params["bo"][l]
            h = _layer_norm(h + attn, params["g1"][l], params["be1"][l])
            ff = jnp.maximum(h @ params["w1"][l] + params["b1"][l], 0.0)
            ff = ff @ params["w2"][l] + params["b2"][l]
            h = _layer_norm(h + ff, params["g2"][l], params["be2"][l])
        enc_list.append(h)
        hr = h.reshape(T, N, D)
        pool_list.append(jnp.mean(hr, axis=0) if args.pooling == "mean"
                         else jnp.max(hr, axis=0))
    enc = jnp.stack(enc_list).reshape(B, T, N, 1, D)
    return enc, jnp.stack(pool_list)


# ------------------------------- main ------------------------------------
if __name__ == "__main__":
    args = Args()
    key = jax.random.PRNGKey(0)
    k_param, k_traj = jax.random.split(key)

    params = make_params(args, k_param)
    packed = pack_params(args, params)

    B, T, N = 2, args.obs_seq_len, 4
    traj_in = jax.random.normal(k_traj, (B, T, N, IN_DIM), jnp.float32)
    agent_mask = jnp.zeros((B, N, N), jnp.float32)   # additive mask (no masking)

    fwd = jax.jit(partial(history_encoder_forward, args))
    history_enc, agent_history = fwd(packed, traj_in, agent_mask)
    jax.block_until_ready((history_enc, agent_history))

    assert history_enc.shape == (B, T, N, 1, args.tf_model_dim)
    assert agent_history.shape == (B, N, args.tf_model_dim)
    assert bool(jnp.all(jnp.isfinite(history_enc)))
    assert bool(jnp.all(jnp.isfinite(agent_history)))

    # numerical check against a pure-JAX high-precision reference
    with jax.default_matmul_precision("float32"):
        ref_enc, ref_pool = history_encoder_reference(args, params, traj_in, agent_mask)
    np.testing.assert_allclose(np.asarray(history_enc), np.asarray(ref_enc),
                               rtol=2e-2, atol=2e-2)
    np.testing.assert_allclose(np.asarray(agent_history), np.asarray(ref_pool),
                               rtol=2e-2, atol=2e-2)

    print("KERNEL_OK")
</pallas_src>

<mosaic_0001>
module attributes {stable_mosaic.version = 11 : i64} {
  func.func @history_encoder_kernel(%arg0: i32, %arg1: memref<1x32x2xf32, #tpu.memory_space<vmem>>, %arg2: memref<1x32x32xf32, #tpu.memory_space<vmem>>, %arg3: memref<32x32xf32, #tpu.memory_space<vmem>>, %arg4: memref<2x32xf32, #tpu.memory_space<vmem>>, %arg5: memref<2x32x96xf32, #tpu.memory_space<vmem>>, %arg6: memref<2x96x32xf32, #tpu.memory_space<vmem>>, %arg7: memref<2x32x64xf32, #tpu.memory_space<vmem>>, %arg8: memref<2x8x128xf32, #tpu.memory_space<vmem>>, %arg9: memref<1x32x32xf32, #tpu.memory_space<vmem>>, %arg10: memref<1x4x32xf32, #tpu.memory_space<vmem>>) attributes {dimension_semantics = [#tpu.dimension_semantics<parallel>], iteration_bounds = array<i64: 2>, scalar_prefetch = 0 : i64, scratch_operands = 0 : i64, tpu.core_type = #tpu.core_type<tc>, window_params = [{transform_indices = @transform_0, window_bounds = array<i64: 1, 32, 2>}, {transform_indices = @transform_1, window_bounds = array<i64: 1, 32, 32>}, {pipeline_mode = #tpu.pipeline_mode<synchronous>, transform_indices = @transform_2, window_bounds = array<i64: 32, 32>}, {pipeline_mode = #tpu.pipeline_mode<synchronous>, transform_indices = @transform_3, window_bounds = array<i64: 2, 32>}, {pipeline_mode = #tpu.pipeline_mode<synchronous>, transform_indices = @transform_4, window_bounds = array<i64: 2, 32, 96>}, {pipeline_mode = #tpu.pipeline_mode<synchronous>, transform_indices = @transform_5, window_bounds = array<i64: 2, 96, 32>}, {pipeline_mode = #tpu.pipeline_mode<synchronous>, transform_indices = @transform_6, window_bounds = array<i64: 2, 32, 64>}, {pipeline_mode = #tpu.pipeline_mode<synchronous>, transform_indices = @transform_7, window_bounds = array<i64: 2, 8, 128>}, {transform_indices = @transform_8, window_bounds = array<i64: 1, 32, 32>}, {transform_indices = @transform_9, window_bounds = array<i64: 1, 4, 32>}]} {
    %c0 = arith.constant 0 : index
    %c0_0 = arith.constant 0 : index
    %c0_1 = arith.constant 0 : index
    %0 = vector.load %arg1[%c0, %c0_0, %c0_1] : memref<1x32x2xf32, #tpu.memory_space<vmem>>, vector<1x32x2xf32>
    %1 = vector.shape_cast %0 : vector<1x32x2xf32> to vector<32x2xf32>
    %c0_2 = arith.constant 0 : index
    %c0_3 = arith.constant 0 : index
    %c0_4 = arith.constant 0 : index
    %2 = vector.load %arg2[%c0_2, %c0_3, %c0_4] : memref<1x32x32xf32, #tpu.memory_space<vmem>>, vector<1x32x32xf32>
    %3 = vector.shape_cast %2 : vector<1x32x32xf32> to vector<32x32xf32>
    %c0_5 = arith.constant 0 : index
    %c0_6 = arith.constant 0 : index
    %4 = vector.load %arg4[%c0_5, %c0_6] : memref<2x32xf32, #tpu.memory_space<vmem>>, vector<2x32xf32>
    %c0_7 = arith.constant 0 : index
    %c0_8 = arith.constant 0 : index
    %5 = vector.load %arg3[%c0_7, %c0_8] : memref<32x32xf32, #tpu.memory_space<vmem>>, vector<32x32xf32>
    %6 = vector.extract_strided_slice %1 {offsets = [0, 0], sizes = [32, 1], strides = [1, 1]} : vector<32x2xf32> to vector<32x1xf32>
    %7 = vector.extract_strided_slice %4 {offsets = [0, 0], sizes = [1, 32], strides = [1, 1]} : vector<2x32xf32> to vector<1x32xf32>
    %8 = vector.broadcast %6 : vector<32x1xf32> to vector<32x32xf32>
    %9 = vector.broadcast %7 : vector<1x32xf32> to vector<32x32xf32>
    %10 = arith.mulf %8, %9 : vector<32x32xf32>
    %11 = arith.addf %5, %10 : vector<32x32xf32>
    %12 = vector.extract_strided_slice %1 {offsets = [0, 1], sizes = [32, 1], strides = [1, 1]} : vector<32x2xf32> to vector<32x1xf32>
    %13 = vector.extract_strided_slice %4 {offsets = [1, 0], sizes = [1, 32], strides = [1, 1]} : vector<2x32xf32> to vector<1x32xf32>
    %14 = vector.broadcast %12 : vector<32x1xf32> to vector<32x32xf32>
    %15 = vector.broadcast %13 : vector<1x32xf32> to vector<32x32xf32>
    %16 = arith.mulf %14, %15 : vector<32x32xf32>
    %17 = arith.addf %11, %16 : vector<32x32xf32>
    %c0_9 = arith.constant 0 : index
    %c0_10 = arith.constant 0 : index
    %c0_11 = arith.constant 0 : index
    %18 = vector.load %arg8[%c0_9, %c0_10, %c0_11] : memref<2x8x128xf32, #tpu.memory_space<vmem>>, vector<1x8x128xf32>
    %19 = vector.shape_cast %18 : vector<1x8x128xf32> to vector<8x128xf32>
    %c0_12 = arith.constant 0 : index
    %c0_13 = arith.constant 0 : index
    %c0_14 = arith.constant 0 : index
    %20 = vector.load %arg6[%c0_12, %c0_13, %c0_14] : memref<2x96x32xf32, #tpu.memory_space<vmem>>, vector<1x96x32xf32>
    %21 = vector.shape_cast %20 : vector<1x96x32xf32> to vector<96x32xf32>
    %22 = vector.extract_strided_slice %19 {offsets = [0, 0], sizes = [1, 96], strides = [1, 1]} : vector<8x128xf32> to vector<1x96xf32>
    %23 = vector.extract_strided_slice %19 {offsets = [1, 0], sizes = [1, 32], strides = [1, 1]} : vector<8x128xf32> to vector<1x32xf32>
    %24 = vector.extract_strided_slice %19 {offsets = [2, 0], sizes = [1, 64], strides = [1, 1]} : vector<8x128xf32> to vector<1x64xf32>
    %25 = vector.extract_strided_slice %19 {offsets = [3, 0], sizes = [1, 32], strides = [1, 1]} : vector<8x128xf32> to vector<1x32xf32>
    %26 = vector.extract_strided_slice %19 {offsets = [4, 0], sizes = [1, 32], strides = [1, 1]} : vector<8x128xf32> to vector<1x32xf32>
    %27 = vector.extract_strided_slice %19 {offsets = [5, 0], sizes = [1, 32], strides = [1, 1]} : vector<8x128xf32> to vector<1x32xf32>
    %28 = vector.extract_strided_slice %19 {offsets = [6, 0], sizes = [1, 32], strides = [1, 1]} : vector<8x128xf32> to vector<1x32xf32>
    %29 = vector.extract_strided_slice %19 {offsets = [7, 0], sizes = [1, 32], strides = [1, 1]} : vector<8x128xf32> to vector<1x32xf32>
    %c0_15 = arith.constant 0 : index
    %c0_16 = arith.constant 0 : index
    %c0_17 = arith.constant 0 : index
    %30 = vector.load %arg5[%c0_15, %c0_16, %c0_17] : memref<2x32x96xf32, #tpu.memory_space<vmem>>, vector<1x32x96xf32>
    %31 = vector.shape_cast %30 : vector<1x32x96xf32> to vector<32x96xf32>
    %cst = arith.constant dense<0.000000e+00> : vector<32x96xf32>
    %32 = tpu.matmul %17, %31, %cst {dimension_numbers = #tpu.dot_dimension_numbers<[1], [0], [0], [1], [0, 0, 1, 1], [], []>} : vector<32x32xf32>, vector<32x96xf32>, vector<32x96xf32> -> vector<32x96xf32>
    %33 = vector.broadcast %22 : vector<1x96xf32> to vector<32x96xf32>
    %34 = arith.addf %32, %33 : vector<32x96xf32>
    %35 = vector.extract_strided_slice %34 {offsets = [0, 0], sizes = [32, 32], strides = [1, 1]} : vector<32x96xf32> to vector<32x32xf32>
    %36 = vector.extract_strided_slice %34 {offsets = [0, 32], sizes = [32, 32], strides = [1, 1]} : vector<32x96xf32> to vector<32x32xf32>
    %37 = vector.extract_strided_slice %34 {offsets = [0, 64], sizes = [32, 32], strides = [1, 1]} : vector<32x96xf32> to vector<32x32xf32>
    %38 = vector.extract_strided_slice %35 {offsets = [0, 0], sizes = [32, 8], strides = [1, 1]} : vector<32x32xf32> to vector<32x8xf32>
    %39 = vector.extract_strided_slice %36 {offsets = [0, 0], sizes = [32, 8], strides = [1, 1]} : vector<32x32xf32> to vector<32x8xf32>
    %40 = vector.extract_strided_slice %37 {offsets = [0, 0], sizes = [32, 8], strides = [1, 1]} : vector<32x32xf32> to vector<32x8xf32>
    "tpu.trace_start"() <{level = 10 : i32, message = "qd,kd->qk"}> : () -> ()
    %cst_18 = arith.constant dense<0.000000e+00> : vector<32x32xf32>
    %41 = tpu.matmul %38, %39, %cst_18 {dimension_numbers = #tpu.dot_dimension_numbers<[1], [1], [0], [0], [0, 0, 1, 0], [], []>} : vector<32x8xf32>, vector<32x8xf32>, vector<32x32xf32> -> vector<32x32xf32>
    "tpu.trace_stop"() : () -> ()
    %42 = arith.addf %41, %3 : vector<32x32xf32>
    %cst_19 = arith.constant dense<0xFF800000> : vector<32xf32>
    %43 = vector.multi_reduction <maximumf>, %42, %cst_19 [1] : vector<32x32xf32> to vector<32xf32>
    %44 = vector.shape_cast %43 : vector<32xf32> to vector<32x1xf32>
    %45 = vector.broadcast %44 : vector<32x1xf32> to vector<32x32xf32>
    %46 = arith.subf %42, %45 : vector<32x32xf32>
    %47 = math.exp %46 : vector<32x32xf32>
    %cst_20 = arith.constant dense<0.000000e+00> : vector<32xf32>
    %48 = vector.multi_reduction <add>, %47, %cst_20 [1] : vector<32x32xf32> to vector<32xf32>
    %49 = vector.shape_cast %48 : vector<32xf32> to vector<32x1xf32>
    %50 = tpu.reciprocal %49 {approx = true} : vector<32x1xf32> -> vector<32x1xf32>
    %51 = vector.broadcast %50 : vector<32x1xf32> to vector<32x32xf32>
    %52 = arith.mulf %47, %51 : vector<32x32xf32>
    %53 = vector.extract_strided_slice %21 {offsets = [0, 0], sizes = [8, 32], strides = [1, 1]} : vector<96x32xf32> to vector<8x32xf32>
    %cst_21 = arith.constant dense<0.000000e+00> : vector<32x32xf32>
    %54 = tpu.matmul %40, %53, %cst_21 {dimension_numbers = #tpu.dot_dimension_numbers<[1], [0], [0], [1], [0, 0, 1, 1], [], []>} : vector<32x8xf32>, vector<8x32xf32>, vector<32x32xf32> -> vector<32x32xf32>
    %cst_22 = arith.constant dense<0.000000e+00> : vector<32x32xf32>
    %55 = tpu.matmul %52, %54, %cst_22 {dimension_numbers = #tpu.dot_dimension_numbers<[1], [0], [0], [1], [0, 0, 1, 1], [], []>} : vector<32x32xf32>, vector<32x32xf32>, vector<32x32xf32> -> vector<32x32xf32>
    %56 = vector.broadcast %23 : vector<1x32xf32> to vector<32x32xf32>
    %57 = arith.addf %56, %55 : vector<32x32xf32>
    %58 = vector.extract_strided_slice %35 {offsets = [0, 8], sizes = [32, 8], strides = [1, 1]} : vector<32x32xf32> to vector<32x8xf32>
    %59 = vector.extract_strided_slice %36 {offsets = [0, 8], sizes = [32, 8], strides = [1, 1]} : vector<32x32xf32> to vector<32x8xf32>
    %60 = vector.extract_strided_slice %37 {offsets = [0, 8], sizes = [32, 8], strides = [1, 1]} : vector<32x32xf32> to vector<32x8xf32>
    "tpu.trace_start"() <{level = 10 : i32, message = "qd,kd->qk"}> : () -> ()
    %cst_23 = arith.constant dense<0.000000e+00> : vector<32x32xf32>
    %61 = tpu.matmul %58, %59, %cst_23 {dimension_numbers = #tpu.dot_dimension_numbers<[1], [1], [0], [0], [0, 0, 1, 0], [], []>} : vector<32x8xf32>, vector<32x8xf32>, vector<32x32xf32> -> vector<32x32xf32>
    "tpu.trace_stop"() : () -> ()
    %62 = arith.addf %61, %3 : vector<32x32xf32>
    %cst_24 = arith.constant dense<0xFF800000> : vector<32xf32>
    %63 = vector.multi_reduction <maximumf>, %62, %cst_24 [1] : vector<32x32xf32> to vector<32xf32>
    %64 = vector.shape_cast %63 : vector<32xf32> to vector<32x1xf32>
    %65 = vector.broadcast %64 : vector<32x1xf32> to vector<32x32xf32>
    %66 = arith.subf %62, %65 : vector<32x32xf32>
    %67 = math.exp %66 : vector<32x32xf32>
    %cst_25 = arith.constant dense<0.000000e+00> : vector<32xf32>
    %68 = vector.multi_reduction <add>, %67, %cst_25 [1] : vector<32x32xf32> to vector<32xf32>
    %69 = vector.shape_cast %68 : vector<32xf32> to vector<32x1xf32>
    %70 = tpu.reciprocal %69 {approx = true} : vector<32x1xf32> -> vector<32x1xf32>
    %71 = vector.broadcast %70 : vector<32x1xf32> to vector<32x32xf32>
    %72 = arith.mulf %67, %71 : vector<32x32xf32>
    %73 = vector.extract_strided_slice %21 {offsets = [8, 0], sizes = [8, 32], strides = [1, 1]} : vector<96x32xf32> to vector<8x32xf32>
    %cst_26 = arith.constant dense<0.000000e+00> : vector<32x32xf32>
    %74 = tpu.matmul %60, %73, %cst_26 {dimension_numbers = #tpu.dot_dimension_numbers<[1], [0], [0], [1], [0, 0, 1, 1], [], []>} : vector<32x8xf32>, vector<8x32xf32>, vector<32x32xf32> -> vector<32x32xf32>
    %cst_27 = arith.constant dense<0.000000e+00> : vector<32x32xf32>
    %75 = tpu.matmul %72, %74, %cst_27 {dimension_numbers = #tpu.dot_dimension_numbers<[1], [0], [0], [1], [0, 0, 1, 1], [], []>} : vector<32x32xf32>, vector<32x32xf32>, vector<32x32xf32> -> vector<32x32xf32>
    %76 = arith.addf %57, %75 : vector<32x32xf32>
    %77 = vector.extract_strided_slice %35 {offsets = [0, 16], sizes = [32, 8], strides = [1, 1]} : vector<32x32xf32> to vector<32x8xf32>
    %78 = vector.extract_strided_slice %36 {offsets = [0, 16], sizes = [32, 8], strides = [1, 1]} : vector<32x32xf32> to vector<32x8xf32>
    %79 = vector.extract_strided_slice %37 {offsets = [0, 16], sizes = [32, 8], strides = [1, 1]} : vector<32x32xf32> to vector<32x8xf32>
    "tpu.trace_start"() <{level = 10 : i32, message = "qd,kd->qk"}> : () -> ()
    %cst_28 = arith.constant dense<0.000000e+00> : vector<32x32xf32>
    %80 = tpu.matmul %77, %78, %cst_28 {dimension_numbers = #tpu.dot_dimension_numbers<[1], [1], [0], [0], [0, 0, 1, 0], [], []>} : vector<32x8xf32>, vector<32x8xf32>, vector<32x32xf32> -> vector<32x32xf32>
    "tpu.trace_stop"() : () -> ()
    %81 = arith.addf %80, %3 : vector<32x32xf32>
    %cst_29 = arith.constant dense<0xFF800000> : vector<32xf32>
    %82 = vector.multi_reduction <maximumf>, %81, %cst_29 [1] : vector<32x32xf32> to vector<32xf32>
    %83 = vector.shape_cast %82 : vector<32xf32> to vector<32x1xf32>
    %84 = vector.broadcast %83 : vector<32x1xf32> to vector<32x32xf32>
    %85 = arith.subf %81, %84 : vector<32x32xf32>
    %86 = math.exp %85 : vector<32x32xf32>
    %cst_30 = arith.constant dense<0.000000e+00> : vector<32xf32>
    %87 = vector.multi_reduction <add>, %86, %cst_30 [1] : vector<32x32xf32> to vector<32xf32>
    %88 = vector.shape_cast %87 : vector<32xf32> to vector<32x1xf32>
    %89 = tpu.reciprocal %88 {approx = true} : vector<32x1xf32> -> vector<32x1xf32>
    %90 = vector.broadcast %89 : vector<32x1xf32> to vector<32x32xf32>
    %91 = arith.mulf %86, %90 : vector<32x32xf32>
    %92 = vector.extract_strided_slice %21 {offsets = [16, 0], sizes = [8, 32], strides = [1, 1]} : vector<96x32xf32> to vector<8x32xf32>
    %cst_31 = arith.constant dense<0.000000e+00> : vector<32x32xf32>
    %93 = tpu.matmul %79, %92, %cst_31 {dimension_numbers = #tpu.dot_dimension_numbers<[1], [0], [0], [1], [0, 0, 1, 1], [], []>} : vector<32x8xf32>, vector<8x32xf32>, vector<32x32xf32> -> vector<32x32xf32>
    %cst_32 = arith.constant dense<0.000000e+00> : vector<32x32xf32>
    %94 = tpu.matmul %91, %93, %cst_32 {dimension_numbers = #tpu.dot_dimension_numbers<[1], [0], [0], [1], [0, 0, 1, 1], [], []>} : vector<32x32xf32>, vector<32x32xf32>, vector<32x32xf32> -> vector<32x32xf32>
    %95 = arith.addf %76, %94 : vector<32x32xf32>
    %96 = vector.extract_strided_slice %35 {offsets = [0, 24], sizes = [32, 8], strides = [1, 1]} : vector<32x32xf32> to vector<32x8xf32>
    %97 = vector.extract_strided_slice %36 {offsets = [0, 24], sizes = [32, 8], strides = [1, 1]} : vector<32x32xf32> to vector<32x8xf32>
    %98 = vector.extract_strided_slice %37 {offsets = [0, 24], sizes = [32, 8], strides = [1, 1]} : vector<32x32xf32> to vector<32x8xf32>
    "tpu.trace_start"() <{level = 10 : i32, message = "qd,kd->qk"}> : () -> ()
    %cst_33 = arith.constant dense<0.000000e+00> : vector<32x32xf32>
    %99 = tpu.matmul %96, %97, %cst_33 {dimension_numbers = #tpu.dot_dimension_numbers<[1], [1], [0], [0], [0, 0, 1, 0], [], []>} : vector<32x8xf32>, vector<32x8xf32>, vector<32x32xf32> -> vector<32x32xf32>
    "tpu.trace_stop"() : () -> ()
    %100 = arith.addf %99, %3 : vector<32x32xf32>
    %cst_34 = arith.constant dense<0xFF800000> : vector<32xf32>
    %101 = vector.multi_reduction <maximumf>, %100, %cst_34 [1] : vector<32x32xf32> to vector<32xf32>
    %102 = vector.shape_cast %101 : vector<32xf32> to vector<32x1xf32>
    %103 = vector.broadcast %102 : vector<32x1xf32> to vector<32x32xf32>
    %104 = arith.subf %100, %103 : vector<32x32xf32>
    %105 = math.exp %104 : vector<32x32xf32>
    %cst_35 = arith.constant dense<0.000000e+00> : vector<32xf32>
    %106 = vector.multi_reduction <add>, %105, %cst_35 [1] : vector<32x32xf32> to vector<32xf32>
    %107 = vector.shape_cast %106 : vector<32xf32> to vector<32x1xf32>
    %108 = tpu.reciprocal %107 {approx = true} : vector<32x1xf32> -> vector<32x1xf32>
    %109 = vector.broadcast %108 : vector<32x1xf32> to vector<32x32xf32>
    %110 = arith.mulf %105, %109 : vector<32x32xf32>
    %111 = vector.extract_strided_slice %21 {offsets = [24, 0], sizes = [8, 32], strides = [1, 1]} : vector<96x32xf32> to vector<8x32xf32>
    %cst_36 = arith.constant dense<0.000000e+00> : vector<32x32xf32>
    %112 = tpu.matmul %98, %111, %cst_36 {dimension_numbers = #tpu.dot_dimension_numbers<[1], [0], [0], [1], [0, 0, 1, 1], [], []>} : vector<32x8xf32>, vector<8x32xf32>, vector<32x32xf32> -> vector<32x32xf32>
    %cst_37 = arith.constant dense<0.000000e+00> : vector<32x32xf32>
    %113 = tpu.matmul %110, %112, %cst_37 {dimension_numbers = #tpu.dot_dimension_numbers<[1], [0], [0], [1], [0, 0, 1, 1], [], []>} : vector<32x32xf32>, vector<32x32xf32>, vector<32x32xf32> -> vector<32x32xf32>
    %114 = arith.addf %95, %113 : vector<32x32xf32>
    %115 = arith.addf %17, %114 : vector<32x32xf32>
    %cst_38 = arith.constant dense<0.000000e+00> : vector<32xf32>
    %116 = vector.multi_reduction <add>, %115, %cst_38 [1] : vector<32x32xf32> to vector<32xf32>
    %117 = vector.shape_cast %116 : vector<32xf32> to vector<32x1xf32>
    %cst_39 = arith.constant 3.200000e+01 : f32
    %118 = vector.broadcast %cst_39 : f32 to vector<32x1xf32>
    %119 = arith.divf %117, %118 : vector<32x1xf32>
    %120 = vector.broadcast %119 : vector<32x1xf32> to vector<32x32xf32>
    %121 = arith.subf %115, %120 : vector<32x32xf32>
    %122 = arith.mulf %121, %121 : vector<32x32xf32>
    %cst_40 = arith.constant dense<0.000000e+00> : vector<32xf32>
    %123 = vector.multi_reduction <add>, %122, %cst_40 [1] : vector<32x32xf32> to vector<32xf32>
    %124 = vector.shape_cast %123 : vector<32xf32> to vector<32x1xf32>
    %cst_41 = arith.constant 3.200000e+01 : f32
    %125 = vector.broadcast %cst_41 : f32 to vector<32x1xf32>
    %126 = arith.divf %124, %125 : vector<32x1xf32>
    %cst_42 = arith.constant 9.99999974E-6 : f32
    %127 = vector.broadcast %cst_42 : f32 to vector<32x1xf32>
    %128 = arith.addf %126, %127 : vector<32x1xf32>
    %129 = math.rsqrt %128 : vector<32x1xf32>
    %130 = vector.broadcast %129 : vector<32x1xf32> to vector<32x32xf32>
    %131 = arith.mulf %121, %130 : vector<32x32xf32>
    %132 = vector.broadcast %26 : vector<1x32xf32> to vector<32x32xf32>
    %133 = arith.mulf %131, %132 : vector<32x32xf32>
    %134 = vector.broadcast %27 : vector<1x32xf32> to vector<32x32xf32>
    %135 = arith.addf %133, %134 : vector<32x32xf32>
    %c0_43 = arith.constant 0 : index
    %c0_44 = arith.constant 0 : index
    %c0_45 = arith.constant 0 : index
    %136 = vector.load %arg7[%c0_43, %c0_44, %c0_45] : memref<2x32x64xf32, #tpu.memory_space<vmem>>, vector<1x32x64xf32>
    %137 = vector.shape_cast %136 : vector<1x32x64xf32> to vector<32x64xf32>
    %cst_46 = arith.constant dense<0.000000e+00> : vector<32x64xf32>
    %138 = tpu.matmul %135, %137, %cst_46 {dimension_numbers = #tpu.dot_dimension_numbers<[1], [0], [0], [1], [0, 0, 1, 1], [], []>} : vector<32x32xf32>, vector<32x64xf32>, vector<32x64xf32> -> vector<32x64xf32>
    %139 = vector.broadcast %24 : vector<1x64xf32> to vector<32x64xf32>
    %140 = arith.addf %138, %139 : vector<32x64xf32>
    %cst_47 = arith.constant 0.000000e+00 : f32
    %141 = vector.broadcast %cst_47 : f32 to vector<32x64xf32>
    %142 = arith.maximumf %140, %141 : vector<32x64xf32>
    %143 = vector.extract_strided_slice %21 {offsets = [32, 0], sizes = [64, 32], strides = [1, 1]} : vector<96x32xf32> to vector<64x32xf32>
    %cst_48 = arith.constant dense<0.000000e+00> : vector<32x32xf32>
    %144 = tpu.matmul %142, %143, %cst_48 {dimension_numbers = #tpu.dot_dimension_numbers<[1], [0], [0], [1], [0, 0, 1, 1], [], []>} : vector<32x64xf32>, vector<64x32xf32>, vector<32x32xf32> -> vector<32x32xf32>
    %145 = vector.broadcast %25 : vector<1x32xf32> to vector<32x32xf32>
    %146 = arith.addf %144, %145 : vector<32x32xf32>
    %147 = arith.addf %135, %146 : vector<32x32xf32>
    %cst_49 = arith.constant dense<0.000000e+00> : vector<32xf32>
    %148 = vector.multi_reduction <add>, %147, %cst_49 [1] : vector<32x32xf32> to vector<32xf32>
    %149 = vector.shape_cast %148 : vector<32xf32> to vector<32x1xf32>
    %cst_50 = arith.constant 3.200000e+01 : f32
    %150 = vector.broadcast %cst_50 : f32 to vector<32x1xf32>
    %151 = arith.divf %149, %150 : vector<32x1xf32>
    %152 = vector.broadcast %151 : vector<32x1xf32> to vector<32x32xf32>
    %153 = arith.subf %147, %152 : vector<32x32xf32>
    %154 = arith.mulf %153, %153 : vector<32x32xf32>
    %cst_51 = arith.constant dense<0.000000e+00> : vector<32xf32>
    %155 = vector.multi_reduction <add>, %154, %cst_51 [1] : vector<32x32xf32> to vector<32xf32>
    %156 = vector.shape_cast %155 : vector<32xf32> to vector<32x1xf32>
    %cst_52 = arith.constant 3.200000e+01 : f32
    %157 = vector.broadcast %cst_52 : f32 to vector<32x1xf32>
    %158 = arith.divf %156, %157 : vector<32x1xf32>
    %cst_53 = arith.constant 9.99999974E-6 : f32
    %159 = vector.broadcast %cst_53 : f32 to vector<32x1xf32>
    %160 = arith.addf %158, %159 : vector<32x1xf32>
    %161 = math.rsqrt %160 : vector<32x1xf32>
    %162 = vector.broadcast %161 : vector<32x1xf32> to vector<32x32xf32>
    %163 = arith.mulf %153, %162 : vector<32x32xf32>
    %164 = vector.broadcast %28 : vector<1x32xf32> to vector<32x32xf32>
    %165 = arith.mulf %163, %164 : vector<32x32xf32>
    %166 = vector.broadcast %29 : vector<1x32xf32> to vector<32x32xf32>
    %167 = arith.addf %165, %166 : vector<32x32xf32>
    %c1 = arith.constant 1 : index
    %c0_54 = arith.constant 0 : index
    %c0_55 = arith.constant 0 : index
    %168 = vector.load %arg8[%c1, %c0_54, %c0_55] : memref<2x8x128xf32, #tpu.memory_space<vmem>>, vector<1x8x128xf32>
    %169 = vector.shape_cast %168 : vector<1x8x128xf32> to vector<8x128xf32>
    %c1_56 = arith.constant 1 : index
    %c0_57 = arith.constant 0 : index
    %c0_58 = arith.constant 0 : index
    %170 = vector.load %arg6[%c1_56, %c0_57, %c0_58] : memref<2x96x32xf32, #tpu.memory_space<vmem>>, vector<1x96x32xf32>
    %171 = vector.shape_cast %170 : vector<1x96x32xf32> to vector<96x32xf32>
    %172 = vector.extract_strided_slice %169 {offsets = [0, 0], sizes = [1, 96], strides = [1, 1]} : vector<8x128xf32> to vector<1x96xf32>
    %173 = vector.extract_strided_slice %169 {offsets = [1, 0], sizes = [1, 32], strides = [1, 1]} : vector<8x128xf32> to vector<1x32xf32>
    %174 = vector.extract_strided_slice %169 {offsets = [2, 0], sizes = [1, 64], strides = [1, 1]} : vector<8x128xf32> to vector<1x64xf32>
    %175 = vector.extract_strided_slice %169 {offsets = [3, 0], sizes = [1, 32], strides = [1, 1]} : vector<8x128xf32> to vector<1x32xf32>
    %176 = vector.extract_strided_slice %169 {offsets = [4, 0], sizes = [1, 32], strides = [1, 1]} : vector<8x128xf32> to vector<1x32xf32>
    %177 = vector.extract_strided_slice %169 {offsets = [5, 0], sizes = [1, 32], strides = [1, 1]} : vector<8x128xf32> to vector<1x32xf32>
    %178 = vector.extract_strided_slice %169 {offsets = [6, 0], sizes = [1, 32], strides = [1, 1]} : vector<8x128xf32> to vector<1x32xf32>
    %179 = vector.extract_strided_slice %169 {offsets = [7, 0], sizes = [1, 32], strides = [1, 1]} : vector<8x128xf32> to vector<1x32xf32>
    %c1_59 = arith.constant 1 : index
    %c0_60 = arith.constant 0 : index
    %c0_61 = arith.constant 0 : index
    %180 = vector.load %arg5[%c1_59, %c0_60, %c0_61] : memref<2x32x96xf32, #tpu.memory_space<vmem>>, vector<1x32x96xf32>
    %181 = vector.shape_cast %180 : vector<1x32x96xf32> to vector<32x96xf32>
    %cst_62 = arith.constant dense<0.000000e+00> : vector<32x96xf32>
    %182 = tpu.matmul %167, %181, %cst_62 {dimension_numbers = #tpu.dot_dimension_numbers<[1], [0], [0], [1], [0, 0, 1, 1], [], []>} : vector<32x32xf32>, vector<32x96xf32>, vector<32x96xf32> -> vector<32x96xf32>
    %183 = vector.broadcast %172 : vector<1x96xf32> to vector<32x96xf32>
    %184 = arith.addf %182, %183 : vector<32x96xf32>
    %185 = vector.extract_strided_slice %184 {offsets = [0, 0], sizes = [32, 32], strides = [1, 1]} : vector<32x96xf32> to vector<32x32xf32>
    %186 = vector.extract_strided_slice %184 {offsets = [0, 32], sizes = [32, 32], strides = [1, 1]} : vector<32x96xf32> to vector<32x32xf32>
    %187 = vector.extract_strided_slice %184 {offsets = [0, 64], sizes = [32, 32], strides = [1, 1]} : vector<32x96xf32> to vector<32x32xf32>
    %188 = vector.extract_strided_slice %185 {offsets = [0, 0], sizes = [32, 8], strides = [1, 1]} : vector<32x32xf32> to vector<32x8xf32>
    %189 = vector.extract_strided_slice %186 {offsets = [0, 0], sizes = [32, 8], strides = [1, 1]} : vector<32x32xf32> to vector<32x8xf32>
    %190 = vector.extract_strided_slice %187 {offsets = [0, 0], sizes = [32, 8], strides = [1, 1]} : vector<32x32xf32> to vector<32x8xf32>
    "tpu.trace_start"() <{level = 10 : i32, message = "qd,kd->qk"}> : () -> ()
    %cst_63 = arith.constant dense<0.000000e+00> : vector<32x32xf32>
    %191 = tpu.matmul %188, %189, %cst_63 {dimension_numbers = #tpu.dot_dimension_numbers<[1], [1], [0], [0], [0, 0, 1, 0], [], []>} : vector<32x8xf32>, vector<32x8xf32>, vector<32x32xf32> -> vector<32x32xf32>
    "tpu.trace_stop"() : () -> ()
    %192 = arith.addf %191, %3 : vector<32x32xf32>
    %cst_64 = arith.constant dense<0xFF800000> : vector<32xf32>
    %193 = vector.multi_reduction <maximumf>, %192, %cst_64 [1] : vector<32x32xf32> to vector<32xf32>
    %194 = vector.shape_cast %193 : vector<32xf32> to vector<32x1xf32>
    %195 = vector.broadcast %194 : vector<32x1xf32> to vector<32x32xf32>
    %196 = arith.subf %192, %195 : vector<32x32xf32>
    %197 = math.exp %196 : vector<32x32xf32>
    %cst_65 = arith.constant dense<0.000000e+00> : vector<32xf32>
    %198 = vector.multi_reduction <add>, %197, %cst_65 [1] : vector<32x32xf32> to vector<32xf32>
    %199 = vector.shape_cast %198 : vector<32xf32> to vector<32x1xf32>
    %200 = tpu.reciprocal %199 {approx = true} : vector<32x1xf32> -> vector<32x1xf32>
    %201 = vector.broadcast %200 : vector<32x1xf32> to vector<32x32xf32>
    %202 = arith.mulf %197, %201 : vector<32x32xf32>
    %203 = vector.extract_strided_slice %171 {offsets = [0, 0], sizes = [8, 32], strides = [1, 1]} : vector<96x32xf32> to vector<8x32xf32>
    %cst_66 = arith.constant dense<0.000000e+00> : vector<32x32xf32>
    %204 = tpu.matmul %190, %203, %cst_66 {dimension_numbers = #tpu.dot_dimension_numbers<[1], [0], [0], [1], [0, 0, 1, 1], [], []>} : vector<32x8xf32>, vector<8x32xf32>, vector<32x32xf32> -> vector<32x32xf32>
    %cst_67 = arith.constant dense<0.000000e+00> : vector<32x32xf32>
    %205 = tpu.matmul %202, %204, %cst_67 {dimension_numbers = #tpu.dot_dimension_numbers<[1], [0], [0], [1], [0, 0, 1, 1], [], []>} : vector<32x32xf32>, vector<32x32xf32>, vector<32x32xf32> -> vector<32x32xf32>
    %206 = vector.broadcast %173 : vector<1x32xf32> to vector<32x32xf32>
    %207 = arith.addf %206, %205 : vector<32x32xf32>
    %208 = vector.extract_strided_slice %185 {offsets = [0, 8], sizes = [32, 8], strides = [1, 1]} : vector<32x32xf32> to vector<32x8xf32>
    %209 = vector.extract_strided_slice %186 {offsets = [0, 8], sizes = [32, 8], strides = [1, 1]} : vector<32x32xf32> to vector<32x8xf32>
    %210 = vector.extract_strided_slice %187 {offsets = [0, 8], sizes = [32, 8], strides = [1, 1]} : vector<32x32xf32> to vector<32x8xf32>
    "tpu.trace_start"() <{level = 10 : i32, message = "qd,kd->qk"}> : () -> ()
    %cst_68 = arith.constant dense<0.000000e+00> : vector<32x32xf32>
    %211 = tpu.matmul %208, %209, %cst_68 {dimension_numbers = #tpu.dot_dimension_numbers<[1], [1], [0], [0], [0, 0, 1, 0], [], []>} : vector<32x8xf32>, vector<32x8xf32>, vector<32x32xf32> -> vector<32x32xf32>
    "tpu.trace_stop"() : () -> ()
    %212 = arith.addf %211, %3 : vector<32x32xf32>
    %cst_69 = arith.constant dense<0xFF800000> : vector<32xf32>
    %213 = vector.multi_reduction <maximumf>, %212, %cst_69 [1] : vector<32x32xf32> to vector<32xf32>
    %214 = vector.shape_cast %213 : vector<32xf32> to vector<32x1xf32>
    %215 = vector.broadcast %214 : vector<32x1xf32> to vector<32x32xf32>
    %216 = arith.subf %212, %215 : vector<32x32xf32>
    %217 = math.exp %216 : vector<32x32xf32>
    %cst_70 = arith.constant dense<0.000000e+00> : vector<32xf32>
    %218 = vector.multi_reduction <add>, %217, %cst_70 [1] : vector<32x32xf32> to vector<32xf32>
    %219 = vector.shape_cast %218 : vector<32xf32> to vector<32x1xf32>
    %220 = tpu.reciprocal %219 {approx = true} : vector<32x1xf32> -> vector<32x1xf32>
    %221 = vector.broadcast %220 : vector<32x1xf32> to vector<32x32xf32>
    %222 = arith.mulf %217, %221 : vector<32x32xf32>
    %223 = vector.extract_strided_slice %171 {offsets = [8, 0], sizes = [8, 32], strides = [1, 1]} : vector<96x32xf32> to vector<8x32xf32>
    %cst_71 = arith.constant dense<0.000000e+00> : vector<32x32xf32>
    %224 = tpu.matmul %210, %223, %cst_71 {dimension_numbers = #tpu.dot_dimension_numbers<[1], [0], [0], [1], [0, 0, 1, 1], [], []>} : vector<32x8xf32>, vector<8x32xf32>, vector<32x32xf32> -> vector<32x32xf32>
    %cst_72 = arith.constant dense<0.000000e+00> : vector<32x32xf32>
    %225 = tpu.matmul %222, %224, %cst_72 {dimension_numbers = #tpu.dot_dimension_numbers<[1], [0], [0], [1], [0, 0, 1, 1], [], []>} : vector<32x32xf32>, vector<32x32xf32>, vector<32x32xf32> -> vector<32x32xf32>
    %226 = arith.addf %207, %225 : vector<32x32xf32>
    %227 = vector.extract_strided_slice %185 {offsets = [0, 16], sizes = [32, 8], strides = [1, 1]} : vector<32x32xf32> to vector<32x8xf32>
    %228 = vector.extract_strided_slice %186 {offsets = [0, 16], sizes = [32, 8], strides = [1, 1]} : vector<32x32xf32> to vector<32x8xf32>
    %229 = vector.extract_strided_slice %187 {offsets = [0, 16], sizes = [32, 8], strides = [1, 1]} : vector<32x32xf32> to vector<32x8xf32>
    "tpu.trace_start"() <{level = 10 : i32, message = "qd,kd->qk"}> : () -> ()
    %cst_73 = arith.constant dense<0.000000e+00> : vector<32x32xf32>
    %230 = tpu.matmul %227, %228, %cst_73 {dimension_numbers = #tpu.dot_dimension_numbers<[1], [1], [0], [0], [0, 0, 1, 0], [], []>} : vector<32x8xf32>, vector<32x8xf32>, vector<32x32xf32> -> vector<32x32xf32>
    "tpu.trace_stop"() : () -> ()
    %231 = arith.addf %230, %3 : vector<32x32xf32>
    %cst_74 = arith.constant dense<0xFF800000> : vector<32xf32>
    %232 = vector.multi_reduction <maximumf>, %231, %cst_74 [1] : vector<32x32xf32> to vector<32xf32>
    %233 = vector.shape_cast %232 : vector<32xf32> to vector<32x1xf32>
    %234 = vector.broadcast %233 : vector<32x1xf32> to vector<32x32xf32>
    %235 = arith.subf %231, %234 : vector<32x32xf32>
    %236 = math.exp %235 : vector<32x32xf32>
    %cst_75 = arith.constant dense<0.000000e+00> : vector<32xf32>
    %237 = vector.multi_reduction <add>, %236, %cst_75 [1] : vector<32x32xf32> to vector<32xf32>
    %238 = vector.shape_cast %237 : vector<32xf32> to vector<32x1xf32>
    %239 = tpu.reciprocal %238 {approx = true} : vector<32x1xf32> -> vector<32x1xf32>
    %240 = vector.broadcast %239 : vector<32x1xf32> to vector<32x32xf32>
    %241 = arith.mulf %236, %240 : vector<32x32xf32>
    %242 = vector.extract_strided_slice %171 {offsets = [16, 0], sizes = [8, 32], strides = [1, 1]} : vector<96x32xf32> to vector<8x32xf32>
    %cst_76 = arith.constant dense<0.000000e+00> : vector<32x32xf32>
    %243 = tpu.matmul %229, %242, %cst_76 {dimension_numbers = #tpu.dot_dimension_numbers<[1], [0], [0], [1], [0, 0, 1, 1], [], []>} : vector<32x8xf32>, vector<8x32xf32>, vector<32x32xf32> -> vector<32x32xf32>
    %cst_77 = arith.constant dense<0.000000e+00> : vector<32x32xf32>
    %244 = tpu.matmul %241, %243, %cst_77 {dimension_numbers = #tpu.dot_dimension_numbers<[1], [0], [0], [1], [0, 0, 1, 1], [], []>} : vector<32x32xf32>, vector<32x32xf32>, vector<32x32xf32> -> vector<32x32xf32>
    %245 = arith.addf %226, %244 : vector<32x32xf32>
    %246 = vector.extract_strided_slice %185 {offsets = [0, 24], sizes = [32, 8], strides = [1, 1]} : vector<32x32xf32> to vector<32x8xf32>
    %247 = vector.extract_strided_slice %186 {offsets = [0, 24], sizes = [32, 8], strides = [1, 1]} : vector<32x32xf32> to vector<32x8xf32>
    %248 = vector.extract_strided_slice %187 {offsets = [0, 24], sizes = [32, 8], strides = [1, 1]} : vector<32x32xf32> to vector<32x8xf32>
    "tpu.trace_start"() <{level = 10 : i32, message = "qd,kd->qk"}> : () -> ()
    %cst_78 = arith.constant dense<0.000000e+00> : vector<32x32xf32>
    %249 = tpu.matmul %246, %247, %cst_78 {dimension_numbers = #tpu.dot_dimension_numbers<[1], [1], [0], [0], [0, 0, 1, 0], [], []>} : vector<32x8xf32>, vector<32x8xf32>, vector<32x32xf32> -> vector<32x32xf32>
    "tpu.trace_stop"() : () -> ()
    %250 = arith.addf %249, %3 : vector<32x32xf32>
    %cst_79 = arith.constant dense<0xFF800000> : vector<32xf32>
    %251 = vector.multi_reduction <maximumf>, %250, %cst_79 [1] : vector<32x32xf32> to vector<32xf32>
    %252 = vector.shape_cast %251 : vector<32xf32> to vector<32x1xf32>
    %253 = vector.broadcast %252 : vector<32x1xf32> to vector<32x32xf32>
    %254 = arith.subf %250, %253 : vector<32x32xf32>
    %255 = math.exp %254 : vector<32x32xf32>
    %cst_80 = arith.constant dense<0.000000e+00> : vector<32xf32>
    %256 = vector.multi_reduction <add>, %255, %cst_80 [1] : vector<32x32xf32> to vector<32xf32>
    %257 = vector.shape_cast %256 : vector<32xf32> to vector<32x1xf32>
    %258 = tpu.reciprocal %257 {approx = true} : vector<32x1xf32> -> vector<32x1xf32>
    %259 = vector.broadcast %258 : vector<32x1xf32> to vector<32x32xf32>
    %260 = arith.mulf %255, %259 : vector<32x32xf32>
    %261 = vector.extract_strided_slice %171 {offsets = [24, 0], sizes = [8, 32], strides = [1, 1]} : vector<96x32xf32> to vector<8x32xf32>
    %cst_81 = arith.constant dense<0.000000e+00> : vector<32x32xf32>
    %262 = tpu.matmul %248, %261, %cst_81 {dimension_numbers = #tpu.dot_dimension_numbers<[1], [0], [0], [1], [0, 0, 1, 1], [], []>} : vector<32x8xf32>, vector<8x32xf32>, vector<32x32xf32> -> vector<32x32xf32>
    %cst_82 = arith.constant dense<0.000000e+00> : vector<32x32xf32>
    %263 = tpu.matmul %260, %262, %cst_82 {dimension_numbers = #tpu.dot_dimension_numbers<[1], [0], [0], [1], [0, 0, 1, 1], [], []>} : vector<32x32xf32>, vector<32x32xf32>, vector<32x32xf32> -> vector<32x32xf32>
    %264 = arith.addf %245, %263 : vector<32x32xf32>
    %265 = arith.addf %167, %264 : vector<32x32xf32>
    %cst_83 = arith.constant dense<0.000000e+00> : vector<32xf32>
    %266 = vector.multi_reduction <add>, %265, %cst_83 [1] : vector<32x32xf32> to vector<32xf32>
    %267 = vector.shape_cast %266 : vector<32xf32> to vector<32x1xf32>
    %cst_84 = arith.constant 3.200000e+01 : f32
    %268 = vector.broadcast %cst_84 : f32 to vector<32x1xf32>
    %269 = arith.divf %267, %268 : vector<32x1xf32>
    %270 = vector.broadcast %269 : vector<32x1xf32> to vector<32x32xf32>
    %271 = arith.subf %265, %270 : vector<32x32xf32>
    %272 = arith.mulf %271, %271 : vector<32x32xf32>
    %cst_85 = arith.constant dense<0.000000e+00> : vector<32xf32>
    %273 = vector.multi_reduction <add>, %272, %cst_85 [1] : vector<32x32xf32> to vector<32xf32>
    %274 = vector.shape_cast %273 : vector<32xf32> to vector<32x1xf32>
    %cst_86 = arith.constant 3.200000e+01 : f32
    %275 = vector.broadcast %cst_86 : f32 to vector<32x1xf32>
    %276 = arith.divf %274, %275 : vector<32x1xf32>
    %cst_87 = arith.constant 9.99999974E-6 : f32
    %277 = vector.broadcast %cst_87 : f32 to vector<32x1xf32>
    %278 = arith.addf %276, %277 : vector<32x1xf32>
    %279 = math.rsqrt %278 : vector<32x1xf32>
    %280 = vector.broadcast %279 : vector<32x1xf32> to vector<32x32xf32>
    %281 = arith.mulf %271, %280 : vector<32x32xf32>
    %282 = vector.broadcast %176 : vector<1x32xf32> to vector<32x32xf32>
    %283 = arith.mulf %281, %282 : vector<32x32xf32>
    %284 = vector.broadcast %177 : vector<1x32xf32> to vector<32x32xf32>
    %285 = arith.addf %283, %284 : vector<32x32xf32>
    %c1_88 = arith.constant 1 : index
    %c0_89 = arith.constant 0 : index
    %c0_90 = arith.constant 0 : index
    %286 = vector.load %arg7[%c1_88, %c0_89, %c0_90] : memref<2x32x64xf32, #tpu.memory_space<vmem>>, vector<1x32x64xf32>
    %287 = vector.shape_cast %286 : vector<1x32x64xf32> to vector<32x64xf32>
    %cst_91 = arith.constant dense<0.000000e+00> : vector<32x64xf32>
    %288 = tpu.matmul %285, %287, %cst_91 {dimension_numbers = #tpu.dot_dimension_numbers<[1], [0], [0], [1], [0, 0, 1, 1], [], []>} : vector<32x32xf32>, vector<32x64xf32>, vector<32x64xf32> -> vector<32x64xf32>
    %289 = vector.broadcast %174 : vector<1x64xf32> to vector<32x64xf32>
    %290 = arith.addf %288, %289 : vector<32x64xf32>
    %cst_92 = arith.constant 0.000000e+00 : f32
    %291 = vector.broadcast %cst_92 : f32 to vector<32x64xf32>
    %292 = arith.maximumf %290, %291 : vector<32x64xf32>
    %293 = vector.extract_strided_slice %171 {offsets = [32, 0], sizes = [64, 32], strides = [1, 1]} : vector<96x32xf32> to vector<64x32xf32>
    %cst_93 = arith.constant dense<0.000000e+00> : vector<32x32xf32>
    %294 = tpu.matmul %292, %293, %cst_93 {dimension_numbers = #tpu.dot_dimension_numbers<[1], [0], [0], [1], [0, 0, 1, 1], [], []>} : vector<32x64xf32>, vector<64x32xf32>, vector<32x32xf32> -> vector<32x32xf32>
    %295 = vector.broadcast %175 : vector<1x32xf32> to vector<32x32xf32>
    %296 = arith.addf %294, %295 : vector<32x32xf32>
    %297 = arith.addf %285, %296 : vector<32x32xf32>
    %cst_94 = arith.constant dense<0.000000e+00> : vector<32xf32>
    %298 = vector.multi_reduction <add>, %297, %cst_94 [1] : vector<32x32xf32> to vector<32xf32>
    %299 = vector.shape_cast %298 : vector<32xf32> to vector<32x1xf32>
    %cst_95 = arith.constant 3.200000e+01 : f32
    %300 = vector.broadcast %cst_95 : f32 to vector<32x1xf32>
    %301 = arith.divf %299, %300 : vector<32x1xf32>
    %302 = vector.broadcast %301 : vector<32x1xf32> to vector<32x32xf32>
    %303 = arith.subf %297, %302 : vector<32x32xf32>
    %304 = arith.mulf %303, %303 : vector<32x32xf32>
    %cst_96 = arith.constant dense<0.000000e+00> : vector<32xf32>
    %305 = vector.multi_reduction <add>, %304, %cst_96 [1] : vector<32x32xf32> to vector<32xf32>
    %306 = vector.shape_cast %305 : vector<32xf32> to vector<32x1xf32>
    %cst_97 = arith.constant 3.200000e+01 : f32
    %307 = vector.broadcast %cst_97 : f32 to vector<32x1xf32>
    %308 = arith.divf %306, %307 : vector<32x1xf32>
    %cst_98 = arith.constant 9.99999974E-6 : f32
    %309 = vector.broadcast %cst_98 : f32 to vector<32x1xf32>
    %310 = arith.addf %308, %309 : vector<32x1xf32>
    %311 = math.rsqrt %310 : vector<32x1xf32>
    %312 = vector.broadcast %311 : vector<32x1xf32> to vector<32x32xf32>
    %313 = arith.mulf %303, %312 : vector<32x32xf32>
    %314 = vector.broadcast %178 : vector<1x32xf32> to vector<32x32xf32>
    %315 = arith.mulf %313, %314 : vector<32x32xf32>
    %316 = vector.broadcast %179 : vector<1x32xf32> to vector<32x32xf32>
    %317 = arith.addf %315, %316 : vector<32x32xf32>
    %c0_99 = arith.constant 0 : index
    %c0_100 = arith.constant 0 : index
    %c0_101 = arith.constant 0 : index
    %318 = vector.load %arg9[%c0_99, %c0_100, %c0_101] : memref<1x32x32xf32, #tpu.memory_space<vmem>>, vector<1x32x32xf32>
    %319 = vector.shape_cast %318 : vector<1x32x32xf32> to vector<32x32xf32>
    %320 = vector.shape_cast %317 : vector<32x32xf32> to vector<1x32x32xf32>
    tpu.vector_store %arg9[%c0_99, %c0_100, %c0_101], %320 {strides = array<i32>} : memref<1x32x32xf32, #tpu.memory_space<vmem>>, vector<1x32x32xf32>,
    %321 = tpu.iota {dimensions = array<i32: 1>} : vector<4x32xi32>
    %322 = tpu.iota {dimensions = array<i32: 0>} : vector<4x32xi32>
    %323 = arith.cmpi eq, %321, %322 : vector<4x32xi32>
    %c4_i32 = arith.constant 4 : i32
    %324 = vector.broadcast %c4_i32 : i32 to vector<4x32xi32>
    %325 = arith.addi %322, %324 : vector<4x32xi32>
    %326 = arith.cmpi eq, %321, %325 : vector<4x32xi32>
    %327 = arith.ori %323, %326 : vector<4x32xi1>
    %c8_i32 = arith.constant 8 : i32
    %328 = vector.broadcast %c8_i32 : i32 to vector<4x32xi32>
    %329 = arith.addi %322, %328 : vector<4x32xi32>
    %330 = arith.cmpi eq, %321, %329 : vector<4x32xi32>
    %331 = arith.ori %327, %330 : vector<4x32xi1>
    %c12_i32 = arith.constant 12 : i32
    %332 = vector.broadcast %c12_i32 : i32 to vector<4x32xi32>
    %333 = arith.addi %322, %332 : vector<4x32xi32>
    %334 = arith.cmpi eq, %321, %333 : vector<4x32xi32>
    %335 = arith.ori %331, %334 : vector<4x32xi1>
    %c16_i32 = arith.constant 16 : i32
    %336 = vector.broadcast %c16_i32 : i32 to vector<4x32xi32>
    %337 = arith.addi %322, %336 : vector<4x32xi32>
    %338 = arith.cmpi eq, %321, %337 : vector<4x32xi32>
    %339 = arith.ori %335, %338 : vector<4x32xi1>
    %c20_i32 = arith.constant 20 : i32
    %340 = vector.broadcast %c20_i32 : i32 to vector<4x32xi32>
    %341 = arith.addi %322, %340 : vector<4x32xi32>
    %342 = arith.cmpi eq, %321, %341 : vector<4x32xi32>
    %343 = arith.ori %339, %342 : vector<4x32xi1>
    %c24_i32 = arith.constant 24 : i32
    %344 = vector.broadcast %c24_i32 : i32 to vector<4x32xi32>
    %345 = arith.addi %322, %344 : vector<4x32xi32>
    %346 = arith.cmpi eq, %321, %345 : vector<4x32xi32>
    %347 = arith.ori %343, %346 : vector<4x32xi1>
    %c28_i32 = arith.constant 28 : i32
    %348 = vector.broadcast %c28_i32 : i32 to vector<4x32xi32>
    %349 = arith.addi %322, %348 : vector<4x32xi32>
    %350 = arith.cmpi eq, %321, %349 : vector<4x32xi32>
    %351 = arith.ori %347, %350 : vector<4x32xi1>
    %cst_102 = arith.constant 1.250000e-01 : f32
    %cst_103 = arith.constant 0.000000e+00 : f32
    %352 = vector.broadcast %cst_102 : f32 to vector<4x32xf32>
    %353 = vector.broadcast %cst_103 : f32 to vector<4x32xf32>
    %354 = arith.select %351, %352, %353 : vector<4x32xi1>, vector<4x32xf32>
    %cst_104 = arith.constant dense<0.000000e+00> : vector<4x32xf32>
    %355 = tpu.matmul %354, %317, %cst_104 {dimension_numbers = #tpu.dot_dimension_numbers<[1], [0], [0], [1], [0, 0, 1, 1], [], []>} : vector<4x32xf32>, vector<32x32xf32>, vector<4x32xf32> -> vector<4x32xf32>
    %c0_105 = arith.constant 0 : index
    %c0_106 = arith.constant 0 : index
    %c0_107 = arith.constant 0 : index
    %356 = vector.load %arg10[%c0_105, %c0_106, %c0_107] : memref<1x4x32xf32, #tpu.memory_space<vmem>>, vector<1x4x32xf32>
    %357 = vector.shape_cast %356 : vector<1x4x32xf32> to vector<4x32xf32>
    %358 = vector.shape_cast %355 : vector<4x32xf32> to vector<1x4x32xf32>
    tpu.vector_store %arg10[%c0_105, %c0_106, %c0_107], %358 {strides = array<i32>} : memref<1x4x32xf32, #tpu.memory_space<vmem>>, vector<1x4x32xf32>,
    return
  }
  func.func @transform_0(%arg0: i32) -> (i32, i32, i32) {
    %c0_i32 = arith.constant 0 : i32
    %c0_i32_0 = arith.constant 0 : i32
    %c0_i32_1 = arith.constant 0 : i32
    return %arg0, %c0_i32, %c0_i32_0 : i32, i32, i32
  }
  func.func @transform_1(%arg0: i32) -> (i32, i32, i32) {
    %c0_i32 = arith.constant 0 : i32
    %c0_i32_0 = arith.constant 0 : i32
    %c0_i32_1 = arith.constant 0 : i32
    return %arg0, %c0_i32, %c0_i32_0 : i32, i32, i32
  }
  func.func @transform_2(%arg0: i32) -> (i32, i32) {
    %c0_i32 = arith.constant 0 : i32
    %c0_i32_0 = arith.constant 0 : i32
    %c0_i32_1 = arith.constant 0 : i32
    return %c0_i32, %c0_i32_0 : i32, i32
  }
  func.func @transform_3(%arg0: i32) -> (i32, i32) {
    %c0_i32 = arith.constant 0 : i32
    %c0_i32_0 = arith.constant 0 : i32
    %c0_i32_1 = arith.constant 0 : i32
    return %c0_i32, %c0_i32_0 : i32, i32
  }
  func.func @transform_4(%arg0: i32) -> (i32, i32, i32) {
    %c0_i32 = arith.constant 0 : i32
    %c0_i32_0 = arith.constant 0 : i32
    %c0_i32_1 = arith.constant 0 : i32
    %c0_i32_2 = arith.constant 0 : i32
    return %c0_i32, %c0_i32_0, %c0_i32_1 : i32, i32, i32
  }
  func.func @transform_5(%arg0: i32) -> (i32, i32, i32) {
    %c0_i32 = arith.constant 0 : i32
    %c0_i32_0 = arith.constant 0 : i32
    %c0_i32_1 = arith.constant 0 : i32
    %c0_i32_2 = arith.constant 0 : i32
    return %c0_i32, %c0_i32_0, %c0_i32_1 : i32, i32, i32
  }
  func.func @transform_6(%arg0: i32) -> (i32, i32, i32) {
    %c0_i32 = arith.constant 0 : i32
    %c0_i32_0 = arith.constant 0 : i32
    %c0_i32_1 = arith.constant 0 : i32
    %c0_i32_2 = arith.constant 0 : i32
    return %c0_i32, %c0_i32_0, %c0_i32_1 : i32, i32, i32
  }
  func.func @transform_7(%arg0: i32) -> (i32, i32, i32) {
    %c0_i32 = arith.constant 0 : i32
    %c0_i32_0 = arith.constant 0 : i32
    %c0_i32_1 = arith.constant 0 : i32
    %c0_i32_2 = arith.constant 0 : i32
    return %c0_i32, %c0_i32_0, %c0_i32_1 : i32, i32, i32
  }
  func.func @transform_8(%arg0: i32) -> (i32, i32, i32) {
    %c0_i32 = arith.constant 0 : i32
    %c0_i32_0 = arith.constant 0 : i32
    %c0_i32_1 = arith.constant 0 : i32
    return %arg0, %c0_i32, %c0_i32_0 : i32, i32, i32
  }
  func.func @transform_9(%arg0: i32) -> (i32, i32, i32) {
    %c0_i32 = arith.constant 0 : i32
    %c0_i32_0 = arith.constant 0 : i32
    %c0_i32_1 = arith.constant 0 : i32
    return %arg0, %c0_i32, %c0_i32_0 : i32, i32, i32
  }
}

</mosaic_0001>

<bundles_post_ra>
// kernel: tile.9
= control target key start
LH: loop header
LB: loop body
LE: loop exit
PB: predicated region body
PF: predicated region fallthrough
CT: control target
= control target key end

     0   :  { %vm4_vm0 = vcmask 1047556   ;;  %s869_s14 = smov 28   ;;  %s870_s22 = smov 24   ;;  %vm6_vm1 = vcmask 31744   ;;  %vm79_vm2 = vcmask 261344   ;;  %vm166_vm3 = vcmask 228544   ;;  %s1630_s0 = inlined_call_operand.vmem [shape: f32[2,8,4,8,4], index: 0, kind: input, shape index: {}]   ;;  %s1631_s1 = inlined_call_operand.vmem [shape: f32[2,32,32], index: 1, kind: output, shape index: {}]  }
   0x1   :  { %v706_v0 = vld [vmem:[%s1630_s0 + $0x47] ss:$8 sm:$0xf]   ;;  %v729_v24 = vld [vmem:[%s1630_s0 + $0x46] ss:$8 sm:$0xf]  }
   0x2   :  { %v707_v1 = vld [vmem:[%s1630_s0 + $0x47] ss:$8 sm:$0xf0]   ;;  %v730_v25 = vld [vmem:[%s1630_s0 + $0x46] ss:$8 sm:$0xf0]  }
   0x3   :  { %v97_v2 = vsel %vm4_vm0, %v707_v1, %v706_v0  ;;  %v701_v3 = vld [vmem:[%s1630_s0 + $0x7] ss:$8 sm:$0xf]   ;;  %v724_v26 = vld [vmem:[%s1630_s0 + $0x6] ss:$8 sm:$0xf]   ;;  %v184_v30 = vsel %vm4_vm0, %v730_v25, %v729_v24 }
   0x4   :  { %v702_v4 = vld [vmem:[%s1630_s0 + $0x7] ss:$8 sm:$0xf0]   ;;  %98 = vrot.lane.b32.xlu1 %v97_v2, %s869_s14  ;;  %v725_v27 = vld [vmem:[%s1630_s0 + $0x6] ss:$8 sm:$0xf0]  }
   0x5   :  { %v76_v5 = vsel %vm4_vm0, %v702_v4, %v701_v3  ;;  %v709_v6 = vld [vmem:[%s1630_s0 + $0x147] ss:$8 sm:$0xf]   ;;  %v726_v28 = vld [vmem:[%s1630_s0 + $0x106] ss:$8 sm:$0xf]   ;;  %v163_v31 = vsel %vm4_vm0, %v725_v27, %v724_v26 }
   0x6   :  { %77 = vrot.lane.b32.xlu0 %v76_v5, %s869_s14  ;;  %v710_v7 = vld [vmem:[%s1630_s0 + $0x147] ss:$8 sm:$0xf0]   ;;  %v727_v29 = vld [vmem:[%s1630_s0 + $0x106] ss:$8 sm:$0xf0]  }
   0x7   :  { %v703_v8 = vld [vmem:[%s1630_s0 + $0x107] ss:$8 sm:$0xf]   ;;  %v108_v10 = vsel %vm4_vm0, %v710_v7, %v709_v6  ;;  %v173_v32 = vsel %vm4_vm0, %v727_v29, %v726_v28  ;;  %v738_v33 = vld [vmem:[%s1630_s0 + $0x186] ss:$8 sm:$0xf]  }
   0x8   :  { %v704_v9 = vld [vmem:[%s1630_s0 + $0x107] ss:$8 sm:$0xf0]   ;;  %v739_v34 = vld [vmem:[%s1630_s0 + $0x186] ss:$8 sm:$0xf0]  }
   0x9   :  { %v86_v11 = vsel %vm4_vm0, %v704_v9, %v703_v8  ;;  %v712_v12 = vld [vmem:[%s1630_s0 + $0x87] ss:$8 sm:$0xf]   ;;  %v732_v35 = vld [vmem:[%s1630_s0 + $0x146] ss:$8 sm:$0xf]   ;;  %v217_v39 = vsel %vm4_vm0, %v739_v34, %v738_v33 }
   0xa   :  { %v713_v13 = vld [vmem:[%s1630_s0 + $0x87] ss:$8 sm:$0xf0]   ;;  %v733_v36 = vld [vmem:[%s1630_s0 + $0x146] ss:$8 sm:$0xf0]  }
   0xb   :  { %v119_v14 = vsel %vm4_vm0, %v713_v13, %v712_v12  ;;  %v721_v15 = vld [vmem:[%s1630_s0 + $0x1c7] ss:$8 sm:$0xf]   ;;  %v735_v37 = vld [vmem:[%s1630_s0 + $0x86] ss:$8 sm:$0xf]   ;;  %v195_v40 = vsel %vm4_vm0, %v733_v36, %v732_v35 }
   0xc   :  { %109 = vrot.lane.b32.xlu1 %v108_v10, %s869_s14  ;;  %120 = vrot.lane.b32.xlu2 %v119_v14, %s869_s14  ;;  %v722_v16 = vld [vmem:[%s1630_s0 + $0x1c7] ss:$8 sm:$0xf0]   ;;  %v736_v38 = vld [vmem:[%s1630_s0 + $0x86] ss:$8 sm:$0xf0]  }
   0xd   :  { %v715_v17 = vld [vmem:[%s1630_s0 + $0x187] ss:$8 sm:$0xf]   ;;  %v152_v21 = vsel %vm4_vm0, %v722_v16, %v721_v15  ;;  %v206_v41 = vsel %vm4_vm0, %v736_v38, %v735_v37  ;;  %v747_v42 = vld [vmem:[%s1630_s0 + $0x5] ss:$8 sm:$0xf]  }
   0xe   :  { %87 = vrot.lane.b32.xlu0 %v86_v11, %s869_s14  ;;  %v716_v18 = vld [vmem:[%s1630_s0 + $0x187] ss:$8 sm:$0xf0]   ;;  %v748_v43 = vld [vmem:[%s1630_s0 + $0x5] ss:$8 sm:$0xf0]  }
   0xf   :  { %v718_v19 = vld [vmem:[%s1630_s0 + $0xc7] ss:$8 sm:$0xf]   ;;  %v130_v22 = vsel %vm4_vm0, %v716_v18, %v715_v17  ;;  %v741_v44 = vld [vmem:[%s1630_s0 + $0xc6] ss:$8 sm:$0xf]   ;;  %v250_v48 = vsel %vm4_vm0, %v748_v43, %v747_v42 }
  0x10   :  { %v719_v20 = vld [vmem:[%s1630_s0 + $0xc7] ss:$8 sm:$0xf0]   ;;  %v742_v45 = vld [vmem:[%s1630_s0 + $0xc6] ss:$8 sm:$0xf0]  }
  0x11   :  { %v141_v23 = vsel %vm4_vm0, %v719_v20, %v718_v19  ;;  %v744_v46 = vld [vmem:[%s1630_s0 + $0x1c6] ss:$8 sm:$0xf]   ;;  %v228_v49 = vsel %vm4_vm0, %v742_v45, %v741_v44  ;;  %s871_s18 = smov 20   ;;  %s872_s27 = smov 16   ;;  %vm253_vm4 = vcmask 195744  }
  0x12   :  { %v745_v47 = vld [vmem:[%s1630_s0 + $0x1c6] ss:$8 sm:$0xf0]   ;;  %v755_v51 = vld [vmem:[%s1630_s0 + $0x145] ss:$8 sm:$0xf]  }
  0x13   :  { %v239_v50 = vsel %vm4_vm0, %v745_v47, %v744_v46  ;;  %v756_v52 = vld [vmem:[%s1630_s0 + $0x145] ss:$8 sm:$0xf0]   ;;  %v772_v5 = vld [vmem:[%s1630_s0 + $0x104] ss:$8 sm:$0xf]  }
  0x14   :  { %153 = vrot.lane.b32.xlu1 %v152_v21, %s869_s14  ;;  %131 = vrot.lane.b32.xlu2 %v130_v22, %s869_s14  ;;  %v749_v53 = vld [vmem:[%s1630_s0 + $0x105] ss:$8 sm:$0xf]   ;;  %v282_v57 = vsel %vm4_vm0, %v756_v52, %v755_v51  ;;  %v773_v6 = vld [vmem:[%s1630_s0 + $0x104] ss:$8 sm:$0xf0]  }
  0x15   :  { %v750_v54 = vld [vmem:[%s1630_s0 + $0x105] ss:$8 sm:$0xf0]   ;;  %v770_v9 = vld [vmem:[%s1630_s0 + $0x4] ss:$8 sm:$0xf]   ;;  %v347_v11 = vsel %vm4_vm0, %v773_v6, %v772_v5 }
  0x16   :  { %142 = vrot.lane.b32.xlu0 %v141_v23, %s869_s14  ;;  %v752_v55 = vld [vmem:[%s1630_s0 + $0x45] ss:$8 sm:$0xf]   ;;  %v260_v58 = vsel %vm4_vm0, %v750_v54, %v749_v53  ;;  %v771_v10 = vld [vmem:[%s1630_s0 + $0x4] ss:$8 sm:$0xf0]  }
  0x17   :  { %v753_v56 = vld [vmem:[%s1630_s0 + $0x45] ss:$8 sm:$0xf0]   ;;  %v337_v13 = vsel %vm4_vm0, %v771_v10, %v770_v9  ;;  %v781_v14 = vld [vmem:[%s1630_s0 + $0x84] ss:$8 sm:$0xf]  }
  0x18   :  { %v271_v59 = vsel %vm4_vm0, %v753_v56, %v752_v55  ;;  %v764_v60 = vld [vmem:[%s1630_s0 + $0xc5] ss:$8 sm:$0xf]   ;;  %v782_v15 = vld [vmem:[%s1630_s0 + $0x84] ss:$8 sm:$0xf0]  }
  0x19   :  { %v765_v61 = vld [vmem:[%s1630_s0 + $0xc5] ss:$8 sm:$0xf0]   ;;  %v775_v16 = vld [vmem:[%s1630_s0 + $0x44] ss:$8 sm:$0xf]   ;;  %v380_v20 = vsel %vm4_vm0, %v782_v15, %v781_v14 }
  0x1a   :  { %v758_v62 = vld [vmem:[%s1630_s0 + $0x85] ss:$8 sm:$0xf]   ;;  %v315_v2 = vsel %vm4_vm0, %v765_v61, %v764_v60  ;;  %v776_v17 = vld [vmem:[%s1630_s0 + $0x44] ss:$8 sm:$0xf0]  }
  0x1b   :  { %v759_v63 = vld [vmem:[%s1630_s0 + $0x85] ss:$8 sm:$0xf0]   ;;  %v778_v18 = vld [vmem:[%s1630_s0 + $0x144] ss:$8 sm:$0xf]   ;;  %v358_v21 = vsel %vm4_vm0, %v776_v17, %v775_v16 }
  0x1c   :  { %185 = vrot.lane.b32.xlu1 %v184_v30, %s870_s22  ;;  %164 = vrot.lane.b32.xlu2 %v163_v31, %s870_s22  ;;  %v761_v0 = vld [vmem:[%s1630_s0 + $0x185] ss:$8 sm:$0xf]   ;;  %v293_v3 = vsel %vm4_vm0, %v759_v63, %v758_v62  ;;  %v779_v19 = vld [vmem:[%s1630_s0 + $0x144] ss:$8 sm:$0xf0]  }
  0x1d   :  { %v762_v1 = vld [vmem:[%s1630_s0 + $0x185] ss:$8 sm:$0xf0]   ;;  %v369_v22 = vsel %vm4_vm0, %v779_v19, %v778_v18  ;;  %v790_v23 = vld [vmem:[%s1630_s0 + $0x1c4] ss:$8 sm:$0xf]  }
  0x1e   :  { %174 = vrot.lane.b32.xlu0 %v173_v32, %s870_s22  ;;  %v304_v4 = vsel %vm4_vm0, %v762_v1, %v761_v0  ;;  %v767_v7 = vld [vmem:[%s1630_s0 + $0x1c5] ss:$8 sm:$0xf]   ;;  %v791_v24 = vld [vmem:[%s1630_s0 + $0x1c4] ss:$8 sm:$0xf0]  }
  0x1f   :  { %v768_v8 = vld [vmem:[%s1630_s0 + $0x1c5] ss:$8 sm:$0xf0]   ;;  %v784_v25 = vld [vmem:[%s1630_s0 + $0x184] ss:$8 sm:$0xf]   ;;  %v413_v29 = vsel %vm4_vm0, %v791_v24, %v790_v23 }
  0x20   :  { %v326_v12 = vsel %vm4_vm0, %v768_v8, %v767_v7  ;;  %v785_v26 = vld [vmem:[%s1630_s0 + $0x184] ss:$8 sm:$0xf0]   ;;  %v798_v32 = vld [vmem:[%s1630_s0 + $0x43] ss:$8 sm:$0xf]  }
  0x21   :  { %v787_v27 = vld [vmem:[%s1630_s0 + $0xc4] ss:$8 sm:$0xf]   ;;  %v391_v30 = vsel %vm4_vm0, %v785_v26, %v784_v25  ;;  %v799_v33 = vld [vmem:[%s1630_s0 + $0x43] ss:$8 sm:$0xf0]  }
  0x22   :  { %v788_v28 = vld [vmem:[%s1630_s0 + $0xc4] ss:$8 sm:$0xf0]   ;;  %v793_v34 = vld [vmem:[%s1630_s0 + $0x3] ss:$8 sm:$0xf]   ;;  %v445_v44 = vsel %vm4_vm0, %v799_v33, %v798_v32 }
  0x23   :  { %v402_v31 = vsel %vm4_vm0, %v788_v28, %v787_v27  ;;  %v794_v35 = vld [vmem:[%s1630_s0 + $0x3] ss:$8 sm:$0xf0]   ;;  %v680_v37 = vld [vmem:[%s1630_s0 + $0x40] ss:$8 sm:$0xf]  }
  0x24   :  { %218 = vrot.lane.b32.xlu1 %v217_v39, %s870_s22  ;;  %196 = vrot.lane.b32.xlu2 %v195_v40, %s870_s22  ;;  %v795_v36 = vld [vmem:[%s1630_s0 + $0x103] ss:$8 sm:$0xf]   ;;  %v681_v38 = vld [vmem:[%s1630_s0 + $0x40] ss:$8 sm:$0xf0]   ;;  %v424_v45 = vsel %vm4_vm0, %v794_v35, %v793_v34 }
  0x25   :  { %v2_v39 = vld [vmem:[%s1630_s0] ss:$8 sm:$0xf]   ;;  %v796_v40 = vld [vmem:[%s1630_s0 + $0x103] ss:$8 sm:$0xf0]  }
  0x26   :  { %207 = vrot.lane.b32.xlu0 %v206_v41, %s870_s22  ;;  %v13_v41 = vsel %vm4_vm0, %v681_v38, %v680_v37  ;;  %v3_v42 = vld [vmem:[%s1630_s0] ss:$8 sm:$0xf0]   ;;  %v434_v46 = vsel %vm4_vm0, %v796_v40, %v795_v36  ;;  %s873_s17 = smov 12   ;;  %s874_s25 = smov 8   ;;  %vm340_vm5 = vcmask 162944  }
  0x27   :  { %682 = vst.msk [vmem:[%s1631_s1 + $0x8] sm:$0xff] %vm6_vm1, %v13_v41   ;;  %v5_v43 = vsel %vm4_vm0, %v3_v42, %v2_v39  ;;  %v807_v47 = vld [vmem:[%s1630_s0 + $0x183] ss:$8 sm:$0xf]   ;;  %s875_s19 = smov 4   ;;  %vm427_vm6 = vcmask 130144  }
  0x28   :  { %7 = vst.msk [vmem:[%s1631_s1] sm:$0xff] %vm6_vm1, %v5_v43   ;;  %v804_v51 = vld [vmem:[%s1630_s0 + $0x83] ss:$8 sm:$0xf]   ;;  %vm514_vm7 = vcmask 97344   ;;  %vm601_vm8 = vcmask 64544  }
  0x29   :  { %v805_v52 = vld [vmem:[%s1630_s0 + $0x83] ss:$8 sm:$0xf0]   ;;  %v683_v53 = vld [vmem:[%s1630_s0 + $0x80] ss:$8 sm:$0xf]  }
  0x2a   :  { %v684_v54 = vld [vmem:[%s1630_s0 + $0x80] ss:$8 sm:$0xf0]   ;;  %v467_v0 = vsel %vm4_vm0, %v805_v52, %v804_v51  ;;  %v816_v1 = vld [vmem:[%s1630_s0 + $0x2] ss:$8 sm:$0xf]  }
  0x2b   :  { %v22_v55 = vsel %vm4_vm0, %v684_v54, %v683_v53  ;;  %v692_v56 = vld [vmem:[%s1630_s0 + $0x140] ss:$8 sm:$0xf]   ;;  %v813_v5 = vld [vmem:[%s1630_s0 + $0x1c3] ss:$8 sm:$0xf]  }
  0x2c   :  { %251 = vrot.lane.b32.xlu1 %v250_v48, %s871_s18  ;;  %229 = vrot.lane.b32.xlu2 %v228_v49, %s870_s22  ;;  %v808_v48 = vld [vmem:[%s1630_s0 + $0x183] ss:$8 sm:$0xf0]   ;;  %685 = vst.msk [vmem:[%s1631_s1 + $0x10] sm:$0xff] %vm6_vm1, %v22_v55  }
  0x2d   :  { %v801_v49 = vld [vmem:[%s1630_s0 + $0x143] ss:$8 sm:$0xf]   ;;  %v690_v60 = vld [vmem:[%s1630_s0 + $0x100] ss:$8 sm:$0xf0]   ;;  %v478_v61 = vsel %vm4_vm0, %v808_v48, %v807_v47 }
  0x2e   :  { %240 = vrot.lane.b32.xlu0 %v239_v50, %s870_s22  ;;  %v802_v50 = vld [vmem:[%s1630_s0 + $0x143] ss:$8 sm:$0xf0]   ;;  %v695_v7 = vld [vmem:[%s1630_s0 + $0x180] ss:$8 sm:$0xf]  }
  0x2f   :  { %v456_v62 = vsel %vm4_vm0, %v802_v50, %v801_v49  ;;  %v814_v6 = vld [vmem:[%s1630_s0 + $0x1c3] ss:$8 sm:$0xf0]   ;;  %v696_v8 = vld [vmem:[%s1630_s0 + $0x180] ss:$8 sm:$0xf0]  }
  0x30   :  { %v58_v10 = vsel %vm4_vm0, %v696_v8, %v695_v7  ;;  %v686_v14 = vld [vmem:[%s1630_s0 + $0xc0] ss:$8 sm:$0xf]   ;;  %v500_v19 = vsel %vm4_vm0, %v814_v6, %v813_v5  ;;  %v818_v24 = vld [vmem:[%s1630_s0 + $0x102] ss:$8 sm:$0xf]  }
  0x31   :  { %697 = vst.msk [vmem:[%s1631_s1 + $0x30] sm:$0xff] %vm6_vm1, %v58_v10   ;;  %v687_v15 = vld [vmem:[%s1630_s0 + $0xc0] ss:$8 sm:$0xf0]  }
  0x32   :  { %v31_v18 = vsel %vm4_vm0, %v687_v15, %v686_v14  ;;  %v819_v25 = vld [vmem:[%s1630_s0 + $0x102] ss:$8 sm:$0xf0]   ;;  %v841_v42 = vld [vmem:[%s1630_s0 + $0x101] ss:$8 sm:$0xf]  }
  0x33   :  { %688 = vst.msk [vmem:[%s1631_s1 + $0x18] sm:$0xff] %vm6_vm1, %v31_v18   ;;  %v822_v26 = vld [vmem:[%s1630_s0 + $0x42] ss:$8 sm:$0xf0]   ;;  %v521_v28 = vsel %vm4_vm0, %v819_v25, %v818_v24 }
  0x34   :  { %283 = vrot.lane.b32.xlu1 %v282_v57, %s871_s18  ;;  %261 = vrot.lane.b32.xlu2 %v260_v58, %s871_s18  ;;  %v693_v57 = vld [vmem:[%s1630_s0 + $0x140] ss:$8 sm:$0xf0]   ;;  %v830_v32 = vld [vmem:[%s1630_s0 + $0x182] ss:$8 sm:$0xf]  }
  0x35   :  { %v49_v58 = vsel %vm4_vm0, %v693_v57, %v692_v56  ;;  %v827_v35 = vld [vmem:[%s1630_s0 + $0x82] ss:$8 sm:$0xf]   ;;  %v842_v43 = vld [vmem:[%s1630_s0 + $0x101] ss:$8 sm:$0xf0]  }
  0x36   :  { %272 = vrot.lane.b32.xlu0 %v271_v59, %s871_s18  ;;  %v689_v59 = vld [vmem:[%s1630_s0 + $0x100] ss:$8 sm:$0xf]   ;;  %694 = vst.msk [vmem:[%s1631_s1 + $0x28] sm:$0xff] %vm6_vm1, %v49_v58   ;;  %v608_v51 = vsel %vm4_vm0, %v842_v43, %v841_v42 }
  0x37   :  { %v40_v63 = vsel %vm4_vm0, %v690_v60, %v689_v59  ;;  %v828_v36 = vld [vmem:[%s1630_s0 + $0x82] ss:$8 sm:$0xf0]   ;;  %v840_v50 = vld [vmem:[%s1630_s0 + $0x1] ss:$8 sm:$0xf0]  }
  0x38   :  { %691 = vst.msk [vmem:[%s1631_s1 + $0x20] sm:$0xff] %vm6_vm1, %v40_v63   ;;  %v831_v38 = vld [vmem:[%s1630_s0 + $0x182] ss:$8 sm:$0xf0]   ;;  %v554_v40 = vsel %vm4_vm0, %v828_v36, %v827_v35 }
  0x39   :  { %v565_v41 = vsel %vm4_vm0, %v831_v38, %v830_v32  ;;  %v836_v47 = vld [vmem:[%s1630_s0 + $0x1c2] ss:$8 sm:$0xf]   ;;  %v850_v54 = vld [vmem:[%s1630_s0 + $0x81] ss:$8 sm:$0xf]  }
  0x3a   :  { %v837_v48 = vld [vmem:[%s1630_s0 + $0x1c2] ss:$8 sm:$0xf0]   ;;  %v851_v55 = vld [vmem:[%s1630_s0 + $0x81] ss:$8 sm:$0xf0]  }
  0x3b   :  { %v587_v52 = vsel %vm4_vm0, %v837_v48, %v836_v47  ;;  %v847_v56 = vld [vmem:[%s1630_s0 + $0x141] ss:$8 sm:$0xf]   ;;  %v641_v63 = vsel %vm4_vm0, %v851_v55, %v850_v54 }
  0x3c   :  { %316 = vrot.lane.b32.xlu1 %v315_v2, %s871_s18  ;;  %294 = vrot.lane.b32.xlu2 %v293_v3, %s871_s18  ;;  %v817_v2 = vld [vmem:[%s1630_s0 + $0x2] ss:$8 sm:$0xf0]   ;;  %v810_v3 = vld [vmem:[%s1630_s0 + $0xc3] ss:$8 sm:$0xf]  }
  0x3d   :  { %v511_v16 = vsel %vm4_vm0, %v817_v2, %v816_v1  ;;  %v844_v59 = vld [vmem:[%s1630_s0 + $0x41] ss:$8 sm:$0xf]  }
  0x3e   :  { %305 = vrot.lane.b32.xlu0 %v304_v4, %s871_s18  ;;  %v811_v4 = vld [vmem:[%s1630_s0 + $0xc3] ss:$8 sm:$0xf0]   ;;  %v845_v60 = vld [vmem:[%s1630_s0 + $0x41] ss:$8 sm:$0xf0]  }
  0x3f   :  { %v489_v17 = vsel %vm4_vm0, %v811_v4, %v810_v3  ;;  %v859_v2 = vld [vmem:[%s1630_s0 + $0x1c1] ss:$8 sm:$0xf]  }
  0x40   :  { %v860_v3 = vld [vmem:[%s1630_s0 + $0x1c1] ss:$8 sm:$0xf0]  }
  0x41   :  { %v856_v4 = vld [vmem:[%s1630_s0 + $0xc1] ss:$8 sm:$0xf]  }
  0x42   :  { %v853_v7 = vld [vmem:[%s1630_s0 + $0x181] ss:$8 sm:$0xf]  }
  0x43   :  { %v854_v8 = vld [vmem:[%s1630_s0 + $0x181] ss:$8 sm:$0xf0]  }
  0x44   :  { %348 = vrot.lane.b32.xlu1 %v347_v11, %s872_s27  ;;  %327 = vrot.lane.b32.xlu2 %v326_v12, %s871_s18  ;;  %v698_v11 = vld [vmem:[%s1630_s0 + $0x1c0] ss:$8 sm:$0xf]   ;;  %v857_v10 = vld [vmem:[%s1630_s0 + $0xc1] ss:$8 sm:$0xf0]  }
  0x45   :  { %v699_v12 = vld [vmem:[%s1630_s0 + $0x1c0] ss:$8 sm:$0xf0]  }
  0x46   :  { %338 = vrot.lane.b32.xlu0 %v337_v13, %s872_s27  ;;  %v67_v13 = vsel %vm4_vm0, %v699_v12, %v698_v11  ;;  %v674_v11 = vsel %vm4_vm0, %v860_v3, %v859_v2  ;;  %v652_v12 = vsel %vm4_vm0, %v854_v8, %v853_v7 }
  0x47   :  { %700 = vst.msk [vmem:[%s1631_s1 + $0x38] sm:$0xff] %vm6_vm1, %v67_v13   ;;  %v663_v13 = vsel %vm4_vm0, %v857_v10, %v856_v4 }
  0x4c   :  { %381 = vrot.lane.b32.xlu1 %v380_v20, %s872_s27  ;;  %359 = vrot.lane.b32.xlu2 %v358_v21, %s872_s27  ;;  %v824_v20 = vld [vmem:[%s1630_s0 + $0x142] ss:$8 sm:$0xf]  }
  0x4d   :  { %v825_v21 = vld [vmem:[%s1630_s0 + $0x142] ss:$8 sm:$0xf0]  }
  0x4e   :  { %370 = vrot.lane.b32.xlu0 %v369_v22, %s872_s27  ;;  %v821_v22 = vld [vmem:[%s1630_s0 + $0x42] ss:$8 sm:$0xf]   ;;  %v543_v27 = vsel %vm4_vm0, %v825_v21, %v824_v20 }
  0x54   :  { %414 = vrot.lane.b32.xlu1 %v413_v29, %s872_s27  ;;  %392 = vrot.lane.b32.xlu2 %v391_v30, %s872_s27  ;;  %v532_v29 = vsel %vm4_vm0, %v822_v26, %v821_v22  ;;  %v833_v30 = vld [vmem:[%s1630_s0 + $0xc2] ss:$8 sm:$0xf]  }
  0x56   :  { %403 = vrot.lane.b32.xlu0 %v402_v31, %s872_s27  ;;  %v834_v31 = vld [vmem:[%s1630_s0 + $0xc2] ss:$8 sm:$0xf0]  }
  0x57   :  { %v576_v39 = vsel %vm4_vm0, %v834_v31, %v833_v30 }
  0x5c   :  { %446 = vrot.lane.b32.xlu1 %v445_v44, %s873_s17  ;;  %425 = vrot.lane.b32.xlu2 %v424_v45, %s873_s17  ;;  %v839_v44 = vld [vmem:[%s1630_s0 + $0x1] ss:$8 sm:$0xf]  }
  0x5d   :  { %v598_v53 = vsel %vm4_vm0, %v840_v50, %v839_v44 }
  0x5e   :  { %435 = vrot.lane.b32.xlu0 %v434_v46, %s873_s17 }
  0x64   :  { %479 = vrot.lane.b32.xlu1 %v478_v61, %s873_s17  ;;  %457 = vrot.lane.b32.xlu2 %v456_v62, %s873_s17  ;;  %v848_v62 = vld [vmem:[%s1630_s0 + $0x141] ss:$8 sm:$0xf0]  }
  0x65   :  { %v630_v1 = vsel %vm4_vm0, %v848_v62, %v847_v56 }
  0x66   :  { %468 = vrot.lane.b32.xlu0 %v467_v0, %s873_s17  ;;  %v121_v9 = vpop.permute.xlu2 %120   ;;  %v619_v0 = vsel %vm4_vm0, %v845_v60, %v844_v59 }
  0x67   :  { %714 = vst.msk [vmem:[%s1631_s1 + $0x10] sm:$0xff] %vm79_vm2, %v121_v9  }
  0x6c   :  { %512 = vrot.lane.b32.xlu1 %v511_v16, %s874_s25  ;;  %490 = vrot.lane.b32.xlu2 %v489_v17, %s873_s17 }
  0x6e   :  { %501 = vrot.lane.b32.xlu0 %v500_v19, %s873_s17  ;;  %v132_v23 = vpop.permute.xlu2 %131  }
  0x6f   :  { %717 = vst.msk [vmem:[%s1631_s1 + $0x30] sm:$0xff] %vm79_vm2, %v132_v23  }
  0x74   :  { %544 = vrot.lane.b32.xlu1 %v543_v27, %s874_s25  ;;  %522 = vrot.lane.b32.xlu2 %v521_v28, %s874_s25 }
  0x76   :  { %533 = vrot.lane.b32.xlu0 %v532_v29, %s874_s25  ;;  %v99_v33 = vpop.permute.xlu1 %98   ;;  %v165_v34 = vpop.permute.xlu2 %164  }
  0x77   :  { %708 = vst.msk [vmem:[%s1631_s1 + $0x8] sm:$0xff] %vm79_vm2, %v99_v33  }
  0x78   :  { %v78_v37 = vpop.permute.xlu0 %77  }
  0x79   :  { %80 = vst.msk [vmem:[%s1631_s1] sm:$0xff] %vm79_vm2, %v78_v37  }
  0x7a   :  { %167 = vst.msk [vmem:[%s1631_s1] sm:$0xff] %vm166_vm3, %v165_v34  }
  0x7c   :  { %577 = vrot.lane.b32.xlu1 %v576_v39, %s874_s25  ;;  %555 = vrot.lane.b32.xlu2 %v554_v40, %s874_s25 }
  0x7e   :  { %566 = vrot.lane.b32.xlu0 %v565_v41, %s874_s25  ;;  %v110_v45 = vpop.permute.xlu1 %109   ;;  %v197_v46 = vpop.permute.xlu2 %196  }
  0x7f   :  { %711 = vst.msk [vmem:[%s1631_s1 + $0x28] sm:$0xff] %vm79_vm2, %v110_v45  }
  0x80   :  { %v88_v49 = vpop.permute.xlu0 %87   ;;  %734 = vst.msk [vmem:[%s1631_s1 + $0x28] sm:$0xff] %vm166_vm3, %v197_v46  }
  0x81   :  { %705 = vst.msk [vmem:[%s1631_s1 + $0x20] sm:$0xff] %vm79_vm2, %v88_v49  }
  0x84   :  { %609 = vrot.lane.b32.xlu1 %v608_v51, %s875_s19  ;;  %588 = vrot.lane.b32.xlu2 %v587_v52, %s874_s25 }
  0x86   :  { %599 = vrot.lane.b32.xlu0 %v598_v53, %s875_s19  ;;  %v154_v57 = vpop.permute.xlu1 %153   ;;  %v230_v58 = vpop.permute.xlu2 %229  }
  0x87   :  { %723 = vst.msk [vmem:[%s1631_s1 + $0x38] sm:$0xff] %vm79_vm2, %v154_v57  }
  0x88   :  { %v143_v61 = vpop.permute.xlu0 %142  }
  0x89   :  { %720 = vst.msk [vmem:[%s1631_s1 + $0x18] sm:$0xff] %vm79_vm2, %v143_v61  }
  0x8a   :  { %743 = vst.msk [vmem:[%s1631_s1 + $0x18] sm:$0xff] %vm166_vm3, %v230_v58  }
  0x8c   :  { %642 = vrot.lane.b32.xlu1 %v641_v63, %s875_s19  ;;  %620 = vrot.lane.b32.xlu2 %v619_v0, %s875_s19 }
  0x8e   :  { %631 = vrot.lane.b32.xlu0 %v630_v1, %s875_s19  ;;  %v186_v5 = vpop.permute.xlu1 %185   ;;  %v262_v6 = vpop.permute.xlu2 %261  }
  0x8f   :  { %731 = vst.msk [vmem:[%s1631_s1 + $0x8] sm:$0xff] %vm166_vm3, %v186_v5  }
  0x90   :  { %v175_v9 = vpop.permute.xlu0 %174  }
  0x91   :  { %728 = vst.msk [vmem:[%s1631_s1 + $0x20] sm:$0xff] %vm166_vm3, %v175_v9  }
  0x92   :  { %751 = vst.msk [vmem:[%s1631_s1 + $0x20] sm:$0xff] %vm253_vm4, %v262_v6  }
  0x94   :  { %675 = vrot.lane.b32.xlu1 %v674_v11, %s875_s19  ;;  %653 = vrot.lane.b32.xlu2 %v652_v12, %s875_s19 }
  0x96   :  { %664 = vrot.lane.b32.xlu0 %v663_v13, %s875_s19  ;;  %v219_v14 = vpop.permute.xlu1 %218   ;;  %v295_v15 = vpop.permute.xlu2 %294  }
  0x97   :  { %740 = vst.msk [vmem:[%s1631_s1 + $0x30] sm:$0xff] %vm166_vm3, %v219_v14  }
  0x98   :  { %v208_v16 = vpop.permute.xlu0 %207  }
  0x99   :  { %737 = vst.msk [vmem:[%s1631_s1 + $0x10] sm:$0xff] %vm166_vm3, %v208_v16  }
  0x9a   :  { %760 = vst.msk [vmem:[%s1631_s1 + $0x10] sm:$0xff] %vm253_vm4, %v295_v15  }
  0x9e   :  { %v252_v17 = vpop.permute.xlu1 %251   ;;  %v328_v18 = vpop.permute.xlu2 %327  }
  0x9f   :  { %254 = vst.msk [vmem:[%s1631_s1] sm:$0xff] %vm253_vm4, %v252_v17  }
  0xa0   :  { %v241_v19 = vpop.permute.xlu0 %240  }
  0xa1   :  { %746 = vst.msk [vmem:[%s1631_s1 + $0x38] sm:$0xff] %vm166_vm3, %v241_v19  }
  0xa2   :  { %769 = vst.msk [vmem:[%s1631_s1 + $0x38] sm:$0xff] %vm253_vm4, %v328_v18  }
  0xa6   :  { %v284_v20 = vpop.permute.xlu1 %283   ;;  %v360_v21 = vpop.permute.xlu2 %359  }
  0xa7   :  { %757 = vst.msk [vmem:[%s1631_s1 + $0x28] sm:$0xff] %vm253_vm4, %v284_v20  }
  0xa8   :  { %v273_v22 = vpop.permute.xlu0 %272  }
  0xa9   :  { %754 = vst.msk [vmem:[%s1631_s1 + $0x8] sm:$0xff] %vm253_vm4, %v273_v22  }
  0xaa   :  { %777 = vst.msk [vmem:[%s1631_s1 + $0x8] sm:$0xff] %vm340_vm5, %v360_v21  }
  0xae   :  { %v317_v23 = vpop.permute.xlu1 %316   ;;  %v393_v24 = vpop.permute.xlu2 %392  }
  0xaf   :  { %766 = vst.msk [vmem:[%s1631_s1 + $0x18] sm:$0xff] %vm253_vm4, %v317_v23  }
  0xb0   :  { %v306_v25 = vpop.permute.xlu0 %305  }
  0xb1   :  { %763 = vst.msk [vmem:[%s1631_s1 + $0x30] sm:$0xff] %vm253_vm4, %v306_v25  }
  0xb2   :  { %786 = vst.msk [vmem:[%s1631_s1 + $0x30] sm:$0xff] %vm340_vm5, %v393_v24  }
  0xb6   :  { %v349_v26 = vpop.permute.xlu1 %348   ;;  %v426_v27 = vpop.permute.xlu2 %425  }
  0xb7   :  { %774 = vst.msk [vmem:[%s1631_s1 + $0x20] sm:$0xff] %vm340_vm5, %v349_v26  }
  0xb8   :  { %v339_v28 = vpop.permute.xlu0 %338  }
  0xb9   :  { %341 = vst.msk [vmem:[%s1631_s1] sm:$0xff] %vm340_vm5, %v339_v28  }
  0xba   :  { %428 = vst.msk [vmem:[%s1631_s1] sm:$0xff] %vm427_vm6, %v426_v27  }
  0xbe   :  { %v382_v29 = vpop.permute.xlu1 %381   ;;  %v458_v30 = vpop.permute.xlu2 %457  }
  0xbf   :  { %783 = vst.msk [vmem:[%s1631_s1 + $0x10] sm:$0xff] %vm340_vm5, %v382_v29  }
  0xc0   :  { %v371_v31 = vpop.permute.xlu0 %370  }
  0xc1   :  { %780 = vst.msk [vmem:[%s1631_s1 + $0x28] sm:$0xff] %vm340_vm5, %v371_v31  }
  0xc2   :  { %803 = vst.msk [vmem:[%s1631_s1 + $0x28] sm:$0xff] %vm427_vm6, %v458_v30  }
  0xc6   :  { %v415_v32 = vpop.permute.xlu1 %414   ;;  %v491_v33 = vpop.permute.xlu2 %490  }
  0xc7   :  { %792 = vst.msk [vmem:[%s1631_s1 + $0x38] sm:$0xff] %vm340_vm5, %v415_v32  }
  0xc8   :  { %v404_v34 = vpop.permute.xlu0 %403  }
  0xc9   :  { %789 = vst.msk [vmem:[%s1631_s1 + $0x18] sm:$0xff] %vm340_vm5, %v404_v34  }
  0xca   :  { %812 = vst.msk [vmem:[%s1631_s1 + $0x18] sm:$0xff] %vm427_vm6, %v491_v33  }
  0xce   :  { %v447_v35 = vpop.permute.xlu1 %446   ;;  %v523_v36 = vpop.permute.xlu2 %522  }
  0xcf   :  { %800 = vst.msk [vmem:[%s1631_s1 + $0x8] sm:$0xff] %vm427_vm6, %v447_v35  }
  0xd0   :  { %v436_v37 = vpop.permute.xlu0 %435  }
  0xd1   :  { %797 = vst.msk [vmem:[%s1631_s1 + $0x20] sm:$0xff] %vm427_vm6, %v436_v37  }
  0xd2   :  { %820 = vst.msk [vmem:[%s1631_s1 + $0x20] sm:$0xff] %vm514_vm7, %v523_v36  }
  0xd6   :  { %v480_v38 = vpop.permute.xlu1 %479   ;;  %v556_v39 = vpop.permute.xlu2 %555  }
  0xd7   :  { %809 = vst.msk [vmem:[%s1631_s1 + $0x30] sm:$0xff] %vm427_vm6, %v480_v38  }
  0xd8   :  { %v469_v40 = vpop.permute.xlu0 %468  }
  0xd9   :  { %806 = vst.msk [vmem:[%s1631_s1 + $0x10] sm:$0xff] %vm427_vm6, %v469_v40  }
  0xda   :  { %829 = vst.msk [vmem:[%s1631_s1 + $0x10] sm:$0xff] %vm514_vm7, %v556_v39  }
  0xde   :  { %v513_v41 = vpop.permute.xlu1 %512   ;;  %v589_v42 = vpop.permute.xlu2 %588  }
  0xdf   :  { %515 = vst.msk [vmem:[%s1631_s1] sm:$0xff] %vm514_vm7, %v513_v41  }
  0xe0   :  { %v502_v43 = vpop.permute.xlu0 %501  }
  0xe1   :  { %815 = vst.msk [vmem:[%s1631_s1 + $0x38] sm:$0xff] %vm427_vm6, %v502_v43  }
  0xe2   :  { %838 = vst.msk [vmem:[%s1631_s1 + $0x38] sm:$0xff] %vm514_vm7, %v589_v42  }
  0xe6   :  { %v545_v44 = vpop.permute.xlu1 %544   ;;  %v621_v45 = vpop.permute.xlu2 %620  }
  0xe7   :  { %826 = vst.msk [vmem:[%s1631_s1 + $0x28] sm:$0xff] %vm514_vm7, %v545_v44  }
  0xe8   :  { %v534_v46 = vpop.permute.xlu0 %533  }
  0xe9   :  { %823 = vst.msk [vmem:[%s1631_s1 + $0x8] sm:$0xff] %vm514_vm7, %v534_v46  }
  0xea   :  { %846 = vst.msk [vmem:[%s1631_s1 + $0x8] sm:$0xff] %vm601_vm8, %v621_v45  }
  0xee   :  { %v578_v47 = vpop.permute.xlu1 %577   ;;  %v654_v48 = vpop.permute.xlu2 %653  }
  0xef   :  { %835 = vst.msk [vmem:[%s1631_s1 + $0x18] sm:$0xff] %vm514_vm7, %v578_v47  }
  0xf0   :  { %v567_v49 = vpop.permute.xlu0 %566  }
  0xf1   :  { %832 = vst.msk [vmem:[%s1631_s1 + $0x30] sm:$0xff] %vm514_vm7, %v567_v49  }
  0xf2   :  { %855 = vst.msk [vmem:[%s1631_s1 + $0x30] sm:$0xff] %vm601_vm8, %v654_v48  }
  0xf6   :  { %v610_v50 = vpop.permute.xlu1 %609  }
  0xf7   :  { %843 = vst.msk [vmem:[%s1631_s1 + $0x20] sm:$0xff] %vm601_vm8, %v610_v50  }
  0xf8   :  { %v600_v51 = vpop.permute.xlu0 %599  }
  0xf9   :  { %602 = vst.msk [vmem:[%s1631_s1] sm:$0xff] %vm601_vm8, %v600_v51  }
  0xfe   :  { %v643_v52 = vpop.permute.xlu1 %642  }
  0xff   :  { %852 = vst.msk [vmem:[%s1631_s1 + $0x10] sm:$0xff] %vm601_vm8, %v643_v52  }
 0x100   :  { %v632_v53 = vpop.permute.xlu0 %631  }
 0x101   :  { %849 = vst.msk [vmem:[%s1631_s1 + $0x28] sm:$0xff] %vm601_vm8, %v632_v53  }
 0x106   :  { %v676_v54 = vpop.permute.xlu1 %675  }
 0x107   :  { %861 = vst.msk [vmem:[%s1631_s1 + $0x38] sm:$0xff] %vm601_vm8, %v676_v54  }
 0x108   :  { %v665_v55 = vpop.permute.xlu0 %664  }
 0x109   :  { %858 = vst.msk [vmem:[%s1631_s1 + $0x18] sm:$0xff] %vm601_vm8, %v665_v55  }

// kernel: history_encoder_forward.1
= control target key start
LH: loop header
LB: loop body
LE: loop exit
PB: predicated region body
PF: predicated region fallthrough
CT: control target
= control target key end

     0   :  { %s4601_s0 = inlined_call_operand.vmem [shape: f32[2,32,2], index: 0, kind: input, shape index: {}]   ;;  %s4602_s1 = inlined_call_operand.vmem [shape: f32[2,32,32], index: 1, kind: input, shape index: {}]   ;;  %s4603_s2 = inlined_call_operand.vmem [shape: f32[32,32], index: 2, kind: input, shape index: {}]   ;;  %s4604_s3 = inlined_call_operand.vmem [shape: f32[2,32], index: 3, kind: input, shape index: {}]   ;;  %s4605_s4 = inlined_call_operand.vmem [shape: f32[2,32,96], index: 4, kind: input, shape index: {}]   ;;  %s4606_s5 = inlined_call_operand.vmem [shape: f32[2,96,32], index: 5, kind: input, shape index: {}]   ;;  %s4607_s6 = inlined_call_operand.vmem [shape: f32[2,32,64], index: 6, kind: input, shape index: {}]   ;;  %s4608_s7 = inlined_call_operand.vmem [shape: f32[2,8,128], index: 7, kind: input, shape index: {}]   ;;  %s4609_s8 = inlined_call_operand.hbm [shape: f32[2,32,32], index: 8, kind: output, shape index: {0}]   ;;  %s4610_s9 = inlined_call_operand.hbm [shape: f32[2,4,32], index: 9, kind: output, shape index: {1}]  }
   0x1   :  { %4627 = sst [smem:[#allocation8_spill]] %s4601_s0 }
   0x2   :  { %4628 = sst [smem:[#allocation9_spill]] %s4602_s1 }
   0x3   :  { %4629 = sst [smem:[#allocation10_spill]] %s4603_s2 }
   0x4   :  { %4630 = sst [smem:[#allocation11_spill]] %s4604_s3 }
   0x5   :  { %4631 = sst [smem:[#allocation12_spill]] %s4605_s4 }
   0x6   :  { %15 = vsyncpa [#allocation3], 0 }
   0x7   :  { %17 = vsyncpa [#allocation3 + $0x1], 0 }
   0x8   :  { %18 = vsyncpa [#allocation5], 0 }
   0x9   :  { %20 = vsyncpa [#allocation5 + $0x1], 0  ;;  %s3500_s30 = smov 0   ;;  %s3502_s10 = smov 0  }
   0xa   :  { %s3504_s11 = smov 0   ;;  %s3506_s12 = smov 0  }
   0xb LB: > { %s3521_s13 = sadd.s32 4294967295, %s3431_s12   ;;  %s2905_s14 = sadd.s32 4294967294, %s3431_s12   ;;  %s3431_s12 = sphi %s3506_s12, %s4650_s12   ;;  %s3427_s11 = sphi %s3504_s11, %s4649_s11   ;;  %s3423_s10 = sphi %s3502_s10, %s4648_s10   ;;  %s3419_s30 = sphi %s3500_s30, %s4647_s30  }
   0xc   : > { %s3525_s15 = sadd.s32 1, %s3431_s12   ;;  %s211_s16 = sadd.s32 1, %s3427_s11 }
   0xd   : > { %s208_s17 = ssub.s32 %s3431_s12, %s3525_s15  ;;  %p221_p0 = scmp.ne.s32.totalorder %s3427_s11, %s3423_s10 }
   0xe   : > { %p209_p1 = scmp.eq.s32.totalorder %s208_s17, 0  ;;  %p222_p2 = scmp.eq.s32.totalorder %s3521_s13, 1 }
   0xf   : > { %p227_p3 = scmp.ne.s32.totalorder %s3423_s10, %s3419_s30  ;;  %p228_p4 = scmp.eq.s32.totalorder %s2905_s14, 1 }
  0x10   : > { %s3536_s18 = scalar_select %p209_p1, %s3427_s11, %s211_s16  }
  0x11   : > { %p3538_p5 = por %p222_p2, %p221_p0  ;;  %p3542_p6 = por %p228_p4, %p227_p3 }
  0x12   : > { %p2908_p7 = scmp.ge.s32.totalorder %s3431_s12, 1  ;;  %p306_p8 = scmp.lt.s32.totalorder %s3431_s12, 3 }
  0x14   : > { %p307_p9 = pnand %p2908_p7, %p306_p8 }
  0x15   : > { %p352_p10 = scmp.lt.s32.totalorder (!%p307_p9), %s3521_s13, 1  ;;  %s4634_s0 = sld [smem:[#allocation8_spill]] (!%p307_p9) }
  0x16   : > { %310 = sbr.rel (%p307_p9) target bundleno = 4546 (0x11c2), region = 52  ;;  %s4635_s4 = sld [smem:[#allocation12_spill]] (!%p307_p9) }
  0x17   : > { %s4636_s3 = sld [smem:[#allocation11_spill]] (!%p307_p9)  ;;  %s3435_s26 = smov (!%p307_p9), 96  }
  0x18   : > { %s4637_s2 = sld [smem:[#allocation10_spill]] (!%p307_p9)  ;;  %s4623_s27 = smov (!%p307_p9), 64  }
  0x19   : > { %s3437_s28 = smov (!%p307_p9), 88   ;;  %s3438_s29 = smov (!%p307_p9), 120  }
  0x1a   : > { %s4625_s14 = smov (!%p307_p9), 56   ;;  %s4638_s1 = sld [smem:[#allocation9_spill]] (!%p307_p9) }
  0x1b   : > { %v3433_v0 = vmov 0   ;;  %s3550_s21 = scalar_select %p352_p10, %s3521_s13, 1  ;;  %v3434_v1 = vmov 1   ;;  %vm447_vm0 = vcmask 261120   ;;  %v3604_v41 = vld [vmem:[%s4608_s7] sm:$0xff]  ;;  %vm501_vm1 = vcmask 64512  }
  0x1c   : > { %3167 = vset.pattern.permute.xlu1 %v3433_v0  ;;  %3165 = vset.pattern.permute.xlu0 %v3433_v0  ;;  %v445_v6 = vld [vmem:[%s4635_s4 + $0x18] sm:$0xff]  ;;  %v444_v7 = vld [vmem:[%s4635_s4 + $0x10] sm:$0xff]  ;;  %v443_v8 = vld [vmem:[%s4635_s4 + $0x8] sm:$0xff]  ;;  %v446_v42 = vperm.slane %v3604_v41, 0  ;;  %s4619_s23 = smov 104   ;;  %s4621_s24 = smov 112  }
  0x1d   : > { %3168 = vset.pattern.permute.xlu2 %v3434_v1  ;;  %s3096_s22 = sshll.u32 %s3550_s21, 5  ;;  %472 = vmatpush.msra.mxu0 %v445_v6  ;;  %v442_v9 = vld [vmem:[%s4635_s4] sm:$0xff]  ;;  %v431_v56 = vld [vmem:[%s4606_s5 + $0x8] sm:$0xff]  ;;  %s4611_s21 = smov 72   ;;  %vm1427_vm15 = vcmask 523264  }
  0x1e   : > { %s356_s25 = scalar_lea.vmem %s4634_s0, %s3096_s22  ;;  %3099 = vmatpush.msra.mxu1 %v445_v6  ;;  %v370_v10 = vld [vmem:[%s4636_s3] sm:$0x3]  ;;  %v373_v22 = vld [vmem:[%s4637_s2 + $0x10] sm:$0xff]  ;;  %v374_v30 = vld [vmem:[%s4637_s2 + $0x18] sm:$0xff]  ;;  %s4617_s16 = smov 40  }
  0x1f   : > { %v364_v2 = vld [vmem:[%s356_s25 + $0x10] sm:$0xff]  ;;  %v362_v3 = vld [vmem:[%s356_s25] sm:$0xff]  ;;  %v365_v4 = vld [vmem:[%s356_s25 + $0x18] sm:$0xff]  ;;  %473 = vmatpush.msra.mxu0 %v444_v7  ;;  %v420_v12 = vperm.slane %v370_v10, 1  ;;  %v395_v13 = vperm.slane %v370_v10, 0 }
  0x20   : > { %387 = vperm.xlu0 %3165, %v364_v2   ;;  %377 = vperm.xlu1 %3167, %v362_v3   ;;  %v363_v5 = vld [vmem:[%s356_s25 + $0x8] sm:$0xff]  ;;  %v371_v15 = vld [vmem:[%s4637_s2] sm:$0xff]  ;;  %s3694_s17 = scalar_lea.vmem %s4638_s1, %s3096_s22  ;;  %s4613_s22 = smov 80  }
  0x21   : > { %405 = vperm.xlu2 %3168, %v362_v3   ;;  %3100 = vmatpush.msra.mxu1 %v444_v7  ;;  %v372_v34 = vld [vmem:[%s4637_s2 + $0x8] sm:$0xff]  ;;  %v430_v51 = vld [vmem:[%s4606_s5] sm:$0xff]  ;;  %s4615_s25 = smov 48   ;;  %s3357_s1 = scalar_lea.hbm %s4609_s8, 64 }
  0x22   : > { %474 = vmatpush.msra.mxu0 %v443_v8  ;;  %622 = vmatpush.msra.mxu2 %v430_v51 }
  0x23   : > { %3101 = vmatpush.msra.mxu1 %v443_v8  ;;  %3103 = vmatpush.msra.mxu3 %v430_v51 }
  0x24   : > { %475 = vmatpush.msra.mxu0 %v442_v9 }
  0x25   : > { %3102 = vmatpush.msra.mxu1 %v442_v9  ;;  %v3697_v9 = vld [vmem:[%s3694_s17] sm:$0xff] }
  0x26   : > { %818 = vmatpush.msrb.mxu0 %v431_v56 }
  0x28   : > { %3166 = vset.pattern.permute.xlu0 %v3434_v1  ;;  %392 = vperm.xlu1 %3167, %v365_v4  }
  0x29   : > { %413 = vperm.xlu0 %3166, %v364_v2   ;;  %417 = vperm.xlu2 %3168, %v365_v4  }
  0x30   : > { %382 = vperm.xlu1 %3167, %v363_v5  }
  0x31   : > { %409 = vperm.xlu2 %3168, %v363_v5  }
  0x7b   : > { %v406_v11 = vpop.permute.xlu2 %405 }
  0x7c   : > { %v421_v17 = vmul.f32 %v420_v12, %v406_v11 }
  0x83   : > { %v418_v23 = vpop.permute.xlu2 %417 }
  0x84   : > { %v424_v31 = vmul.f32 %v420_v12, %v418_v23 }
  0x8b   : > { %v410_v33 = vpop.permute.xlu2 %409 }
  0x8c   : > { %v422_v37 = vmul.f32 %v420_v12, %v410_v33 }
  0x92   : > { %v388_v14 = vpop.permute.xlu0 %387  ;;  %v378_v16 = vpop.permute.xlu1 %377 }
  0x93   : > { %v396_v18 = vmul.f32 %v395_v13, %v378_v16  ;;  %v398_v20 = vmul.f32 %v395_v13, %v388_v14  ;;  %v3702_v14 = vld [vmem:[%s3694_s17 + $0x8] sm:$0xff] }
  0x95   : > { %v400_v19 = vadd.f32 %v396_v18, %v371_v15  ;;  %v402_v26 = vadd.f32 %v398_v20, %v373_v22 }
  0x97   : > { %v3576_v21 = vadd.f32 %v421_v17, %v400_v19  ;;  %v3710_v19 = vld [vmem:[%s3694_s17 + $0x10] sm:$0xff] }
  0x99   : > { %2915 = vmatmul.msk.f32.vlgmr.msra.gmra.mxu0 %vm447_vm0, %v3576_v21 }
  0x9a   : > { %v393_v24 = vpop.permute.xlu1 %392 }
  0x9b   : > { %v414_v25 = vpop.permute.xlu0 %413  ;;  %v399_v28 = vmul.f32 %v395_v13, %v393_v24 }
  0x9c   : > { %v423_v27 = vmul.f32 %v420_v12, %v414_v25 }
  0x9d   : > { %v403_v32 = vadd.f32 %v399_v28, %v374_v30 }
  0x9e   : > { %v3583_v29 = vadd.f32 %v423_v27, %v402_v26  ;;  %v3715_v26 = vld [vmem:[%s3694_s17 + $0x18] sm:$0xff] }
  0x9f   : > { %v3593_v39 = vadd.f32 %v424_v31, %v403_v32 }
  0xa0   : > { %2917 = vmatmul.msk.f32.vlgmr.msra.gmra.mxu1 %vm447_vm0, %v3583_v29 }
  0xa2   : > { %v383_v35 = vpop.permute.xlu1 %382 }
  0xa3   : > { %v397_v36 = vmul.f32 %v395_v13, %v383_v35 }
  0xa5   : > { %v401_v38 = vadd.f32 %v397_v36, %v372_v34 }
  0xa7   : > { %v3597_v40 = vadd.f32 %v422_v37, %v401_v38 }
  0xa8   : > { %2918 = vmatmul.msk.f32.gmra.mxu1 %vm447_vm0, %v3593_v39 }
  0xa9   : > { %2916 = vmatmul.msk.f32.gmra.mxu0 %vm447_vm0, %v3597_v40 }
 0x116   : > { %v477_v43 = vpop.f32.mrf.mxu0 }
 0x117   : > { %v3611_v47 = vadd.f32 %v477_v43, %v446_v42 }
 0x11d   : > { %v483_v44 = vpop.f32.mrf.mxu1 }
 0x11e   : > { %v3607_v45 = vadd.f32 %v483_v44, %v446_v42 }
 0x120   : > { %497 = vrot.lane.b32.xlu1 %v3607_v45, %s3435_s26 }
 0x125   : > { %v486_v46 = vpop.f32.mrf.mxu1 }
 0x126   : > { %v3613_v48 = vadd.f32 %v486_v46, %v446_v42  ;;  %v480_v49 = vpop.f32.mrf.mxu0 }
 0x127   : > { %v3615_v50 = vadd.f32 %v480_v49, %v446_v42 }
 0x128   : > { %591 = vrot.lane.b32.xlu1 %v3611_v47, %s4623_s27  ;;  %499 = vrot.lane.b32.xlu0 %v3613_v48, %s3435_s26 }
 0x129   : > { %495 = vrot.lane.b32.xlu2 %v3615_v50, %s3435_s26 }
 0x130   : > { %493 = vrot.lane.b32.xlu0 %v3611_v47, %s3435_s26  ;;  %593 = vrot.lane.b32.xlu1 %v3615_v50, %s4623_s27 }
 0x131   : > { %696 = vrot.lane.b32.xlu2 %v3613_v48, %s3437_s28 }
 0x138   : > { %694 = vrot.lane.b32.xlu0 %v3607_v45, %s3437_s28  ;;  %682 = vrot.lane.b32.xlu1 %v3611_v47, %s3438_s29 }
 0x139   : > { %692 = vrot.lane.b32.xlu2 %v3615_v50, %s3437_s28 }
 0x140   : > { %690 = vrot.lane.b32.xlu0 %v3611_v47, %s3437_s28  ;;  %688 = vrot.lane.b32.xlu1 %v3613_v48, %s3438_s29 }
 0x141   : > { %684 = vrot.lane.b32.xlu2 %v3615_v50, %s3438_s29 }
 0x148   : > { %686 = vrot.lane.b32.xlu0 %v3607_v45, %s3438_s29  ;;  %787 = vrot.lane.b32.xlu1 %v3611_v47, %s4625_s14 }
 0x149   : > { %595 = vrot.lane.b32.xlu2 %v3607_v45, %s4623_s27 }
 0x150   : > { %597 = vrot.lane.b32.xlu0 %v3613_v48, %s4623_s27  ;;  %793 = vrot.lane.b32.xlu1 %v3613_v48, %s4625_s14  ;;  %s4643_s27 = smov 72  }
 0x151   : > { %789 = vrot.lane.b32.xlu2 %v3615_v50, %s4625_s14 }
 0x158   : > { %791 = vrot.lane.b32.xlu0 %v3607_v45, %s4625_s14  ;;  %s4644_s14 = smov 104  }
 0x183   : > { %v496_v52 = vpop.permute.xlu2 %495 }
 0x18b   : > { %v697_v53 = vpop.permute.xlu2 %696 }
 0x18c   : > { %2935 = vmatpush.xpose.msk.msrb.mxu2 %vm501_vm1, %v697_v53 }
 0x192   : > { %v498_v54 = vpop.permute.xlu1 %497 }
 0x193   : > { %v693_v55 = vpop.permute.xlu2 %692 }
 0x19a   : > { %v500_v57 = vpop.permute.xlu0 %499  ;;  %v592_v58 = vpop.permute.xlu1 %591 }
 0x19b   : > { %2919 = vmatpush.xpose.msk.msrb.mxu1 %vm501_vm1, %v500_v57  ;;  %2927 = vmatmul.msk.f32.vlgmr.msra.gmra.mxu2 %vm501_vm1, %v592_v58  ;;  %v685_v59 = vpop.permute.xlu2 %684 }
 0x19f   : > { %2920 = vmatpush.xpose.msk.msrb.mxu1 %vm501_vm1, %v498_v54 }
 0x1a2   : > { %v494_v60 = vpop.permute.xlu0 %493  ;;  %v594_v61 = vpop.permute.xlu1 %593 }
 0x1a3   : > { %2921 = vmatpush.xpose.msk.msrb.mxu1 %vm501_vm1, %v496_v52  ;;  %2928 = vmatmul.msk.f32.gmra.mxu2 %vm501_vm1, %v594_v61  ;;  %v596_v62 = vpop.permute.xlu2 %595 }
 0x1a4   : > { %2929 = vmatmul.msk.f32.vlgmr.msra.gmra.mxu3 %vm501_vm1, %v596_v62 }
 0x1a7   : > { %2922 = vmatpush.xpose.msk.msrb.mxu1 %vm501_vm1, %v494_v60 }
 0x1aa   : > { %v695_v63 = vpop.permute.xlu0 %694  ;;  %2923 = vmatmul.msk.f32.vlgmr.msrb.gmra.mxu1 %vm501_vm1, %v3611_v47  ;;  %v683_v0 = vpop.permute.xlu1 %682 }
 0x1ab   : > { %2936 = vmatpush.xpose.msk.msrb.mxu2 %vm501_vm1, %v695_v63  ;;  %v790_v5 = vpop.permute.xlu2 %789 }
 0x1af   : > { %2937 = vmatpush.xpose.msk.msrb.mxu2 %vm501_vm1, %v693_v55 }
 0x1b2   : > { %v691_v1 = vpop.permute.xlu0 %690  ;;  %2924 = vmatmul.msk.f32.gmra.mxu1 %vm501_vm1, %v3615_v50  ;;  %v689_v2 = vpop.permute.xlu1 %688 }
 0x1b3   : > { %2938 = vmatpush.xpose.msk.msrb.mxu2 %vm501_vm1, %v691_v1 }
 0x1b6   : > { %2939 = vmatmul.msk.f32.vlgmr.msrb.gmra.mxu2 %vm501_vm1, %v683_v0 }
 0x1ba   : > { %v687_v3 = vpop.permute.xlu0 %686  ;;  %2925 = vmatmul.msk.f32.gmra.mxu1 %vm501_vm1, %v3607_v45  ;;  %v788_v4 = vpop.permute.xlu1 %787 }
 0x1bb   : > { %2943 = vmatmul.msk.f32.vlgmr.msrb.gmra.mxu0 %vm501_vm1, %v788_v4 }
 0x1be   : > { %2940 = vmatmul.msk.f32.gmra.mxu2 %vm501_vm1, %v685_v59 }
 0x1c2   : > { %v598_v6 = vpop.permute.xlu0 %597  ;;  %2926 = vmatmul.msk.f32.gmra.mxu1 %vm501_vm1, %v3613_v48  ;;  %v794_v8 = vpop.permute.xlu1 %793 }
 0x1c3   : > { %2930 = vmatmul.msk.f32.gmra.mxu3 %vm501_vm1, %v598_v6  ;;  %2944 = vmatmul.msk.f32.gmra.mxu0 %vm501_vm1, %v790_v5 }
 0x1c6   : > { %2941 = vmatmul.msk.f32.gmra.mxu2 %vm501_vm1, %v687_v3 }
 0x1ca   : > { %v792_v7 = vpop.permute.xlu0 %791 }
 0x1cb   : > { %2945 = vmatmul.msk.f32.gmra.mxu0 %vm501_vm1, %v792_v7 }
 0x1ce   : > { %2942 = vmatmul.msk.f32.gmra.mxu2 %vm501_vm1, %v689_v2 }
 0x1d3   : > { %2946 = vmatmul.msk.f32.gmra.mxu0 %vm501_vm1, %v794_v8 }
 0x21e   : > { %v624_v10 = vpop.f32.mrf.mxu2 }
 0x226   : > { %v627_v17 = vpop.f32.mrf.mxu2 }
 0x227   : > { %v535_v11 = vpop.f32.mrf.mxu1  ;;  %v630_v27 = vpop.f32.mrf.mxu3 }
 0x228   : > { %v536_v12 = vadd.f32 %v535_v11, %v3697_v9 }
 0x22a   : > { %v547_v13 = vsel %vm447_vm0, %v536_v12, -inf }
 0x22b   : > { %548 = vmax.xlane.f32.xlu2 %v547_v13 }
 0x22f   : > { %v538_v15 = vpop.f32.mrf.mxu1 }
 0x230   : > { %v3705_v16 = vadd.f32 %v538_v15, %v3702_v14 }
 0x232   : > { %v550_v18 = vsel %vm447_vm0, %v3705_v16, -inf }
 0x233   : > { %551 = vmax.xlane.f32.xlu0 %v550_v18 }
 0x237   : > { %v541_v20 = vpop.f32.mrf.mxu1 }
 0x238   : > { %v542_v22 = vadd.f32 %v541_v20, %v3710_v19  ;;  %v820_v23 = vpop.f32.mrf.mxu0 }
 0x239   : > { %v731_v24 = vpop.f32.mrf.mxu2 }
 0x23a   : > { %v553_v25 = vsel %vm447_vm0, %v542_v22, -inf  ;;  %v732_v36 = vadd.f32 %v731_v24, %v3697_v9 }
 0x23b   : > { %554 = vmax.xlane.f32.xlu1 %v553_v25 }
 0x23c   : > { %v743_v44 = vsel %vm447_vm0, %v732_v36, -inf }
 0x23f   : > { %v544_v28 = vpop.f32.mrf.mxu1 }
 0x240   : > { %v3718_v30 = vadd.f32 %v544_v28, %v3715_v26  ;;  %v823_v31 = vpop.f32.mrf.mxu0 }
 0x241   : > { %v734_v32 = vpop.f32.mrf.mxu2 }
 0x242   : > { %v735_v33 = vadd.f32 %v734_v32, %v3702_v14  ;;  %v556_v34 = vsel %vm447_vm0, %v3718_v30, -inf }
 0x243   : > { %557 = vmax.xlane.f32.xlu2 %v556_v34 }
 0x244   : > { %v746_v35 = vsel %vm447_vm0, %v735_v33, -inf }
 0x245   : > { %747 = vmax.xlane.f32.xlu0 %v746_v35 }
 0x246   : > { %v633_v37 = vpop.f32.mrf.mxu3 }
 0x247   : > { %660 = vmatpush.msrb.mxu3 %v633_v37 }
 0x248   : > { %v826_v38 = vpop.f32.mrf.mxu0 }
 0x249   : > { %661 = vmatpush.msrb.mxu3 %v630_v27  ;;  %v737_v42 = vpop.f32.mrf.mxu2 }
 0x24a   : > { %v738_v43 = vadd.f32 %v737_v42, %v3710_v19 }
 0x24b   : > { %662 = vmatpush.msrb.mxu3 %v627_v17  ;;  %744 = vmax.xlane.f32.xlu2 %v743_v44 }
 0x24c   : > { %v749_v46 = vsel %vm447_vm0, %v738_v43, -inf }
 0x24d   : > { %663 = vmatpush.msrb.mxu3 %v624_v10  ;;  %750 = vmax.xlane.f32.xlu1 %v749_v46 }
 0x250   : > { %v829_v49 = vpop.f32.mrf.mxu0 }
 0x251   : > { %v740_v51 = vpop.f32.mrf.mxu2  ;;  %856 = vmatpush.msra.mxu3 %v829_v49 }
 0x252   : > { %v3729_v52 = vadd.f32 %v740_v51, %v3715_v26  ;;  %v432_v51 = vld [vmem:[%s4606_s5 + $0x10] sm:$0xff] }
 0x253   : > { %857 = vmatpush.msra.mxu3 %v826_v38  ;;  %1013 = vmatpush.msra.mxu2 %v432_v51 }
 0x254   : > { %v752_v53 = vsel %vm447_vm0, %v3729_v52, -inf }
 0x255   : > { %753 = vmax.xlane.f32.xlu0 %v752_v53  ;;  %858 = vmatpush.msra.mxu3 %v823_v31 }
 0x257   : > { %859 = vmatpush.msra.mxu3 %v820_v23 }
 0x269   : > { %1084 = vrot.lane.b32.xlu0 %v3607_v45, %s4611_s21 }
 0x29e   : > { %v549_v54 = vpop.xlane.xlu2 %548 }
 0x29f   : > { %v559_v55 = vsub.f32 %v536_v12, %v549_v54 }
 0x2a1   : > { %v563_v56 = vmul.f32 1.442695, %v559_v55 }
 0x2a3   : > { %3169 = vpow2.f32 %v563_v56 }
 0x2a6   : > { %v552_v61 = vpop.xlane.xlu0 %551 }
 0x2a7   : > { %v560_v8 = vsub.f32 %v3705_v16, %v552_v61 }
 0x2a9   : > { %v3735_v57 = vpop.eup %3169  ;;  %v565_v18 = vmul.f32 1.442695, %v560_v8 }
 0x2aa   : > { %v571_v58 = vsel %vm447_vm0, %v3735_v57, 0.0 }
 0x2ab   : > { %572 = vadd.xlane.f32.xlu2 %v571_v58 }
 0x2ae   : > { %v555_v59 = vpop.xlane.xlu1 %554 }
 0x2af   : > { %v561_v60 = vsub.f32 %v542_v22, %v555_v59 }
 0x2b1   : > { %v567_v62 = vmul.f32 1.442695, %v561_v60 }
 0x2b3   : > { %3171 = vpow2.f32 %v567_v62 }
 0x2b6   : > { %v558_v63 = vpop.xlane.xlu2 %557 }
 0x2b7   : > { %v562_v13 = vsub.f32 %v3718_v30, %v558_v63 }
 0x2b8   : > { %v748_v0 = vpop.xlane.xlu0 %747 }
 0x2b9   : > { %v3739_v1 = vpop.eup %3171  ;;  %v756_v2 = vsub.f32 %v735_v33, %v748_v0  ;;  %v569_v20 = vmul.f32 1.442695, %v562_v13 }
 0x2ba   : > { %v577_v3 = vsel %vm447_vm0, %v3739_v1, 0.0 }
 0x2bb   : > { %v761_v4 = vmul.f32 1.442695, %v756_v2  ;;  %578 = vadd.xlane.f32.xlu2 %v577_v3 }
 0x2bd   : > { %3173 = vpow2.f32 %v761_v4 }
 0x2be   : > { %v745_v5 = vpop.xlane.xlu2 %744 }
 0x2bf   : > { %v755_v6 = vsub.f32 %v732_v36, %v745_v5 }
 0x2c0   : > { %v751_v7 = vpop.xlane.xlu1 %750 }
 0x2c1   : > { %v759_v10 = vmul.f32 1.442695, %v755_v6  ;;  %v757_v11 = vsub.f32 %v738_v43, %v751_v7 }
 0x2c3   : > { %v3744_v12 = vpop.eup %3173  ;;  %3175 = vpow2.f32 %v759_v10  ;;  %v763_v15 = vmul.f32 1.442695, %v757_v11 }
 0x2c4   : > { %v770_v17 = vsel %vm447_vm0, %v3744_v12, 0.0 }
 0x2c5   : > { %3177 = vpow2.f32 %v763_v15  ;;  %771 = vadd.xlane.f32.xlu2 %v770_v17 }
 0x2c6   : > { %3179 = vpow2.f32 %v565_v18 }
 0x2c7   : > { %3181 = vpow2.f32 %v569_v20  ;;  %v433_v20 = vld [vmem:[%s4606_s5 + $0x18] sm:$0xff] }
 0x2c8   : > { %v754_v31 = vpop.xlane.xlu0 %753 }
 0x2c9   : > { %v3749_v22 = vpop.eup %3175  ;;  %v758_v32 = vsub.f32 %v3729_v52, %v754_v31 }
 0x2ca   : > { %v767_v16 = vsel %vm447_vm0, %v3749_v22, 0.0 }
 0x2cb   : > { %v3753_v23 = vpop.eup %3177  ;;  %768 = vadd.xlane.f32.xlu1 %v767_v16  ;;  %v765_v33 = vmul.f32 1.442695, %v758_v32 }
 0x2cc   : > { %v773_v24 = vsel %vm447_vm0, %v3753_v23, 0.0  ;;  %v3180_v25 = vpop.eup %3179 }
 0x2cd   : > { %774 = vadd.xlane.f32.xlu0 %v773_v24  ;;  %v3757_v27 = vpop.eup %3181  ;;  %v574_v28 = vsel %vm447_vm0, %v3180_v25, 0.0  ;;  %3183 = vpow2.f32 %v765_v33 }
 0x2ce   : > { %v580_v30 = vsel %vm447_vm0, %v3757_v27, 0.0 }
 0x2d3   : > { %575 = vadd.xlane.f32.xlu1 %v574_v28  ;;  %v3799_v35 = vpop.eup %3183 }
 0x2d4   : > { %v776_v37 = vsel %vm447_vm0, %v3799_v35, 0.0 }
 0x2d5   : > { %581 = vadd.xlane.f32.xlu0 %v580_v30 }
 0x2db   : > { %v1085_v44 = vpop.permute.xlu0 %1084 }
 0x2dd   : > { %1086 = vrot.lane.b32.xlu2 %v3613_v48, %s4611_s21 }
 0x2e5   : > { %1080 = vrot.lane.b32.xlu2 %v3611_v47, %s4611_s21 }
 0x2e9   : > { %891 = vrot.lane.b32.xlu0 %v3613_v48, %s4613_s22 }
 0x2ec   : > { %1082 = vrot.lane.b32.xlu1 %v3615_v50, %s4611_s21 }
 0x2ed   : > { %887 = vrot.lane.b32.xlu2 %v3615_v50, %s4613_s22 }
 0x2f1   : > { %1072 = vrot.lane.b32.xlu0 %v3611_v47, %s4619_s23 }
 0x2f4   : > { %889 = vrot.lane.b32.xlu1 %v3607_v45, %s4613_s22 }
 0x2f5   : > { %877 = vrot.lane.b32.xlu2 %v3611_v47, %s4621_s24 }
 0x2f9   : > { %1074 = vrot.lane.b32.xlu0 %v3615_v50, %s4619_s23 }
 0x2fc   : > { %885 = vrot.lane.b32.xlu1 %v3611_v47, %s4613_s22  ;;  %s4642_s22 = smov 112  }
 0x2fd   : > { %1078 = vrot.lane.b32.xlu2 %v3613_v48, %s4619_s23 }
 0x301   : > { %879 = vrot.lane.b32.xlu0 %v3615_v50, %s4621_s24 }
 0x305   : > { %982 = vrot.lane.b32.xlu2 %v3611_v47, %s4615_s25 }
 0x309   : > { %883 = vrot.lane.b32.xlu0 %v3613_v48, %s4621_s24 }
 0x30d   : > { %1179 = vrot.lane.b32.xlu2 %v3615_v50, %s4617_s16 }
 0x311   : > { %984 = vrot.lane.b32.xlu0 %v3615_v50, %s4615_s25 }
 0x315   : > { %988 = vrot.lane.b32.xlu2 %v3613_v48, %s4615_s25 }
 0x319   : > { %1181 = vrot.lane.b32.xlu0 %v3607_v45, %s4617_s16 }
 0x31e   : > { %v573_v34 = vpop.xlane.xlu2 %572 }
 0x31f   : > { %3185 = vrcp.f32 %v573_v34 }
 0x325   : > { %v3186_v36 = vpop.eup %3185 }
 0x326   : > { %777 = vadd.xlane.f32.xlu1 %v776_v37  ;;  %v587_v50 = vmul.f32 %v3186_v36, %v3735_v57 }
 0x328   : > { %2931 = vmatmul.msk.f32.vlgmr.msrb.gmra.mxu3 %vm447_vm0, %v587_v50 }
 0x32e   : > { %v579_v38 = vpop.xlane.xlu2 %578 }
 0x338   : > { %v772_v42 = vpop.xlane.xlu2 %771 }
 0x33e   : > { %v769_v43 = vpop.xlane.xlu1 %768 }
 0x33f   : > { %1076 = vrot.lane.b32.xlu1 %v3607_v45, %s4619_s23  ;;  %s4645_s23 = smov 40  }
 0x340   : > { %v1087_v46 = vpop.permute.xlu2 %1086  ;;  %v775_v52 = vpop.xlane.xlu0 %774 }
 0x341   : > { %2967 = vmatpush.xpose.msk.msrb.mxu3 %vm501_vm1, %v1087_v46 }
 0x345   : > { %2968 = vmatpush.xpose.msk.msrb.mxu3 %vm501_vm1, %v1085_v44 }
 0x346   : > { %v576_v49 = vpop.xlane.xlu1 %575 }
 0x347   : > { %3187 = vrcp.f32 %v576_v49  ;;  %881 = vrot.lane.b32.xlu1 %v3607_v45, %s4621_s24  ;;  %s4646_s24 = smov 48  }
 0x348   : > { %v1081_v53 = vpop.permute.xlu2 %1080  ;;  %3189 = vrcp.f32 %v579_v38  ;;  %v582_v57 = vpop.xlane.xlu0 %581 }
 0x349   : > { %3191 = vrcp.f32 %v582_v57 }
 0x34a   : > { %3193 = vrcp.f32 %v769_v43 }
 0x34b   : > { %3195 = vrcp.f32 %v772_v42 }
 0x34c   : > { %3197 = vrcp.f32 %v775_v52 }
 0x34d   : > { %v3188_v54 = vpop.eup %3187 }
 0x34e   : > { %v588_v55 = vmul.f32 %v3188_v54, %v3180_v25  ;;  %v3190_v58 = vpop.eup %3189 }
 0x34f   : > { %1177 = vrot.lane.b32.xlu1 %v3611_v47, %s4617_s16  ;;  %v589_v59 = vmul.f32 %v3190_v58, %v3739_v1  ;;  %v3192_v61 = vpop.eup %3191 }
 0x350   : > { %v888_v56 = vpop.permute.xlu2 %887  ;;  %2932 = vmatmul.msk.f32.gmra.mxu3 %vm447_vm0, %v588_v55  ;;  %v590_v63 = vmul.f32 %v3192_v61, %v3757_v27 }
 0x357   : > { %986 = vrot.lane.b32.xlu1 %v3607_v45, %s4615_s25  ;;  %v3194_v45 = vpop.eup %3193  ;;  %s4639_s25 = smov 56  }
 0x358   : > { %v878_v60 = vpop.permute.xlu2 %877  ;;  %2933 = vmatmul.msk.f32.gmra.mxu3 %vm447_vm0, %v589_v59  ;;  %v783_v2 = vmul.f32 %v3194_v45, %v3749_v22 }
 0x35b   : > { %v892_v62 = vpop.permute.xlu0 %891 }
 0x35c   : > { %2951 = vmatpush.xpose.msk.msra.mxu1 %vm501_vm1, %v892_v62 }
 0x35e   : > { %v1083_v47 = vpop.permute.xlu1 %1082 }
 0x35f   : > { %1183 = vrot.lane.b32.xlu1 %v3613_v48, %s4617_s16  ;;  %2969 = vmatpush.xpose.msk.msrb.mxu3 %vm501_vm1, %v1083_v47  ;;  %v3196_v48 = vpop.eup %3195 }
 0x360   : > { %v1079_v0 = vpop.permute.xlu2 %1078  ;;  %2934 = vmatmul.msk.f32.gmra.mxu3 %vm447_vm0, %v590_v63  ;;  %v784_v7 = vmul.f32 %v3196_v48, %v3744_v12  ;;  %v3198_v8 = vpop.eup %3197 }
 0x361   : > { %v785_v11 = vmul.f32 %v3198_v8, %v3753_v23 }
 0x363   : > { %v1073_v1 = vpop.permute.xlu0 %1072  ;;  %2970 = vmatpush.xpose.msk.msrb.mxu3 %vm501_vm1, %v1081_v53 }
 0x366   : > { %v890_v3 = vpop.permute.xlu1 %889 }
 0x367   : > { %2952 = vmatpush.xpose.msk.msra.mxu1 %vm501_vm1, %v890_v3 }
 0x368   : > { %v983_v4 = vpop.permute.xlu2 %982  ;;  %2947 = vmatmul.msk.f32.vlgmr.msra.gmra.mxu3 %vm447_vm0, %v783_v2 }
 0x369   : > { %2959 = vmatmul.msk.f32.vlgmr.msra.gmra.mxu2 %vm501_vm1, %v983_v4 }
 0x36b   : > { %v1075_v5 = vpop.permute.xlu0 %1074  ;;  %2953 = vmatpush.xpose.msk.msra.mxu1 %vm501_vm1, %v888_v56 }
 0x36e   : > { %v886_v6 = vpop.permute.xlu1 %885 }
 0x36f   : > { %2954 = vmatpush.xpose.msk.msra.mxu1 %vm501_vm1, %v886_v6 }
 0x370   : > { %2948 = vmatmul.msk.f32.gmra.mxu3 %vm447_vm0, %v784_v7  ;;  %v1180_v24 = vpop.permute.xlu2 %1179 }
 0x372   : > { %2955 = vmatmul.msk.f32.vlgmr.msra.gmra.mxu1 %vm501_vm1, %v878_v60 }
 0x373   : > { %v880_v10 = vpop.permute.xlu0 %879  ;;  %1208 = vmatpush.msrb.mxu1 %v433_v20 }
 0x378   : > { %2949 = vmatmul.msk.f32.gmra.mxu3 %vm447_vm0, %v785_v11  ;;  %v989_v27 = vpop.permute.xlu2 %988 }
 0x37a   : > { %2956 = vmatmul.msk.f32.gmra.mxu1 %vm501_vm1, %v880_v10 }
 0x37b   : > { %v884_v13 = vpop.permute.xlu0 %883 }
 0x383   : > { %v985_v15 = vpop.permute.xlu0 %984 }
 0x384   : > { %2960 = vmatmul.msk.f32.gmra.mxu2 %vm501_vm1, %v985_v15 }
 0x38b   : > { %v1182_v28 = vpop.permute.xlu0 %1181 }
 0x399   : > { %v778_v17 = vpop.xlane.xlu1 %777 }
 0x39a   : > { %3199 = vrcp.f32 %v778_v17 }
 0x3a0   : > { %v3200_v12 = vpop.eup %3199 }
 0x3a1   : > { %v786_v18 = vmul.f32 %v3200_v12, %v3799_v35 }
 0x3a3   : > { %2950 = vmatmul.msk.f32.gmra.mxu3 %vm447_vm0, %v786_v18 }
 0x3ab   : > { %2971 = vmatmul.msk.f32.vlgmr.msrb.gmra.mxu3 %vm501_vm1, %v1073_v1  ;;  %v3858_v31 = vpop.f32.mrf.mxu3 }
 0x3b1   : > { %v1077_v22 = vpop.permute.xlu1 %1076 }
 0x3b3   : > { %2972 = vmatmul.msk.f32.gmra.mxu3 %vm501_vm1, %v1075_v5 }
 0x3b9   : > { %v882_v16 = vpop.permute.xlu1 %881 }
 0x3ba   : > { %2957 = vmatmul.msk.f32.gmra.mxu1 %vm501_vm1, %v882_v16 }
 0x3bb   : > { %2973 = vmatmul.msk.f32.gmra.mxu3 %vm501_vm1, %v1077_v22 }
 0x3c1   : > { %v1178_v23 = vpop.permute.xlu1 %1177 }
 0x3c2   : > { %2958 = vmatmul.msk.f32.gmra.mxu1 %vm501_vm1, %v884_v13 }
 0x3c3   : > { %2974 = vmatmul.msk.f32.gmra.mxu3 %vm501_vm1, %v1079_v0 }
 0x3c9   : > { %v987_v25 = vpop.permute.xlu1 %986 }
 0x3ca   : > { %2961 = vmatmul.msk.f32.gmra.mxu2 %vm501_vm1, %v987_v25  ;;  %2975 = vmatmul.msk.f32.vlgmr.msrb.gmra.mxu1 %vm501_vm1, %v1178_v23 }
 0x3d1   : > { %v1184_v30 = vpop.permute.xlu1 %1183 }
 0x3d2   : > { %2962 = vmatmul.msk.f32.gmra.mxu2 %vm501_vm1, %v989_v27  ;;  %2976 = vmatmul.msk.f32.gmra.mxu1 %vm501_vm1, %v1180_v24 }
 0x3d3   : > { %v3860_v32 = vpop.f32.mrf.mxu3 }
 0x3da   : > { %2977 = vmatmul.msk.f32.gmra.mxu1 %vm501_vm1, %v1182_v28 }
 0x3db   : > { %v3864_v36 = vpop.f32.mrf.mxu3 }
 0x3e2   : > { %2978 = vmatmul.msk.f32.gmra.mxu1 %vm501_vm1, %v1184_v30 }
 0x3e3   : > { %v3866_v37 = vpop.f32.mrf.mxu3 }
 0x3eb   : > { %v3868_v50 = vpop.f32.mrf.mxu3 }
 0x3ec   : > { %v1015_v58 = vpop.f32.mrf.mxu2 }
 0x3ef   : > { %v926_v33 = vpop.f32.mrf.mxu1 }
 0x3f0   : > { %v927_v34 = vadd.f32 %v926_v33, %v3697_v9 }
 0x3f2   : > { %v938_v35 = vsel %vm447_vm0, %v927_v34, -inf }
 0x3f3   : > { %939 = vmax.xlane.f32.xlu2 %v938_v35  ;;  %v3870_v38 = vpop.f32.mrf.mxu3 }
 0x3f7   : > { %v929_v46 = vpop.f32.mrf.mxu1 }
 0x3f8   : > { %v930_v52 = vadd.f32 %v929_v46, %v3702_v14 }
 0x3fa   : > { %v941_v57 = vsel %vm447_vm0, %v930_v52, -inf }
 0x3fb   : > { %v3872_v42 = vpop.f32.mrf.mxu3 }
 0x426   : > { %v3874_v43 = vpop.f32.mrf.mxu3 }
 0x42e   : > { %v1121_v44 = vpop.f32.mrf.mxu3 }
 0x42f   : > { %v1122_v49 = vadd.f32 %v1121_v44, %v3697_v9 }
 0x431   : > { %v1133_v51 = vsel %vm447_vm0, %v1122_v49, -inf }
 0x432   : > { %1134 = vmax.xlane.f32.xlu0 %v1133_v51 }
 0x436   : > { %v1124_v53 = vpop.f32.mrf.mxu3 }
 0x437   : > { %v1125_v54 = vadd.f32 %v1124_v53, %v3702_v14  ;;  %v932_v55 = vpop.f32.mrf.mxu1  ;;  %v1018_v14 = vpop.f32.mrf.mxu2 }
 0x438   : > { %v933_v59 = vadd.f32 %v932_v55, %v3710_v19 }
 0x439   : > { %v1136_v56 = vsel %vm447_vm0, %v1125_v54, -inf }
 0x43a   : > { %1137 = vmax.xlane.f32.xlu1 %v1136_v56  ;;  %942 = vmax.xlane.f32.xlu0 %v941_v57  ;;  %v944_v47 = vsel %vm447_vm0, %v933_v59, -inf }
 0x43e   : > { %v1127_v60 = vpop.f32.mrf.mxu3 }
 0x43f   : > { %v1128_v9 = vadd.f32 %v1127_v60, %v3710_v19  ;;  %v935_v61 = vpop.f32.mrf.mxu1 }
 0x440   : > { %v3887_v63 = vadd.f32 %v935_v61, %v3715_v26 }
 0x441   : > { %v1139_v62 = vsel %vm447_vm0, %v1128_v9, -inf }
 0x442   : > { %1140 = vmax.xlane.f32.xlu2 %v1139_v62  ;;  %945 = vmax.xlane.f32.xlu1 %v944_v47  ;;  %v947_v19 = vsel %vm447_vm0, %v3887_v63, -inf }
 0x446   : > { %v1130_v0 = vpop.f32.mrf.mxu3 }
 0x447   : > { %v1131_v45 = vadd.f32 %v1130_v0, %v3715_v26  ;;  %v1210_v1 = vpop.f32.mrf.mxu1 }
 0x449   : > { %v1142_v2 = vsel %vm447_vm0, %v1131_v45, -inf }
 0x44a   : > { %1143 = vmax.xlane.f32.xlu0 %v1142_v2  ;;  %948 = vmax.xlane.f32.xlu2 %v947_v19 }
 0x44d   : > { %v1021_v3 = vpop.f32.mrf.mxu2 }
 0x44f   : > { %v1213_v4 = vpop.f32.mrf.mxu1 }
 0x455   : > { %v1024_v48 = vpop.f32.mrf.mxu2 }
 0x456   : > { %1051 = vmatpush.msra.mxu0 %v1024_v48 }
 0x457   : > { %v1216_v5 = vpop.f32.mrf.mxu1 }
 0x458   : > { %1052 = vmatpush.msra.mxu0 %v1021_v3 }
 0x45a   : > { %1053 = vmatpush.msra.mxu0 %v1018_v14 }
 0x45c   : > { %1054 = vmatpush.msra.mxu0 %v1015_v58 }
 0x45f   : > { %v1219_v6 = vpop.f32.mrf.mxu1 }
 0x460   : > { %1246 = vmatpush.msrb.mxu2 %v1219_v6 }
 0x462   : > { %1247 = vmatpush.msrb.mxu2 %v1216_v5 }
 0x464   : > { %1248 = vmatpush.msrb.mxu2 %v1213_v4 }
 0x466   : > { %v940_v26 = vpop.xlane.xlu2 %939  ;;  %1249 = vmatpush.msrb.mxu2 %v1210_v1 }
 0x467   : > { %v950_v7 = vsub.f32 %v927_v34, %v940_v26 }
 0x469   : > { %v954_v8 = vmul.f32 1.442695, %v950_v7 }
 0x46b   : > { %3201 = vpow2.f32 %v954_v8 }
 0x471   : > { %v3202_v10 = vpop.eup %3201 }
 0x472   : > { %v962_v11 = vsel %vm447_vm0, %v3202_v10, 0.0 }
 0x473   : > { %963 = vadd.xlane.f32.xlu0 %v962_v11 }
 0x4a5   : > { %v1135_v13 = vpop.xlane.xlu0 %1134 }
 0x4a6   : > { %v1145_v15 = vsub.f32 %v1122_v49, %v1135_v13 }
 0x4a8   : > { %v1149_v17 = vmul.f32 1.442695, %v1145_v15 }
 0x4aa   : > { %3203 = vpow2.f32 %v1149_v17 }
 0x4ad   : > { %v943_v12 = vpop.xlane.xlu0 %942  ;;  %v1138_v18 = vpop.xlane.xlu1 %1137 }
 0x4ae   : > { %v951_v20 = vsub.f32 %v930_v52, %v943_v12  ;;  %v1146_v22 = vsub.f32 %v1125_v54, %v1138_v18 }
 0x4b0   : > { %v3204_v16 = vpop.eup %3203  ;;  %v956_v23 = vmul.f32 1.442695, %v951_v20  ;;  %v1151_v24 = vmul.f32 1.442695, %v1146_v22 }
 0x4b1   : > { %v1157_v25 = vsel %vm447_vm0, %v3204_v16, 0.0 }
 0x4b2   : > { %3205 = vpow2.f32 %v956_v23  ;;  %1158 = vadd.xlane.f32.xlu1 %v1157_v25  ;;  %v677_v23 = vperm.slane %v3604_v41, 1 }
 0x4b3   : > { %3207 = vpow2.f32 %v1151_v24 }
 0x4b4   : > { %v678_v25 = vadd.f32 %v677_v23, %v3858_v31  ;;  %v680_v31 = vadd.f32 %v677_v23, %v3864_v36 }
 0x4b5   : > { %v1141_v27 = vpop.xlane.xlu2 %1140  ;;  %v946_v28 = vpop.xlane.xlu1 %945 }
 0x4b6   : > { %v1147_v30 = vsub.f32 %v1128_v9, %v1141_v27  ;;  %v952_v33 = vsub.f32 %v933_v59, %v946_v28  ;;  %v873_v27 = vadd.f32 %v3868_v50, %v678_v25 }
 0x4b8   : > { %v3206_v34 = vpop.eup %3205  ;;  %v1153_v35 = vmul.f32 1.442695, %v1147_v30  ;;  %v958_v44 = vmul.f32 1.442695, %v952_v33 }
 0x4b9   : > { %v3208_v46 = vpop.eup %3207  ;;  %v965_v49 = vsel %vm447_vm0, %v3206_v34, 0.0 }
 0x4ba   : > { %3209 = vpow2.f32 %v1153_v35  ;;  %966 = vadd.xlane.f32.xlu1 %v965_v49  ;;  %v1160_v51 = vsel %vm447_vm0, %v3208_v46, 0.0 }
 0x4bb   : > { %3211 = vpow2.f32 %v958_v44  ;;  %1161 = vadd.xlane.f32.xlu2 %v1160_v51  ;;  %v679_v44 = vadd.f32 %v677_v23, %v3860_v32 }
 0x4bd   : > { %v1144_v52 = vpop.xlane.xlu0 %1143  ;;  %v949_v53 = vpop.xlane.xlu2 %948  ;;  %v874_v49 = vadd.f32 %v3870_v38, %v679_v44 }
 0x4be   : > { %v1148_v54 = vsub.f32 %v1131_v45, %v1144_v52  ;;  %v953_v55 = vsub.f32 %v3887_v63, %v949_v53 }
 0x4c0   : > { %v3210_v56 = vpop.eup %3209  ;;  %v1155_v57 = vmul.f32 1.442695, %v1148_v54  ;;  %v960_v58 = vmul.f32 1.442695, %v953_v55  ;;  %v875_v54 = vadd.f32 %v3872_v42, %v680_v31  ;;  %v3967_v31 = vld [vmem:[%s4608_s7] sm:$0xff] }
 0x4c1   : > { %v3212_v59 = vpop.eup %3211  ;;  %v1163_v60 = vsel %vm447_vm0, %v3210_v56, 0.0 }
 0x4c2   : > { %3213 = vpow2.f32 %v1155_v57  ;;  %1164 = vadd.xlane.f32.xlu0 %v1163_v60  ;;  %v968_v9 = vsel %vm447_vm0, %v3212_v59, 0.0  ;;  %v681_v57 = vadd.f32 %v677_v23, %v3866_v37 }
 0x4c3   : > { %3215 = vpow2.f32 %v960_v58  ;;  %969 = vadd.xlane.f32.xlu2 %v968_v9 }
 0x4c8   : > { %v3214_v61 = vpop.eup %3213 }
 0x4c9   : > { %v3216_v62 = vpop.eup %3215  ;;  %v1166_v47 = vsel %vm447_vm0, %v3214_v61, 0.0 }
 0x4ca   : > { %v971_v14 = vsel %vm447_vm0, %v3216_v62, 0.0  ;;  %1167 = vadd.xlane.f32.xlu1 %v1166_v47 }
 0x4cb   : > { %972 = vadd.xlane.f32.xlu0 %v971_v14 }
 0x4e6   : > { %v964_v63 = vpop.xlane.xlu0 %963 }
 0x4e7   : > { %3217 = vrcp.f32 %v964_v63 }
 0x4ed   : > { %v3218_v0 = vpop.eup %3217 }
 0x4ee   : > { %v978_v45 = vmul.f32 %v3218_v0, %v3202_v10 }
 0x4f0   : > { %2963 = vmatmul.msk.f32.vlgmr.msra.gmra.mxu0 %vm447_vm0, %v978_v45 }
 0x525   : > { %v1159_v1 = vpop.xlane.xlu1 %1158 }
 0x526   : > { %3219 = vrcp.f32 %v1159_v1 }
 0x52c   : > { %v3220_v2 = vpop.eup %3219 }
 0x52d   : > { %v1173_v19 = vmul.f32 %v3220_v2, %v3204_v16  ;;  %v967_v3 = vpop.xlane.xlu1 %966 }
 0x52e   : > { %v1162_v4 = vpop.xlane.xlu2 %1161  ;;  %3221 = vrcp.f32 %v967_v3 }
 0x52f   : > { %3223 = vrcp.f32 %v1162_v4  ;;  %2979 = vmatmul.msk.f32.vlgmr.msrb.gmra.mxu2 %vm447_vm0, %v1173_v19 }
 0x534   : > { %v3222_v48 = vpop.eup %3221 }
 0x535   : > { %v3224_v5 = vpop.eup %3223  ;;  %v1165_v6 = vpop.xlane.xlu0 %1164  ;;  %v979_v26 = vmul.f32 %v3222_v48, %v3206_v34 }
 0x536   : > { %3225 = vrcp.f32 %v1165_v6  ;;  %v970_v7 = vpop.xlane.xlu2 %969  ;;  %v1174_v8 = vmul.f32 %v3224_v5, %v3208_v46 }
 0x537   : > { %3227 = vrcp.f32 %v970_v7  ;;  %2964 = vmatmul.msk.f32.gmra.mxu0 %vm447_vm0, %v979_v26 }
 0x538   : > { %2980 = vmatmul.msk.f32.gmra.mxu2 %vm447_vm0, %v1174_v8 }
 0x53c   : > { %v3226_v10 = vpop.eup %3225 }
 0x53d   : > { %v3228_v11 = vpop.eup %3227  ;;  %v1168_v13 = vpop.xlane.xlu1 %1167  ;;  %v1175_v15 = vmul.f32 %v3226_v10, %v3210_v56 }
 0x53e   : > { %v973_v17 = vpop.xlane.xlu0 %972  ;;  %3229 = vrcp.f32 %v1168_v13  ;;  %v980_v12 = vmul.f32 %v3228_v11, %v3212_v59  ;;  %v876_v59 = vadd.f32 %v3874_v43, %v681_v57 }
 0x53f   : > { %3231 = vrcp.f32 %v973_v17 }
 0x540   : > { %2965 = vmatmul.msk.f32.gmra.mxu0 %vm447_vm0, %v980_v12  ;;  %2981 = vmatmul.msk.f32.gmra.mxu2 %vm447_vm0, %v1175_v15 }
 0x544   : > { %v3230_v18 = vpop.eup %3229 }
 0x545   : > { %v3232_v20 = vpop.eup %3231  ;;  %v1176_v22 = vmul.f32 %v3230_v18, %v3214_v61  ;;  %v1379_v18 = vld [vmem:[%s4607_s6 + $0x18] sm:$0xff] }
 0x546   : > { %v981_v16 = vmul.f32 %v3232_v20, %v3216_v62  ;;  %v3446_v62 = vmov 32.0   ;;  %1405 = vmatpush.msrb.mxu0 %v1379_v18  ;;  %v1378_v20 = vld [vmem:[%s4607_s6 + $0x10] sm:$0xff] }
 0x547   : > { %3233 = vrcp.f32 %v3446_v62 }
 0x548   : > { %2966 = vmatmul.msk.f32.gmra.mxu0 %vm447_vm0, %v981_v16  ;;  %2982 = vmatmul.msk.f32.gmra.mxu2 %vm447_vm0, %v1176_v22  ;;  %v1377_v22 = vld [vmem:[%s4607_s6 + $0x8] sm:$0xff]  ;;  %v1376_v16 = vld [vmem:[%s4607_s6] sm:$0xff] }
 0x549   : > { %1406 = vmatpush.msrb.mxu0 %v1378_v20 }
 0x54b   : > { %1407 = vmatpush.msrb.mxu0 %v1377_v22 }
 0x54d   : > { %v3234_v47 = vpop.eup %3233  ;;  %1408 = vmatpush.msrb.mxu0 %v1376_v16  ;;  %v435_v16 = vld [vmem:[%s4606_s5 + $0x28] sm:$0xff] }
 0x54e   : > { %v1284_v37 = vmul.f32 32.0, %v3234_v47  ;;  %vm1288_vm2 = vweird.f32 %v3234_v47 }
 0x550   : > { %v1285_v14 = vsub.f32 1.0, %v1284_v37  ;;  %v437_v37 = vld [vmem:[%s4606_s5 + $0x38] sm:$0xff] }
 0x56d   : > { %v1056_v24 = vpop.f32.mrf.mxu0 }
 0x56e   : > { %v1068_v28 = vadd.f32 %v1056_v24, %v873_v27 }
 0x5b2   : > { %v1251_v30 = vpop.f32.mrf.mxu2 }
 0x5b3   : > { %v1263_v33 = vadd.f32 %v1251_v30, %v1068_v28 }
 0x5b4   : > { %v1059_v34 = vpop.f32.mrf.mxu0 }
 0x5b5   : > { %v1267_v35 = vadd.f32 %v1263_v33, %v3576_v21  ;;  %v1069_v51 = vadd.f32 %v1059_v34, %v874_v49 }
 0x5b7   : > { %v1271_v46 = vsel %vm447_vm0, %v1267_v35, 0.0 }
 0x5b8   : > { %1272 = vadd.xlane.f32.xlu2 %v1271_v46 }
 0x5bb   : > { %v1254_v41 = vpop.f32.mrf.mxu2 }
 0x5bc   : > { %v1264_v52 = vadd.f32 %v1254_v41, %v1069_v51 }
 0x5bd   : > { %v1062_v53 = vpop.f32.mrf.mxu0 }
 0x5be   : > { %v1268_v50 = vadd.f32 %v1264_v52, %v3597_v40  ;;  %v1070_v21 = vadd.f32 %v1062_v53, %v875_v54 }
 0x5c0   : > { %v1274_v55 = vsel %vm447_vm0, %v1268_v50, 0.0 }
 0x5c1   : > { %1275 = vadd.xlane.f32.xlu1 %v1274_v55 }
 0x5c3   : > { %v1257_v32 = vpop.f32.mrf.mxu2 }
 0x5c4   : > { %v1265_v56 = vadd.f32 %v1257_v32, %v1070_v21  ;;  %v441_v21 = vld [vmem:[%s4606_s5 + $0x58] sm:$0xff]  ;;  %v440_v32 = vld [vmem:[%s4606_s5 + $0x50] sm:$0xff] }
 0x5c5   : > { %v1065_v58 = vpop.f32.mrf.mxu0  ;;  %1448 = vmatpush.msra.mxu3 %v441_v21 }
 0x5c6   : > { %v1269_v38 = vadd.f32 %v1265_v56, %v3583_v29  ;;  %v1071_v36 = vadd.f32 %v1065_v58, %v876_v59  ;;  %v1286_v29 = vmul.f32 %v3234_v47, %v1285_v14  ;;  %v439_v58 = vld [vmem:[%s4606_s5 + $0x48] sm:$0xff] }
 0x5c7   : > { %1449 = vmatpush.msra.mxu3 %v440_v32 }
 0x5c8   : > { %v1277_v60 = vsel %vm447_vm0, %v1269_v38, 0.0  ;;  %v1287_v63 = vadd.f32 %v3234_v47, %v1286_v29 }
 0x5c9   : > { %1278 = vadd.xlane.f32.xlu0 %v1277_v60  ;;  %1450 = vmatpush.msra.mxu3 %v439_v58 }
 0x5ca   : > { %v3927_v43 = vsel %vm1288_vm2, %v3234_v47, %v1287_v63 }
 0x5cb   : > { %v1260_v40 = vpop.f32.mrf.mxu2 }
 0x5cc   : > { %v1266_v9 = vadd.f32 %v1260_v40, %v1071_v36 }
 0x5ce   : > { %v1270_v42 = vadd.f32 %v1266_v9, %v3593_v39  ;;  %v438_v9 = vld [vmem:[%s4606_s5 + $0x40] sm:$0xff] }
 0x5cf   : > { %1451 = vmatpush.msra.mxu3 %v438_v9 }
 0x5d0   : > { %v1280_v61 = vsel %vm447_vm0, %v1270_v42, 0.0 }
 0x5d1   : > { %1281 = vadd.xlane.f32.xlu2 %v1280_v61  ;;  %1452 = vmatpush.msra.mxu3 %v437_v37 }
 0x62b   : > { %v1273_v0 = vpop.xlane.xlu2 %1272 }
 0x62c   : > { %v1290_v45 = vmul.f32 %v3927_v43, %v1273_v0 }
 0x62e   : > { %v1294_v1 = vsub.f32 %v1267_v35, %v1290_v45 }
 0x630   : > { %v1298_v2 = vmul.f32 %v1294_v1, %v1294_v1 }
 0x632   : > { %v1302_v39 = vsel %vm447_vm0, %v1298_v2, 0.0 }
 0x633   : > { %1303 = vadd.xlane.f32.xlu1 %v1302_v39 }
 0x634   : > { %v1276_v19 = vpop.xlane.xlu1 %1275 }
 0x635   : > { %v1291_v3 = vmul.f32 %v3927_v43, %v1276_v19 }
 0x637   : > { %v3932_v4 = vsub.f32 %v1268_v50, %v1291_v3  ;;  %v1366_v50 = vperm.slane %v3967_v31, 4 }
 0x639   : > { %v1299_v48 = vmul.f32 %v3932_v4, %v3932_v4 }
 0x63b   : > { %v1305_v5 = vsel %vm447_vm0, %v1299_v48, 0.0 }
 0x63c   : > { %v1279_v6 = vpop.xlane.xlu0 %1278  ;;  %1306 = vadd.xlane.f32.xlu0 %v1305_v5 }
 0x63d   : > { %v1292_v26 = vmul.f32 %v3927_v43, %v1279_v6 }
 0x63f   : > { %v3938_v7 = vsub.f32 %v1269_v38, %v1292_v26  ;;  %v1371_v38 = vperm.slane %v3967_v31, 5 }
 0x641   : > { %v1300_v8 = vmul.f32 %v3938_v7, %v3938_v7 }
 0x643   : > { %v1308_v10 = vsel %vm447_vm0, %v1300_v8, 0.0 }
 0x644   : > { %1309 = vadd.xlane.f32.xlu2 %v1308_v10  ;;  %v1282_v11 = vpop.xlane.xlu2 %1281 }
 0x645   : > { %v1293_v13 = vmul.f32 %v3927_v43, %v1282_v11 }
 0x647   : > { %v3944_v15 = vsub.f32 %v1270_v42, %v1293_v13 }
 0x649   : > { %v1301_v17 = vmul.f32 %v3944_v15, %v3944_v15 }
 0x64b   : > { %v1311_v12 = vsel %vm447_vm0, %v1301_v17, 0.0 }
 0x64c   : > { %1312 = vadd.xlane.f32.xlu1 %v1311_v12 }
 0x6a6   : > { %v1304_v23 = vpop.xlane.xlu1 %1303 }
 0x6a7   : > { %v1314_v24 = vmul.f32 %v1304_v23, %v3927_v43  ;;  %v434_v23 = vld [vmem:[%s4606_s5 + $0x20] sm:$0xff] }
 0x6a9   : > { %v1318_v25 = vadd.f32 1e-05, %v1314_v24 }
 0x6ab   : > { %3235 = vrsqrt.f32 %v1318_v25  ;;  %vm1328_vm4 = vweird.f32 %v1318_v25 }
 0x6af   : > { %v1307_v27 = vpop.xlane.xlu0 %1306 }
 0x6b0   : > { %v1315_v28 = vmul.f32 %v1307_v27, %v3927_v43 }
 0x6b1   : > { %v3236_v30 = vpop.eup %3235 }
 0x6b2   : > { %v1323_v33 = vmul.f32 %v3236_v30, %v1318_v25  ;;  %v1319_v34 = vadd.f32 1e-05, %v1315_v28  ;;  %vm1329_vm3 = vweird.f32 %v3236_v30 }
 0x6b3   : > { %vm1330_vm5 = vmor %vm1328_vm4, %vm1329_vm3 }
 0x6b4   : > { %v1324_v35 = vmul.f32 %v3236_v30, %v1323_v33  ;;  %3237 = vrsqrt.f32 %v1319_v34  ;;  %vm1338_vm7 = vweird.f32 %v1319_v34 }
 0x6b6   : > { %v1325_v44 = vmul.f32 0.5, %v1324_v35 }
 0x6b7   : > { %v1310_v46 = vpop.xlane.xlu2 %1309 }
 0x6b8   : > { %v1326_v49 = vsub.f32 1.5, %v1325_v44  ;;  %v1316_v51 = vmul.f32 %v1310_v46, %v3927_v43 }
 0x6ba   : > { %v3238_v41 = vpop.eup %3237  ;;  %v1327_v52 = vmul.f32 %v3236_v30, %v1326_v49  ;;  %v1320_v53 = vadd.f32 1e-05, %v1316_v51 }
 0x6bb   : > { %v1333_v54 = vmul.f32 %v3238_v41, %v1319_v34  ;;  %vm1339_vm6 = vweird.f32 %v3238_v41 }
 0x6bc   : > { %v1331_v55 = vsel %vm1330_vm5, %v3236_v30, %v1327_v52  ;;  %3239 = vrsqrt.f32 %v1320_v53  ;;  %vm1340_vm8 = vmor %vm1338_vm7, %vm1339_vm6  ;;  %vm1348_vm10 = vweird.f32 %v1320_v53 }
 0x6bd   : > { %v1362_v56 = vmul.f32 %v1331_v55, %v1294_v1  ;;  %v1334_v57 = vmul.f32 %v3238_v41, %v1333_v54 }
 0x6bf   : > { %v1367_v59 = vmul.f32 %v1366_v50, %v1362_v56  ;;  %v1335_v60 = vmul.f32 0.5, %v1334_v57  ;;  %v1313_v36 = vpop.xlane.xlu1 %1312 }
 0x6c0   : > { %v1317_v40 = vmul.f32 %v1313_v36, %v3927_v43 }
 0x6c1   : > { %v1336_v42 = vsub.f32 1.5, %v1335_v60  ;;  %v3984_v61 = vadd.f32 %v1371_v38, %v1367_v59 }
 0x6c2   : > { %v3240_v62 = vpop.eup %3239  ;;  %v1321_v47 = vadd.f32 1e-05, %v1317_v40 }
 0x6c3   : > { %v1337_v14 = vmul.f32 %v3238_v41, %v1336_v42  ;;  %v1343_v29 = vmul.f32 %v3240_v62, %v1320_v53  ;;  %2983 = vmatmul.msk.f32.vlgmr.msrb.gmra.mxu0 %vm447_vm0, %v3984_v61  ;;  %vm1349_vm9 = vweird.f32 %v3240_v62 }
 0x6c4   : > { %3241 = vrsqrt.f32 %v1321_v47  ;;  %vm1350_vm11 = vmor %vm1348_vm10, %vm1349_vm9  ;;  %vm1358_vm13 = vweird.f32 %v1321_v47 }
 0x6c5   : > { %v1341_v63 = vsel %vm1340_vm8, %v3238_v41, %v1337_v14  ;;  %v1344_v0 = vmul.f32 %v3240_v62, %v1343_v29  ;;  %v1426_v41 = vperm.slane %v3967_v31, 3 }
 0x6c6   : > { %v1363_v45 = vmul.f32 %v1341_v63, %v3932_v4 }
 0x6c7   : > { %v1345_v1 = vmul.f32 0.5, %v1344_v0 }
 0x6c8   : > { %v1368_v2 = vmul.f32 %v1366_v50, %v1363_v45 }
 0x6c9   : > { %v1346_v39 = vsub.f32 1.5, %v1345_v1 }
 0x6ca   : > { %v3242_v19 = vpop.eup %3241  ;;  %v1373_v3 = vadd.f32 %v1371_v38, %v1368_v2 }
 0x6cb   : > { %v1347_v48 = vmul.f32 %v3240_v62, %v1346_v39  ;;  %v1353_v5 = vmul.f32 %v3242_v19, %v1321_v47  ;;  %vm1359_vm12 = vweird.f32 %v3242_v19 }
 0x6cc   : > { %2984 = vmatmul.msk.f32.gmra.mxu0 %vm447_vm0, %v1373_v3  ;;  %vm1360_vm14 = vmor %vm1358_vm13, %vm1359_vm12 }
 0x6cd   : > { %v1351_v6 = vsel %vm1350_vm11, %v3240_v62, %v1347_v48  ;;  %v1354_v26 = vmul.f32 %v3242_v19, %v1353_v5 }
 0x6ce   : > { %v1364_v8 = vmul.f32 %v1351_v6, %v3938_v7  ;;  %v436_v7 = vld [vmem:[%s4606_s5 + $0x30] sm:$0xff] }
 0x6cf   : > { %v1355_v10 = vmul.f32 0.5, %v1354_v26  ;;  %1453 = vmatpush.msra.mxu3 %v436_v7 }
 0x6d0   : > { %v1369_v11 = vmul.f32 %v1366_v50, %v1364_v8 }
 0x6d1   : > { %v1356_v13 = vsub.f32 1.5, %v1355_v10  ;;  %1454 = vmatpush.msra.mxu3 %v435_v16  ;;  %v3007_v10 = vld [vmem:[%s4635_s4 + $0x38] sm:$0xff] }
 0x6d2   : > { %v1374_v4 = vadd.f32 %v1371_v38, %v1369_v11  ;;  %1616 = vmatpush.msra.mxu1 %v3007_v10  ;;  %v3006_v11 = vld [vmem:[%s4635_s4 + $0x30] sm:$0xff] }
 0x6d3   : > { %v1357_v17 = vmul.f32 %v3242_v19, %v1356_v13  ;;  %1455 = vmatpush.msra.mxu3 %v434_v23  ;;  %v3005_v13 = vld [vmem:[%s4635_s4 + $0x28] sm:$0xff] }
 0x6d4   : > { %2985 = vmatmul.msk.f32.gmra.mxu0 %vm447_vm0, %v1374_v4  ;;  %1617 = vmatpush.msra.mxu1 %v3006_v11 }
 0x6d5   : > { %v1361_v12 = vsel %vm1360_vm14, %v3242_v19, %v1357_v17 }
 0x6d6   : > { %v1365_v18 = vmul.f32 %v1361_v12, %v3944_v15  ;;  %v1380_v15 = vperm.slane %v3967_v31, 2  ;;  %1618 = vmatpush.msra.mxu1 %v3005_v13 }
 0x6d8   : > { %v1370_v20 = vmul.f32 %v1366_v50, %v1365_v18 }
 0x6da   : > { %v1375_v22 = vadd.f32 %v1371_v38, %v1370_v20 }
 0x6dc   : > { %2986 = vmatmul.msk.f32.gmra.mxu0 %vm447_vm0, %v1375_v22 }
 0x740   : > { %v1410_v24 = vpop.f32.mrf.mxu0 }
 0x741   : > { %v1411_v25 = vadd.f32 %v1410_v24, %v1380_v15 }
 0x743   : > { %v1422_v27 = vmax.f32 %v1411_v25, 0.0 }
 0x745   : > { %2987 = vmatmul.msk.f32.vlgmr.msra.gmra.mxu3 %vm1427_vm15, %v1422_v27 }
 0x749   : > { %v1413_v28 = vpop.f32.mrf.mxu0 }
 0x74a   : > { %v1414_v30 = vadd.f32 %v1413_v28, %v1380_v15 }
 0x74c   : > { %v1423_v33 = vmax.f32 %v1414_v30, 0.0 }
 0x74e   : > { %2988 = vmatmul.msk.f32.gmra.mxu3 %vm1427_vm15, %v1423_v33 }
 0x751   : > { %v1416_v34 = vpop.f32.mrf.mxu0 }
 0x752   : > { %v1417_v35 = vadd.f32 %v1416_v34, %v1380_v15 }
 0x754   : > { %v1424_v44 = vmax.f32 %v1417_v35, 0.0  ;;  %v1561_v35 = vperm.slane %v3967_v31, 6 }
 0x756   : > { %2989 = vmatmul.msk.f32.gmra.mxu3 %vm1427_vm15, %v1424_v44 }
 0x759   : > { %v1419_v46 = vpop.f32.mrf.mxu0 }
 0x75a   : > { %v1420_v49 = vadd.f32 %v1419_v46, %v1380_v15 }
 0x75c   : > { %v1425_v51 = vmax.f32 %v1420_v49, 0.0 }
 0x75e   : > { %2990 = vmatmul.msk.f32.gmra.mxu3 %vm1427_vm15, %v1425_v51 }
 0x7c8   : > { %v1457_v52 = vpop.f32.mrf.mxu3 }
 0x7c9   : > { %v1458_v53 = vadd.f32 %v1457_v52, %v1426_v41 }
 0x7cb   : > { %v1469_v50 = vadd.f32 %v1458_v53, %v3984_v61 }
 0x7cd   : > { %v1473_v54 = vsel %vm447_vm0, %v1469_v50, 0.0 }
 0x7ce   : > { %1474 = vadd.xlane.f32.xlu0 %v1473_v54 }
 0x7d1   : > { %v1460_v55 = vpop.f32.mrf.mxu3 }
 0x7d2   : > { %v1461_v21 = vadd.f32 %v1460_v55, %v1426_v41 }
 0x7d4   : > { %v1470_v32 = vadd.f32 %v1461_v21, %v1373_v3 }
 0x7d6   : > { %v1476_v56 = vsel %vm447_vm0, %v1470_v32, 0.0 }
 0x7d7   : > { %1477 = vadd.xlane.f32.xlu2 %v1476_v56 }
 0x7d9   : > { %v1463_v57 = vpop.f32.mrf.mxu3 }
 0x7da   : > { %v1464_v38 = vadd.f32 %v1463_v57, %v1426_v41 }
 0x7dc   : > { %v1471_v58 = vadd.f32 %v1464_v38, %v1374_v4  ;;  %v3004_v4 = vld [vmem:[%s4635_s4 + $0x20] sm:$0xff] }
 0x7dd   : > { %1619 = vmatpush.msra.mxu1 %v3004_v4 }
 0x7de   : > { %v1479_v59 = vsel %vm447_vm0, %v1471_v58, 0.0 }
 0x7df   : > { %1480 = vadd.xlane.f32.xlu1 %v1479_v59 }
 0x7e1   : > { %v1466_v60 = vpop.f32.mrf.mxu3 }
 0x7e2   : > { %v1467_v36 = vadd.f32 %v1466_v60, %v1426_v41  ;;  %v1566_v41 = vperm.slane %v3967_v31, 7 }
 0x7e4   : > { %v1472_v40 = vadd.f32 %v1467_v36, %v1375_v22 }
 0x7e6   : > { %v1482_v9 = vsel %vm447_vm0, %v1472_v40, 0.0 }
 0x7e7   : > { %1483 = vadd.xlane.f32.xlu0 %v1482_v9 }
 0x841   : > { %v1475_v42 = vpop.xlane.xlu0 %1474 }
 0x842   : > { %v1485_v61 = vmul.f32 %v1475_v42, %v3927_v43 }
 0x844   : > { %v1489_v62 = vsub.f32 %v1469_v50, %v1485_v61 }
 0x846   : > { %v1493_v47 = vmul.f32 %v1489_v62, %v1489_v62 }
 0x848   : > { %v1497_v37 = vsel %vm447_vm0, %v1493_v47, 0.0 }
 0x849   : > { %1498 = vadd.xlane.f32.xlu2 %v1497_v37 }
 0x84a   : > { %v1478_v14 = vpop.xlane.xlu2 %1477 }
 0x84b   : > { %v1486_v29 = vmul.f32 %v1478_v14, %v3927_v43 }
 0x84d   : > { %v4020_v63 = vsub.f32 %v1470_v32, %v1486_v29 }
 0x84f   : > { %v1494_v0 = vmul.f32 %v4020_v63, %v4020_v63 }
 0x851   : > { %v1500_v45 = vsel %vm447_vm0, %v1494_v0, 0.0 }
 0x852   : > { %1501 = vadd.xlane.f32.xlu1 %v1500_v45  ;;  %v1481_v1 = vpop.xlane.xlu1 %1480 }
 0x853   : > { %v1487_v2 = vmul.f32 %v1481_v1, %v3927_v43 }
 0x855   : > { %v4026_v39 = vsub.f32 %v1471_v58, %v1487_v2 }
 0x857   : > { %v1495_v19 = vmul.f32 %v4026_v39, %v4026_v39 }
 0x859   : > { %v1503_v3 = vsel %vm447_vm0, %v1495_v19, 0.0 }
 0x85a   : > { %v1484_v48 = vpop.xlane.xlu0 %1483  ;;  %1504 = vadd.xlane.f32.xlu0 %v1503_v3 }
 0x85b   : > { %v1488_v5 = vmul.f32 %v1484_v48, %v3927_v43 }
 0x85d   : > { %v4032_v6 = vsub.f32 %v1472_v40, %v1488_v5  ;;  %v4077_v5 = vld [vmem:[%s4608_s7 + $0x8] sm:$0xff] }
 0x85f   : > { %v1496_v26 = vmul.f32 %v4032_v6, %v4032_v6 }
 0x861   : > { %v1506_v8 = vsel %vm447_vm0, %v1496_v26, 0.0  ;;  %v1591_v26 = vperm.slane %v4077_v5, 0 }
 0x862   : > { %1507 = vadd.xlane.f32.xlu2 %v1506_v8 }
 0x8bc   : > { %v1499_v17 = vpop.xlane.xlu2 %1498 }
 0x8bd   : > { %v1509_v12 = vmul.f32 %v1499_v17, %v3927_v43 }
 0x8bf   : > { %v1513_v18 = vadd.f32 1e-05, %v1509_v12  ;;  %v2992_v12 = vld [vmem:[%s4606_s5 + $0x60] sm:$0xff] }
 0x8c0   : > { %1765 = vmatpush.msra.mxu0 %v2992_v12 }
 0x8c1   : > { %3243 = vrsqrt.f32 %v1513_v18  ;;  %vm1523_vm3 = vweird.f32 %v1513_v18 }
 0x8c5   : > { %v1502_v20 = vpop.xlane.xlu1 %1501 }
 0x8c6   : > { %v1510_v22 = vmul.f32 %v1502_v20, %v3927_v43 }
 0x8c7   : > { %v3244_v7 = vpop.eup %3243 }
 0x8c8   : > { %v1518_v16 = vmul.f32 %v3244_v7, %v1513_v18  ;;  %v1514_v23 = vadd.f32 1e-05, %v1510_v22  ;;  %vm1524_vm2 = vweird.f32 %v3244_v7 }
 0x8c9   : > { %vm1525_vm4 = vmor %vm1523_vm3, %vm1524_vm2 }
 0x8ca   : > { %v1519_v15 = vmul.f32 %v3244_v7, %v1518_v16  ;;  %3245 = vrsqrt.f32 %v1514_v23  ;;  %vm1533_vm6 = vweird.f32 %v1514_v23 }
 0x8cc   : > { %v1520_v24 = vmul.f32 0.5, %v1519_v15 }
 0x8cd   : > { %v1505_v25 = vpop.xlane.xlu0 %1504 }
 0x8ce   : > { %v1521_v27 = vsub.f32 1.5, %v1520_v24  ;;  %v1511_v28 = vmul.f32 %v1505_v25, %v3927_v43  ;;  %v2993_v24 = vld [vmem:[%s4606_s5 + $0x68] sm:$0xff] }
 0x8d0   : > { %v3246_v30 = vpop.eup %3245  ;;  %v1522_v33 = vmul.f32 %v3244_v7, %v1521_v27  ;;  %v1515_v34 = vadd.f32 1e-05, %v1511_v28 }
 0x8d1   : > { %v1528_v44 = vmul.f32 %v3246_v30, %v1514_v23  ;;  %vm1534_vm5 = vweird.f32 %v3246_v30 }
 0x8d2   : > { %v1526_v46 = vsel %vm1525_vm4, %v3244_v7, %v1522_v33  ;;  %3247 = vrsqrt.f32 %v1515_v34  ;;  %vm1535_vm7 = vmor %vm1533_vm6, %vm1534_vm5  ;;  %vm1543_vm9 = vweird.f32 %v1515_v34 }
 0x8d3   : > { %v1557_v49 = vmul.f32 %v1526_v46, %v1489_v62  ;;  %v1529_v51 = vmul.f32 %v3246_v30, %v1528_v44 }
 0x8d5   : > { %v1562_v52 = vmul.f32 %v1561_v35, %v1557_v49  ;;  %v1530_v53 = vmul.f32 0.5, %v1529_v51  ;;  %v1508_v50 = vpop.xlane.xlu2 %1507 }
 0x8d6   : > { %v1512_v54 = vmul.f32 %v1508_v50, %v3927_v43  ;;  %v4163_v50 = vld [vmem:[%s3694_s17] sm:$0xff] }
 0x8d7   : > { %v1531_v55 = vsub.f32 1.5, %v1530_v53  ;;  %v4055_v21 = vadd.f32 %v1566_v41, %v1562_v52 }
 0x8d8   : > { %v3248_v32 = vpop.eup %3247  ;;  %v1516_v56 = vadd.f32 1e-05, %v1512_v54 }
 0x8d9   : > { %v1532_v57 = vmul.f32 %v3246_v30, %v1531_v55  ;;  %v1538_v38 = vmul.f32 %v3248_v32, %v1515_v34  ;;  %3008 = vmatmul.msk.f32.vlgmr.msra.gmra.mxu1 %vm447_vm0, %v4055_v21  ;;  %vm1544_vm8 = vweird.f32 %v3248_v32 }
 0x8da   : > { %3249 = vrsqrt.f32 %v1516_v56  ;;  %vm1545_vm10 = vmor %vm1543_vm9, %vm1544_vm8  ;;  %vm1553_vm12 = vweird.f32 %v1516_v56 }
 0x8db   : > { %v1536_v31 = vsel %vm1535_vm7, %v3246_v30, %v1532_v57  ;;  %v1539_v58 = vmul.f32 %v3248_v32, %v1538_v38 }
 0x8dc   : > { %v1558_v59 = vmul.f32 %v1536_v31, %v4020_v63 }
 0x8dd   : > { %v1540_v60 = vmul.f32 0.5, %v1539_v58 }
 0x8de   : > { %v1563_v36 = vmul.f32 %v1561_v35, %v1558_v59  ;;  %v4170_v59 = vld [vmem:[%s3694_s17 + $0x8] sm:$0xff] }
 0x8df   : > { %v1541_v40 = vsub.f32 1.5, %v1540_v60 }
 0x8e0   : > { %v3250_v9 = vpop.eup %3249  ;;  %v4060_v42 = vadd.f32 %v1566_v41, %v1563_v36 }
 0x8e1   : > { %v1542_v61 = vmul.f32 %v3248_v32, %v1541_v40  ;;  %v1548_v62 = vmul.f32 %v3250_v9, %v1516_v56  ;;  %vm1554_vm11 = vweird.f32 %v3250_v9 }
 0x8e2   : > { %3009 = vmatmul.msk.f32.gmra.mxu1 %vm447_vm0, %v4060_v42  ;;  %vm1555_vm13 = vmor %vm1553_vm12, %vm1554_vm11 }
 0x8e3   : > { %v1546_v47 = vsel %vm1545_vm10, %v3248_v32, %v1542_v61  ;;  %v1549_v37 = vmul.f32 %v3250_v9, %v1548_v62 }
 0x8e4   : > { %v1559_v14 = vmul.f32 %v1546_v47, %v4026_v39  ;;  %v4176_v47 = vld [vmem:[%s3694_s17 + $0x10] sm:$0xff] }
 0x8e5   : > { %v1550_v29 = vmul.f32 0.5, %v1549_v37 }
 0x8e6   : > { %v1564_v63 = vmul.f32 %v1561_v35, %v1559_v14 }
 0x8e7   : > { %v1551_v0 = vsub.f32 1.5, %v1550_v29 }
 0x8e8   : > { %v4065_v45 = vadd.f32 %v1566_v41, %v1564_v63 }
 0x8e9   : > { %v1552_v1 = vmul.f32 %v3250_v9, %v1551_v0 }
 0x8ea   : > { %3010 = vmatmul.msk.f32.gmra.mxu1 %vm447_vm0, %v4065_v45 }
 0x8eb   : > { %v1556_v2 = vsel %vm1555_vm13, %v3250_v9, %v1552_v1 }
 0x8ec   : > { %v1560_v19 = vmul.f32 %v1556_v2, %v4032_v6  ;;  %v4188_v2 = vld [vmem:[%s3694_s17 + $0x18] sm:$0xff]  ;;  %s4641_s17 = smov 80  }
 0x8ee   : > { %v1565_v3 = vmul.f32 %v1561_v35, %v1560_v19 }
 0x8f0   : > { %v4070_v48 = vadd.f32 %v1566_v41, %v1565_v3 }
 0x8f2   : > { %3011 = vmatmul.msk.f32.gmra.mxu1 %vm447_vm0, %v4070_v48 }
 0x956   : > { %v1621_v39 = vpop.f32.mrf.mxu1 }
 0x957   : > { %v4090_v4 = vadd.f32 %v1621_v39, %v1591_v26 }
 0x95f   : > { %v1624_v8 = vpop.f32.mrf.mxu1 }
 0x960   : > { %v4080_v10 = vadd.f32 %v1624_v8, %v1591_v26 }
 0x962   : > { %1639 = vrot.lane.b32.xlu2 %v4080_v10, %s3435_s26 }
 0x967   : > { %v1627_v6 = vpop.f32.mrf.mxu1 }
 0x968   : > { %v4084_v11 = vadd.f32 %v1627_v6, %v1591_v26 }
 0x96a   : > { %1641 = vrot.lane.b32.xlu0 %v4084_v11, %s3435_s26  ;;  %1837 = vrot.lane.b32.xlu2 %v4084_v11, %s3437_s28 }
 0x96f   : > { %v1630_v13 = vpop.f32.mrf.mxu1 }
 0x970   : > { %v4092_v17 = vadd.f32 %v1630_v13, %v1591_v26 }
 0x972   : > { %1643 = vrot.lane.b32.xlu1 %v4092_v17, %s3435_s26  ;;  %1637 = vrot.lane.b32.xlu0 %v4090_v4, %s3435_s26  ;;  %s4640_s26 = smov 64  }
 0x973   : > { %1825 = vrot.lane.b32.xlu2 %v4090_v4, %s3438_s29 }
 0x97a   : > { %1839 = vrot.lane.b32.xlu1 %v4092_v17, %s3437_s28  ;;  %1835 = vrot.lane.b32.xlu0 %v4080_v10, %s3437_s28 }
 0x97b   : > { %1930 = vrot.lane.b32.xlu2 %v4090_v4, %s4639_s25 }
 0x982   : > { %1833 = vrot.lane.b32.xlu1 %v4090_v4, %s3437_s28  ;;  %1827 = vrot.lane.b32.xlu0 %v4080_v10, %s3438_s29 }
 0x983   : > { %1831 = vrot.lane.b32.xlu2 %v4092_v17, %s3438_s29 }
 0x98a   : > { %1829 = vrot.lane.b32.xlu1 %v4084_v11, %s3438_s29  ;;  %1734 = vrot.lane.b32.xlu0 %v4090_v4, %s4640_s26 }
 0x98b   : > { %1740 = vrot.lane.b32.xlu2 %v4092_v17, %s4640_s26 }
 0x992   : > { %1736 = vrot.lane.b32.xlu1 %v4080_v10, %s4640_s26  ;;  %1738 = vrot.lane.b32.xlu0 %v4084_v11, %s4640_s26 }
 0x99a   : > { %1932 = vrot.lane.b32.xlu1 %v4080_v10, %s4639_s25  ;;  %1934 = vrot.lane.b32.xlu0 %v4084_v11, %s4639_s25 }
 0x9a2   : > { %1936 = vrot.lane.b32.xlu1 %v4092_v17, %s4639_s25 }
 0x9bc   : > { %v1640_v20 = vpop.permute.xlu2 %1639 }
 0x9c4   : > { %v1838_v16 = vpop.permute.xlu2 %1837 }
 0x9cd   : > { %v1826_v28 = vpop.permute.xlu2 %1825 }
 0x9d5   : > { %v1931_v34 = vpop.permute.xlu2 %1930 }
 0x9dc   : > { %v1642_v18 = vpop.permute.xlu0 %1641 }
 0x9dd   : > { %v1832_v44 = vpop.permute.xlu2 %1831 }
 0x9e4   : > { %v1644_v22 = vpop.permute.xlu1 %1643  ;;  %v1638_v7 = vpop.permute.xlu0 %1637 }
 0x9e5   : > { %3012 = vmatpush.xpose.msk.msra.mxu2 %vm501_vm1, %v1644_v22  ;;  %v1741_v49 = vpop.permute.xlu2 %1740 }
 0x9e9   : > { %3013 = vmatpush.xpose.msk.msra.mxu2 %vm501_vm1, %v1642_v18 }
 0x9ec   : > { %v1840_v23 = vpop.permute.xlu1 %1839  ;;  %v1836_v15 = vpop.permute.xlu0 %1835 }
 0x9ed   : > { %3014 = vmatpush.xpose.msk.msra.mxu2 %vm501_vm1, %v1640_v20  ;;  %3028 = vmatpush.xpose.msk.msrb.mxu1 %vm501_vm1, %v1840_v23 }
 0x9f1   : > { %3015 = vmatpush.xpose.msk.msra.mxu2 %vm501_vm1, %v1638_v7  ;;  %3029 = vmatpush.xpose.msk.msrb.mxu1 %vm501_vm1, %v1838_v16 }
 0x9f4   : > { %v1834_v25 = vpop.permute.xlu1 %1833  ;;  %v1828_v27 = vpop.permute.xlu0 %1827  ;;  %3016 = vmatmul.msk.f32.vlgmr.msra.gmra.mxu2 %vm501_vm1, %v4090_v4 }
 0x9f5   : > { %1961 = vmatpush.msrb.mxu2 %v2993_v24  ;;  %3030 = vmatpush.xpose.msk.msrb.mxu1 %vm501_vm1, %v1836_v15 }
 0x9f9   : > { %3031 = vmatpush.xpose.msk.msrb.mxu1 %vm501_vm1, %v1834_v25 }
 0x9fc   : > { %v1830_v30 = vpop.permute.xlu1 %1829  ;;  %v1735_v33 = vpop.permute.xlu0 %1734  ;;  %3017 = vmatmul.msk.f32.gmra.mxu2 %vm501_vm1, %v4080_v10  ;;  %3032 = vmatmul.msk.f32.vlgmr.msrb.gmra.mxu1 %vm501_vm1, %v1826_v28 }
 0x9fd   : > { %3020 = vmatmul.msk.f32.vlgmr.msra.gmra.mxu0 %vm501_vm1, %v1735_v33 }
 0xa04   : > { %v1737_v35 = vpop.permute.xlu1 %1736  ;;  %3018 = vmatmul.msk.f32.gmra.mxu2 %vm501_vm1, %v4084_v11  ;;  %3033 = vmatmul.msk.f32.gmra.mxu1 %vm501_vm1, %v1828_v27  ;;  %v1739_v46 = vpop.permute.xlu0 %1738 }
 0xa05   : > { %3021 = vmatmul.msk.f32.gmra.mxu0 %vm501_vm1, %v1737_v35 }
 0xa0c   : > { %3019 = vmatmul.msk.f32.gmra.mxu2 %vm501_vm1, %v4092_v17  ;;  %3034 = vmatmul.msk.f32.gmra.mxu1 %vm501_vm1, %v1830_v30  ;;  %v1933_v51 = vpop.permute.xlu1 %1932  ;;  %v1935_v41 = vpop.permute.xlu0 %1934 }
 0xa0d   : > { %3022 = vmatmul.msk.f32.gmra.mxu0 %vm501_vm1, %v1739_v46 }
 0xa14   : > { %3035 = vmatmul.msk.f32.gmra.mxu1 %vm501_vm1, %v1832_v44  ;;  %3036 = vmatmul.msk.f32.vlgmr.msrb.gmra.mxu2 %vm501_vm1, %v1931_v34  ;;  %v1937_v52 = vpop.permute.xlu1 %1936 }
 0xa15   : > { %3023 = vmatmul.msk.f32.gmra.mxu0 %vm501_vm1, %v1741_v49 }
 0xa1c   : > { %3037 = vmatmul.msk.f32.gmra.mxu2 %vm501_vm1, %v1933_v51 }
 0xa24   : > { %3038 = vmatmul.msk.f32.gmra.mxu2 %vm501_vm1, %v1935_v41 }
 0xa2c   : > { %3039 = vmatmul.msk.f32.gmra.mxu2 %vm501_vm1, %v1937_v52 }
 0xa77   : > { %v1678_v53 = vpop.f32.mrf.mxu2 }
 0xa78   : > { %v1679_v54 = vadd.f32 %v4163_v50, %v1678_v53 }
 0xa79   : > { %v1874_v55 = vpop.f32.mrf.mxu1 }
 0xa7a   : > { %v1875_v32 = vadd.f32 %v4163_v50, %v1874_v55  ;;  %v1767_v56 = vpop.f32.mrf.mxu0  ;;  %v1690_v57 = vsel %vm447_vm0, %v1679_v54, -inf }
 0xa7b   : > { %1691 = vmax.xlane.f32.xlu2 %v1690_v57 }
 0xa7c   : > { %v1886_v38 = vsel %vm447_vm0, %v1875_v32, -inf }
 0xa7d   : > { %1887 = vmax.xlane.f32.xlu1 %v1886_v38 }
 0xa7f   : > { %v1681_v31 = vpop.f32.mrf.mxu2 }
 0xa80   : > { %v1682_v61 = vadd.f32 %v4170_v59, %v1681_v31 }
 0xa81   : > { %v1877_v58 = vpop.f32.mrf.mxu1 }
 0xa82   : > { %v1878_v60 = vadd.f32 %v4170_v59, %v1877_v58  ;;  %v1770_v36 = vpop.f32.mrf.mxu0  ;;  %v1693_v63 = vsel %vm447_vm0, %v1682_v61, -inf }
 0xa84   : > { %v1889_v40 = vsel %vm447_vm0, %v1878_v60, -inf }
 0xa85   : > { %1890 = vmax.xlane.f32.xlu0 %v1889_v40 }
 0xa87   : > { %v1684_v9 = vpop.f32.mrf.mxu2 }
 0xa88   : > { %v4185_v1 = vadd.f32 %v4176_v47, %v1684_v9 }
 0xa89   : > { %v1880_v62 = vpop.f32.mrf.mxu1 }
 0xa8a   : > { %v4179_v37 = vadd.f32 %v4176_v47, %v1880_v62  ;;  %v1773_v14 = vpop.f32.mrf.mxu0  ;;  %v1696_v6 = vsel %vm447_vm0, %v4185_v1, -inf }
 0xa8c   : > { %v1892_v29 = vsel %vm447_vm0, %v4179_v37, -inf }
 0xa8d   : > { %1893 = vmax.xlane.f32.xlu2 %v1892_v29  ;;  %1694 = vmax.xlane.f32.xlu0 %v1693_v63 }
 0xa8f   : > { %v1687_v0 = vpop.f32.mrf.mxu2 }
 0xa90   : > { %v4191_v19 = vadd.f32 %v4188_v2, %v1687_v0 }
 0xa91   : > { %v1883_v3 = vpop.f32.mrf.mxu1 }
 0xa92   : > { %v4194_v39 = vadd.f32 %v4188_v2, %v1883_v3  ;;  %v1776_v26 = vpop.f32.mrf.mxu0  ;;  %v1699_v8 = vsel %vm447_vm0, %v4191_v19, -inf }
 0xa93   : > { %1700 = vmax.xlane.f32.xlu1 %v1699_v8  ;;  %1803 = vmatpush.msrb.mxu3 %v1776_v26 }
 0xa94   : > { %v1895_v13 = vsel %vm447_vm0, %v4194_v39, -inf }
 0xa95   : > { %1697 = vmax.xlane.f32.xlu2 %v1696_v6  ;;  %1896 = vmax.xlane.f32.xlu0 %v1895_v13 }
 0xa96   : > { %1804 = vmatpush.msrb.mxu3 %v1773_v14 }
 0xa97   : > { %v1963_v12 = vpop.f32.mrf.mxu2 }
 0xa98   : > { %1805 = vmatpush.msrb.mxu3 %v1770_v36 }
 0xa9a   : > { %1806 = vmatpush.msrb.mxu3 %v1767_v56 }
 0xa9f   : > { %v1966_v18 = vpop.f32.mrf.mxu2 }
 0xaa7   : > { %v1969_v20 = vpop.f32.mrf.mxu2 }
 0xaad   : > { %2030 = vrot.lane.b32.xlu2 %v4080_v10, %s4641_s17 }
 0xaaf   : > { %v1972_v22 = vpop.f32.mrf.mxu2 }
 0xab0   : > { %1999 = vmatpush.msrb.mxu0 %v1972_v22 }
 0xab2   : > { %2000 = vmatpush.msrb.mxu0 %v1969_v20 }
 0xab4   : > { %2001 = vmatpush.msrb.mxu0 %v1966_v18 }
 0xab5   : > { %2020 = vrot.lane.b32.xlu2 %v4090_v4, %s4642_s22 }
 0xab6   : > { %2002 = vmatpush.msrb.mxu0 %v1963_v12 }
 0xabd   : > { %2225 = vrot.lane.b32.xlu2 %v4080_v10, %s4643_s27 }
 0xaee   : > { %v1692_v7 = vpop.xlane.xlu2 %1691 }
 0xaef   : > { %v1702_v16 = vsub.f32 %v1679_v54, %v1692_v7 }
 0xaf0   : > { %v1888_v23 = vpop.xlane.xlu1 %1887 }
 0xaf1   : > { %v1706_v15 = vmul.f32 1.442695, %v1702_v16  ;;  %v1898_v24 = vsub.f32 %v1875_v32, %v1888_v23 }
 0xaf3   : > { %3251 = vpow2.f32 %v1706_v15  ;;  %v1902_v25 = vmul.f32 1.442695, %v1898_v24 }
 0xaf5   : > { %3253 = vpow2.f32 %v1902_v25 }
 0xaf8   : > { %v1891_v27 = vpop.xlane.xlu0 %1890 }
 0xaf9   : > { %v4208_v28 = vpop.eup %3251  ;;  %v1899_v30 = vsub.f32 %v1878_v60, %v1891_v27 }
 0xafa   : > { %v1714_v33 = vsel %vm447_vm0, %v4208_v28, 0.0 }
 0xafb   : > { %v4212_v34 = vpop.eup %3253  ;;  %v1904_v35 = vmul.f32 1.442695, %v1899_v30  ;;  %1715 = vadd.xlane.f32.xlu1 %v1714_v33 }
 0xafc   : > { %v1910_v44 = vsel %vm447_vm0, %v4212_v34, 0.0 }
 0xafd   : > { %3255 = vpow2.f32 %v1904_v35  ;;  %1911 = vadd.xlane.f32.xlu0 %v1910_v44 }
 0xb00   : > { %v1695_v46 = vpop.xlane.xlu0 %1694  ;;  %v1894_v55 = vpop.xlane.xlu2 %1893 }
 0xb01   : > { %v1703_v49 = vsub.f32 %v1682_v61, %v1695_v46  ;;  %v1900_v36 = vsub.f32 %v4179_v37, %v1894_v55 }
 0xb03   : > { %v4216_v51 = vpop.eup %3255  ;;  %v1708_v41 = vmul.f32 1.442695, %v1703_v49  ;;  %v1906_v9 = vmul.f32 1.442695, %v1900_v36 }
 0xb04   : > { %v1913_v52 = vsel %vm447_vm0, %v4216_v51, 0.0 }
 0xb05   : > { %3257 = vpow2.f32 %v1708_v41  ;;  %1914 = vadd.xlane.f32.xlu2 %v1913_v52 }
 0xb06   : > { %v1701_v63 = vpop.xlane.xlu1 %1700 }
 0xb07   : > { %v1705_v37 = vsub.f32 %v4191_v19, %v1701_v63 }
 0xb08   : > { %v1698_v32 = vpop.xlane.xlu2 %1697  ;;  %v1897_v38 = vpop.xlane.xlu0 %1896 }
 0xb09   : > { %v1704_v56 = vsub.f32 %v4185_v1, %v1698_v32  ;;  %v1901_v31 = vsub.f32 %v4194_v39, %v1897_v38  ;;  %v1712_v0 = vmul.f32 1.442695, %v1705_v37 }
 0xb0b   : > { %v4220_v53 = vpop.eup %3257  ;;  %v1710_v57 = vmul.f32 1.442695, %v1704_v56  ;;  %v1908_v58 = vmul.f32 1.442695, %v1901_v31 }
 0xb0c   : > { %v1717_v54 = vsel %vm447_vm0, %v4220_v53, 0.0 }
 0xb0d   : > { %1718 = vadd.xlane.f32.xlu2 %v1717_v54  ;;  %3259 = vpow2.f32 %v1710_v57 }
 0xb0e   : > { %3261 = vpow2.f32 %v1908_v58  ;;  %v2995_v58 = vld [vmem:[%s4606_s5 + $0x78] sm:$0xff] }
 0xb0f   : > { %3263 = vpow2.f32 %v1906_v9  ;;  %v1820_v9 = vperm.slane %v4077_v5, 1 }
 0xb10   : > { %3265 = vpow2.f32 %v1712_v0  ;;  %v2031_v1 = vpop.permute.xlu2 %2030 }
 0xb11   : > { %2032 = vrot.lane.b32.xlu0 %v4084_v11, %s4641_s17 }
 0xb13   : > { %v4242_v60 = vpop.eup %3259 }
 0xb14   : > { %2034 = vrot.lane.b32.xlu1 %v4092_v17, %s4641_s17  ;;  %v1720_v40 = vsel %vm447_vm0, %v4242_v60, 0.0  ;;  %v4247_v61 = vpop.eup %3261 }
 0xb15   : > { %v1919_v62 = vsel %vm447_vm0, %v4247_v61, 0.0  ;;  %v4251_v14 = vpop.eup %3263 }
 0xb16   : > { %v1916_v29 = vsel %vm447_vm0, %v4251_v14, 0.0  ;;  %v4256_v3 = vpop.eup %3265 }
 0xb17   : > { %v1723_v39 = vsel %vm447_vm0, %v4256_v3, 0.0 }
 0xb18   : > { %v4262_v26 = vpop.permute.xlu2 %2020 }
 0xb19   : > { %2028 = vrot.lane.b32.xlu0 %v4090_v4, %s4641_s17  ;;  %s4502_s17 = sand.u32 1, %s3423_s10  }
 0xb1a   : > { %s2764_s29 = scalar_lea.sflag [#allocation3], %s4502_s17 }
 0xb20   : > { %v2226_v8 = vpop.permute.xlu2 %2225 }
 0xb21   : > { %2229 = vrot.lane.b32.xlu0 %v4092_v17, %s4643_s27 }
 0xb25   : > { %2223 = vrot.lane.b32.xlu2 %v4090_v4, %s4643_s27 }
 0xb29   : > { %2227 = vrot.lane.b32.xlu0 %v4084_v11, %s4643_s27 }
 0xb31   : > { %2022 = vrot.lane.b32.xlu0 %v4080_v10, %s4642_s22 }
 0xb39   : > { %2215 = vrot.lane.b32.xlu0 %v4090_v4, %s4644_s14 }
 0xb3e   : > { %1721 = vadd.xlane.f32.xlu1 %v1720_v40 }
 0xb46   : > { %1920 = vadd.xlane.f32.xlu1 %v1919_v62 }
 0xb4e   : > { %1917 = vadd.xlane.f32.xlu2 %v1916_v29 }
 0xb5f   : > { %2026 = vrot.lane.b32.xlu1 %v4092_v17, %s4642_s22 }
 0xb63   : > { %1724 = vadd.xlane.f32.xlu0 %v1723_v39 }
 0xb66   : > { %2024 = vrot.lane.b32.xlu2 %v4084_v11, %s4642_s22  ;;  %s2909_s22 = sshll.u32 %s4502_s17, 5 }
 0xb67   : > { %2324 = vrot.lane.b32.xlu1 %v4084_v11, %s4645_s23  ;;  %s4521_s27 = scalar_lea.vmem [#allocation2], %s2909_s22 }
 0xb68   : > { %s2781_s26 = sshll.u32 %s4521_s27, 4  ;;  %s2782_s26 = int_to_ptr.vmem [resolvable:$true] %s2781_s26 }
 0xb6e   : > { %v1716_v19 = vpop.xlane.xlu1 %1715  ;;  %2219 = vrot.lane.b32.xlu2 %v4084_v11, %s4644_s14 }
 0xb6f   : > { %3267 = vrcp.f32 %v1716_v19 }
 0xb70   : > { %v1912_v6 = vpop.xlane.xlu0 %1911 }
 0xb71   : > { %3269 = vrcp.f32 %v1912_v6 }
 0xb75   : > { %v3268_v13 = vpop.eup %3267 }
 0xb76   : > { %v1730_v12 = vmul.f32 %v3268_v13, %v4208_v28  ;;  %2125 = vrot.lane.b32.xlu2 %v4090_v4, %s4646_s24 }
 0xb77   : > { %v3270_v18 = vpop.eup %3269  ;;  %2217 = vrot.lane.b32.xlu0 %v4080_v10, %s4644_s14 }
 0xb78   : > { %v1926_v20 = vmul.f32 %v3270_v18, %v4212_v34  ;;  %3024 = vmatmul.msk.f32.vlgmr.msrb.gmra.mxu3 %vm447_vm0, %v1730_v12  ;;  %v1915_v22 = vpop.xlane.xlu2 %1914 }
 0xb79   : > { %3271 = vrcp.f32 %v1915_v22 }
 0xb7a   : > { %3040 = vmatmul.msk.f32.vlgmr.msrb.gmra.mxu0 %vm447_vm0, %v1926_v20 }
 0xb7e   : > { %2127 = vrot.lane.b32.xlu2 %v4080_v10, %s4646_s24 }
 0xb7f   : > { %v3272_v7 = vpop.eup %3271  ;;  %2221 = vrot.lane.b32.xlu0 %v4092_v17, %s4644_s14  ;;  %s3098_s14 = sshll.u32 %s3521_s13, 5 }
 0xb80   : > { %v1719_v16 = vpop.xlane.xlu2 %1718  ;;  %v1927_v23 = vmul.f32 %v3272_v7, %v4216_v51  ;;  %s2780_s25 = scalar_lea.hbm %s4609_s8, %s3098_s14 }
 0xb81   : > { %3273 = vrcp.f32 %v1719_v16  ;;  %s2783_s28 = sshll.u32 %s2780_s25, 4  ;;  %s2784_s28 = int_to_ptr.hbm [resolvable:$true] %s2783_s28 }
 0xb82   : > { %3041 = vmatmul.msk.f32.gmra.mxu0 %vm447_vm0, %v1927_v23  ;;  %s3351_s16 = sshra.s32 %s2784_s28, 4  ;;  %s3352_s16 = int_to_ptr.hbm [resolvable:$true] %s3351_s16 }
 0xb83   : > { %v2033_v15 = vpop.permute.xlu0 %2032  ;;  %s3353_s21 = scalar_lea.hbm %s3352_s16, 32  ;;  %p3358_p0 = scmp.lt.s32.totalorder %s3352_s16, %s4609_s8 }
 0xb84   : > { %p3354_p11 = scmp.ne.s32.totalorder %s3352_s16, %s3353_s21  ;;  %p3359_p1 = scmp.lt.s32.totalorder %s3357_s1, %s3353_s21 }
 0xb86   : > { %v2035_v24 = vpop.permute.xlu1 %2034  ;;  %2129 = vrot.lane.b32.xlu2 %v4084_v11, %s4646_s24  ;;  %p3355_p12 = pnand %p3354_p11, %p3538_p5  ;;  %p3360_p2 = por %p3359_p1, %p3358_p0 }
 0xb87   : > { %v3274_v25 = vpop.eup %3273  ;;  %2320 = vrot.lane.b32.xlu0 %v4090_v4, %s4645_s23  ;;  %3044 = vmatpush.xpose.msk.msra.mxu3 %vm501_vm1, %v2035_v24 }
 0xb88   : > { %v1731_v27 = vmul.f32 %v3274_v25, %v4220_v53  ;;  %v2224_v30 = vpop.permute.xlu2 %2223  ;;  %p3356_p13 = pneg %p3355_p12 }
 0xb8a   : > { %3025 = vmatmul.msk.f32.gmra.mxu3 %vm447_vm0, %v1731_v27  ;;  %p3361_p3 = pnand %p3360_p2, %p3356_p13 }
 0xb8b   : > { %v2029_v28 = vpop.permute.xlu0 %2028  ;;  %3045 = vmatpush.xpose.msk.msra.mxu3 %vm501_vm1, %v2033_v15 }
 0xb8e   : > { %2326 = vrot.lane.b32.xlu2 %v4092_v17, %s4645_s23 }
 0xb8f   : > { %2322 = vrot.lane.b32.xlu0 %v4080_v10, %s4645_s23  ;;  %3046 = vmatpush.xpose.msk.msra.mxu3 %vm501_vm1, %v2031_v1  ;;  %v2994_v10 = vld [vmem:[%s4606_s5 + $0x70] sm:$0xff] }
 0xb90   : > { %2156 = vmatpush.msra.mxu1 %v2994_v10 }
 0xb93   : > { %v2230_v11 = vpop.permute.xlu0 %2229  ;;  %3047 = vmatpush.xpose.msk.msra.mxu3 %vm501_vm1, %v2029_v28 }
 0xb94   : > { %3060 = vmatpush.xpose.msk.msra.mxu0 %vm501_vm1, %v2230_v11 }
 0xb97   : > { %2131 = vrot.lane.b32.xlu0 %v4092_v17, %s4646_s24  ;;  %2351 = vmatpush.msrb.mxu3 %v2995_v58 }
 0xb9b   : > { %v2228_v4 = vpop.permute.xlu0 %2227 }
 0xb9c   : > { %3061 = vmatpush.xpose.msk.msra.mxu0 %vm501_vm1, %v2228_v4 }
 0xba0   : > { %3062 = vmatpush.xpose.msk.msra.mxu0 %vm501_vm1, %v2226_v8 }
 0xba3   : > { %v2023_v44 = vpop.permute.xlu0 %2022 }
 0xba4   : > { %3063 = vmatpush.xpose.msk.msra.mxu0 %vm501_vm1, %v2224_v30 }
 0xbab   : > { %v2216_v53 = vpop.permute.xlu0 %2215 }
 0xbb1   : > { %v1722_v33 = vpop.xlane.xlu1 %1721 }
 0xbb2   : > { %3275 = vrcp.f32 %v1722_v33 }
 0xbb8   : > { %v3276_v34 = vpop.eup %3275 }
 0xbb9   : > { %v1732_v35 = vmul.f32 %v3276_v34, %v4242_v60  ;;  %v1921_v46 = vpop.xlane.xlu1 %1920 }
 0xbbb   : > { %3026 = vmatmul.msk.f32.gmra.mxu3 %vm447_vm0, %v1732_v35 }
 0xbc1   : > { %v1918_v17 = vpop.xlane.xlu2 %1917 }
 0xbc2   : > { %3277 = vrcp.f32 %v1918_v17 }
 0xbc3   : > { %3279 = vrcp.f32 %v1921_v46 }
 0xbc8   : > { %v3278_v49 = vpop.eup %3277 }
 0xbc9   : > { %v2025_v51 = vpop.permute.xlu2 %2024  ;;  %v1928_v41 = vmul.f32 %v3278_v49, %v4251_v14  ;;  %v3280_v52 = vpop.eup %3279 }
 0xbca   : > { %v1929_v55 = vmul.f32 %v3280_v52, %v4247_v61 }
 0xbcb   : > { %3042 = vmatmul.msk.f32.gmra.mxu0 %vm447_vm0, %v1928_v41 }
 0xbd1   : > { %v2220_v54 = vpop.permute.xlu2 %2219  ;;  %v2027_v37 = vpop.permute.xlu1 %2026 }
 0xbd3   : > { %3043 = vmatmul.msk.f32.gmra.mxu0 %vm447_vm0, %v1929_v55 }
 0xbd6   : > { %v1725_v32 = vpop.xlane.xlu0 %1724 }
 0xbd7   : > { %3281 = vrcp.f32 %v1725_v32 }
 0xbd9   : > { %v2126_v56 = vpop.permute.xlu2 %2125  ;;  %v2325_v19 = vpop.permute.xlu1 %2324 }
 0xbda   : > { %3052 = vmatmul.msk.f32.vlgmr.msra.gmra.mxu1 %vm501_vm1, %v2126_v56 }
 0xbdb   : > { %3064 = vmatmul.msk.f32.vlgmr.msra.gmra.mxu0 %vm501_vm1, %v2216_v53 }
 0xbdd   : > { %v3282_v57 = vpop.eup %3281 }
 0xbde   : > { %v1733_v38 = vmul.f32 %v3282_v57, %v4256_v3 }
 0xbe0   : > { %3027 = vmatmul.msk.f32.gmra.mxu3 %vm447_vm0, %v1733_v38 }
 0xbe1   : > { %v2128_v31 = vpop.permute.xlu2 %2127 }
 0xbe2   : > { %3053 = vmatmul.msk.f32.gmra.mxu1 %vm501_vm1, %v2128_v31 }
 0xbe8   : > { %3048 = vmatmul.msk.f32.vlgmr.msra.gmra.mxu3 %vm501_vm1, %v4262_v26 }
 0xbe9   : > { %v2218_v60 = vpop.permute.xlu0 %2217  ;;  %v2130_v36 = vpop.permute.xlu2 %2129 }
 0xbea   : > { %3054 = vmatmul.msk.f32.gmra.mxu1 %vm501_vm1, %v2130_v36  ;;  %3065 = vmatmul.msk.f32.gmra.mxu0 %vm501_vm1, %v2218_v60 }
 0xbf0   : > { %3049 = vmatmul.msk.f32.gmra.mxu3 %vm501_vm1, %v2023_v44 }
 0xbf1   : > { %v2222_v40 = vpop.permute.xlu0 %2221  ;;  %v2327_v8 = vpop.permute.xlu2 %2326 }
 0xbf2   : > { %3066 = vmatmul.msk.f32.gmra.mxu0 %vm501_vm1, %v2220_v54 }
 0xbf7   : > { %v2004_v29 = vpop.f32.mrf.mxu0 }
 0xbf8   : > { %3050 = vmatmul.msk.f32.gmra.mxu3 %vm501_vm1, %v2025_v51 }
 0xbf9   : > { %v2321_v61 = vpop.permute.xlu0 %2320 }
 0xbfa   : > { %3067 = vmatmul.msk.f32.gmra.mxu0 %vm501_vm1, %v2222_v40 }
 0xbfb   : > { %v1808_v62 = vpop.f32.mrf.mxu3 }
 0xbfc   : > { %v1821_v14 = vadd.f32 %v1820_v9, %v1808_v62 }
 0xbfe   : > { %v4330_v63 = vadd.f32 %v2004_v29, %v1821_v14 }
 0xbff   : > { %v2007_v5 = vpop.f32.mrf.mxu0 }
 0xc00   : > { %3051 = vmatmul.msk.f32.gmra.mxu3 %vm501_vm1, %v2027_v37 }
 0xc01   : > { %v2323_v0 = vpop.permute.xlu0 %2322 }
 0xc08   : > { %3068 = vmatmul.msk.f32.vlgmr.msrb.gmra.mxu3 %vm501_vm1, %v2321_v61 }
 0xc09   : > { %v2132_v1 = vpop.permute.xlu0 %2131 }
 0xc0a   : > { %3055 = vmatmul.msk.f32.gmra.mxu1 %vm501_vm1, %v2132_v1 }
 0xc0d   : > { %v1811_v3 = vpop.f32.mrf.mxu3 }
 0xc0e   : > { %v1822_v39 = vadd.f32 %v1820_v9, %v1811_v3 }
 0xc10   : > { %3069 = vmatmul.msk.f32.gmra.mxu3 %vm501_vm1, %v2323_v0  ;;  %v4336_v26 = vadd.f32 %v2007_v5, %v1822_v39 }
 0xc18   : > { %3070 = vmatmul.msk.f32.gmra.mxu3 %vm501_vm1, %v2325_v19 }
 0xc20   : > { %3071 = vmatmul.msk.f32.gmra.mxu3 %vm501_vm1, %v2327_v8 }
 0xc3e   : > { %v1814_v6 = vpop.f32.mrf.mxu3 }
 0xc3f   : > { %v1823_v13 = vadd.f32 %v1820_v9, %v1814_v6 }
 0xc48   : > { %v2010_v12 = vpop.f32.mrf.mxu0 }
 0xc49   : > { %v4340_v18 = vadd.f32 %v2010_v12, %v1823_v13 }
 0xc50   : > { %v2013_v20 = vpop.f32.mrf.mxu0 }
 0xc57   : > { %v2158_v25 = vpop.f32.mrf.mxu1 }
 0xc58   : > { %v2264_v22 = vpop.f32.mrf.mxu0 }
 0xc59   : > { %v2265_v7 = vadd.f32 %v4163_v50, %v2264_v22 }
 0xc5b   : > { %v2276_v16 = vsel %vm447_vm0, %v2265_v7, -inf }
 0xc5c   : > { %2277 = vmax.xlane.f32.xlu2 %v2276_v16 }
 0xc5f   : > { %v2161_v10 = vpop.f32.mrf.mxu1 }
 0xc63   : > { %v1817_v23 = vpop.f32.mrf.mxu3 }
 0xc64   : > { %v1824_v15 = vadd.f32 %v1820_v9, %v1817_v23 }
 0xc66   : > { %v4344_v24 = vadd.f32 %v2013_v20, %v1824_v15 }
 0xc67   : > { %v2267_v27 = vpop.f32.mrf.mxu0  ;;  %v2164_v51 = vpop.f32.mrf.mxu1 }
 0xc68   : > { %v2268_v17 = vadd.f32 %v4170_v59, %v2267_v27 }
 0xc6a   : > { %v2279_v49 = vsel %vm447_vm0, %v2268_v17, -inf }
 0xc6b   : > { %v2069_v28 = vpop.f32.mrf.mxu3 }
 0xc6c   : > { %v2070_v11 = vadd.f32 %v4163_v50, %v2069_v28 }
 0xc6e   : > { %v2081_v4 = vsel %vm447_vm0, %v2070_v11, -inf }
 0xc6f   : > { %2082 = vmax.xlane.f32.xlu1 %v2081_v4  ;;  %v2270_v34 = vpop.f32.mrf.mxu0 }
 0xc70   : > { %v2271_v53 = vadd.f32 %v4176_v47, %v2270_v34 }
 0xc72   : > { %v2282_v56 = vsel %vm447_vm0, %v2271_v53, -inf }
 0xc73   : > { %v2072_v30 = vpop.f32.mrf.mxu3 }
 0xc74   : > { %v2073_v33 = vadd.f32 %v4170_v59, %v2072_v30 }
 0xc76   : > { %v2084_v35 = vsel %vm447_vm0, %v2073_v33, -inf }
 0xc77   : > { %2085 = vmax.xlane.f32.xlu0 %v2084_v35  ;;  %v2273_v41 = vpop.f32.mrf.mxu0 }
 0xc78   : > { %v2274_v52 = vadd.f32 %v4188_v2, %v2273_v41 }
 0xc7a   : > { %v2285_v32 = vsel %vm447_vm0, %v2274_v52, -inf }
 0xc7b   : > { %v2075_v44 = vpop.f32.mrf.mxu3 }
 0xc7c   : > { %v2076_v46 = vadd.f32 %v4176_v47, %v2075_v44 }
 0xc7e   : > { %v2087_v50 = vsel %vm447_vm0, %v2076_v46, -inf }
 0xc7f   : > { %2280 = vmax.xlane.f32.xlu0 %v2279_v49  ;;  %2088 = vmax.xlane.f32.xlu1 %v2087_v50 }
 0xc83   : > { %v2078_v54 = vpop.f32.mrf.mxu3 }
 0xc84   : > { %v2079_v55 = vadd.f32 %v4188_v2, %v2078_v54 }
 0xc86   : > { %v2090_v59 = vsel %vm447_vm0, %v2079_v55, -inf }
 0xc87   : > { %2091 = vmax.xlane.f32.xlu2 %v2090_v59  ;;  %2286 = vmax.xlane.f32.xlu0 %v2285_v32  ;;  %v2167_v57 = vpop.f32.mrf.mxu1 }
 0xc88   : > { %2283 = vmax.xlane.f32.xlu1 %v2282_v56  ;;  %2194 = vmatpush.msra.mxu2 %v2167_v57 }
 0xc8a   : > { %2195 = vmatpush.msra.mxu2 %v2164_v51 }
 0xc8b   : > { %v2353_v38 = vpop.f32.mrf.mxu3 }
 0xc8c   : > { %2196 = vmatpush.msra.mxu2 %v2161_v10 }
 0xc8e   : > { %2197 = vmatpush.msra.mxu2 %v2158_v25 }
 0xc93   : > { %v2356_v31 = vpop.f32.mrf.mxu3 }
 0xc9b   : > { %v2359_v47 = vpop.f32.mrf.mxu3 }
 0xca3   : > { %v2362_v58 = vpop.f32.mrf.mxu3 }
 0xca4   : > { %2389 = vmatpush.msrb.mxu1 %v2362_v58 }
 0xca6   : > { %2390 = vmatpush.msrb.mxu1 %v2359_v47 }
 0xca8   : > { %2391 = vmatpush.msrb.mxu1 %v2356_v31 }
 0xcaa   : > { %2392 = vmatpush.msrb.mxu1 %v2353_v38 }
 0xccf   : > { %v2278_v2 = vpop.xlane.xlu2 %2277 }
 0xcd0   : > { %v2288_v60 = vsub.f32 %v2265_v7, %v2278_v2 }
 0xcd2   : > { %v2292_v36 = vmul.f32 1.442695, %v2288_v60 }
 0xcd4   : > { %3283 = vpow2.f32 %v2292_v36 }
 0xcda   : > { %v3284_v40 = vpop.eup %3283 }
 0xcdb   : > { %v2300_v9 = vsel %vm447_vm0, %v3284_v40, 0.0 }
 0xcdc   : > { %2301 = vadd.xlane.f32.xlu0 %v2300_v9 }
 0xce2   : > { %v2083_v61 = vpop.xlane.xlu1 %2082 }
 0xce3   : > { %v2093_v62 = vsub.f32 %v2070_v11, %v2083_v61 }
 0xce5   : > { %v2097_v14 = vmul.f32 1.442695, %v2093_v62 }
 0xce7   : > { %3285 = vpow2.f32 %v2097_v14 }
 0xcea   : > { %v2086_v29 = vpop.xlane.xlu0 %2085 }
 0xceb   : > { %v2094_v37 = vsub.f32 %v2073_v33, %v2086_v29 }
 0xced   : > { %v3286_v0 = vpop.eup %3285  ;;  %v2099_v1 = vmul.f32 1.442695, %v2094_v37 }
 0xcee   : > { %v2105_v3 = vsel %vm447_vm0, %v3286_v0, 0.0 }
 0xcef   : > { %3287 = vpow2.f32 %v2099_v1  ;;  %2106 = vadd.xlane.f32.xlu2 %v2105_v3 }
 0xcf2   : > { %v2281_v39 = vpop.xlane.xlu0 %2280  ;;  %v2089_v5 = vpop.xlane.xlu1 %2088 }
 0xcf3   : > { %v2289_v19 = vsub.f32 %v2268_v17, %v2281_v39  ;;  %v2095_v8 = vsub.f32 %v2076_v46, %v2089_v5 }
 0xcf5   : > { %v3288_v6 = vpop.eup %3287  ;;  %v2294_v13 = vmul.f32 1.442695, %v2289_v19  ;;  %v2101_v12 = vmul.f32 1.442695, %v2095_v8 }
 0xcf6   : > { %v2108_v20 = vsel %vm447_vm0, %v3288_v6, 0.0 }
 0xcf7   : > { %3289 = vpow2.f32 %v2294_v13  ;;  %2109 = vadd.xlane.f32.xlu1 %v2108_v20 }
 0xcf8   : > { %3291 = vpow2.f32 %v2101_v12 }
 0xcfa   : > { %v2287_v22 = vpop.xlane.xlu0 %2286  ;;  %v2092_v7 = vpop.xlane.xlu2 %2091 }
 0xcfb   : > { %v2291_v16 = vsub.f32 %v2274_v52, %v2287_v22  ;;  %v2284_v23 = vpop.xlane.xlu1 %2283  ;;  %v2096_v15 = vsub.f32 %v2079_v55, %v2092_v7 }
 0xcfc   : > { %v2290_v25 = vsub.f32 %v2271_v53, %v2284_v23 }
 0xcfd   : > { %v3290_v27 = vpop.eup %3289  ;;  %v2298_v28 = vmul.f32 1.442695, %v2291_v16  ;;  %v2103_v11 = vmul.f32 1.442695, %v2096_v15 }
 0xcfe   : > { %v3292_v4 = vpop.eup %3291  ;;  %v2296_v30 = vmul.f32 1.442695, %v2290_v25  ;;  %v2303_v33 = vsel %vm447_vm0, %v3290_v27, 0.0 }
 0xcff   : > { %3293 = vpow2.f32 %v2298_v28  ;;  %v2111_v10 = vsel %vm447_vm0, %v3292_v4, 0.0  ;;  %2304 = vadd.xlane.f32.xlu1 %v2303_v33 }
 0xd00   : > { %3295 = vpow2.f32 %v2296_v30  ;;  %2112 = vadd.xlane.f32.xlu2 %v2111_v10 }
 0xd01   : > { %3297 = vpow2.f32 %v2103_v11 }
 0xd05   : > { %v3294_v34 = vpop.eup %3293 }
 0xd06   : > { %v3296_v35 = vpop.eup %3295  ;;  %v2309_v17 = vsel %vm447_vm0, %v3294_v34, 0.0 }
 0xd07   : > { %v3298_v44 = vpop.eup %3297  ;;  %2310 = vadd.xlane.f32.xlu1 %v2309_v17  ;;  %v2306_v46 = vsel %vm447_vm0, %v3296_v35, 0.0 }
 0xd08   : > { %2307 = vadd.xlane.f32.xlu2 %v2306_v46  ;;  %v2114_v49 = vsel %vm447_vm0, %v3298_v44, 0.0 }
 0xd09   : > { %2115 = vadd.xlane.f32.xlu0 %v2114_v49 }
 0xd4f   : > { %v2302_v50 = vpop.xlane.xlu0 %2301 }
 0xd50   : > { %3299 = vrcp.f32 %v2302_v50 }
 0xd56   : > { %v3300_v51 = vpop.eup %3299 }
 0xd57   : > { %v2316_v41 = vmul.f32 %v3300_v51, %v3284_v40 }
 0xd59   : > { %3072 = vmatmul.msk.f32.vlgmr.msrb.gmra.mxu1 %vm447_vm0, %v2316_v41 }
 0xd62   : > { %v2107_v52 = vpop.xlane.xlu2 %2106 }
 0xd63   : > { %3301 = vrcp.f32 %v2107_v52 }
 0xd69   : > { %v3302_v53 = vpop.eup %3301 }
 0xd6a   : > { %v2121_v54 = vmul.f32 %v3302_v53, %v3286_v0  ;;  %v2110_v55 = vpop.xlane.xlu1 %2109 }
 0xd6b   : > { %3303 = vrcp.f32 %v2110_v55  ;;  %v3078_v55 = vld [vmem:[%s4607_s6 + $0x30] sm:$0xff] }
 0xd6c   : > { %3056 = vmatmul.msk.f32.vlgmr.msra.gmra.mxu2 %vm447_vm0, %v2121_v54  ;;  %v3079_v54 = vld [vmem:[%s4607_s6 + $0x38] sm:$0xff] }
 0xd6d   : > { %2542 = vmatpush.msrb.mxu2 %v3079_v54 }
 0xd6f   : > { %2543 = vmatpush.msrb.mxu2 %v3078_v55 }
 0xd71   : > { %v3304_v59 = vpop.eup %3303 }
 0xd72   : > { %v2305_v32 = vpop.xlane.xlu1 %2304  ;;  %v2122_v56 = vmul.f32 %v3304_v59, %v3288_v6  ;;  %v3077_v59 = vld [vmem:[%s4607_s6 + $0x28] sm:$0xff] }
 0xd73   : > { %3305 = vrcp.f32 %v2305_v32  ;;  %v2113_v57 = vpop.xlane.xlu2 %2112  ;;  %2544 = vmatpush.msrb.mxu2 %v3077_v59  ;;  %v3076_v32 = vld [vmem:[%s4607_s6 + $0x20] sm:$0xff] }
 0xd74   : > { %3307 = vrcp.f32 %v2113_v57  ;;  %3057 = vmatmul.msk.f32.gmra.mxu2 %vm447_vm0, %v2122_v56 }
 0xd75   : > { %2545 = vmatpush.msrb.mxu2 %v3076_v32  ;;  %v2997_v32 = vld [vmem:[%s4606_s5 + $0x88] sm:$0xff] }
 0xd79   : > { %v3306_v38 = vpop.eup %3305 }
 0xd7a   : > { %v3308_v31 = vpop.eup %3307  ;;  %v2317_v47 = vmul.f32 %v3306_v38, %v3290_v27  ;;  %v2311_v36 = vpop.xlane.xlu1 %2310 }
 0xd7b   : > { %v2308_v58 = vpop.xlane.xlu2 %2307  ;;  %v2123_v2 = vmul.f32 %v3308_v31, %v3292_v4 }
 0xd7c   : > { %v2116_v60 = vpop.xlane.xlu0 %2115  ;;  %3309 = vrcp.f32 %v2308_v58  ;;  %3073 = vmatmul.msk.f32.gmra.mxu1 %vm447_vm0, %v2317_v47 }
 0xd7d   : > { %3311 = vrcp.f32 %v2116_v60  ;;  %3058 = vmatmul.msk.f32.gmra.mxu2 %vm447_vm0, %v2123_v2 }
 0xd7e   : > { %3313 = vrcp.f32 %v2311_v36 }
 0xd82   : > { %v3310_v40 = vpop.eup %3309 }
 0xd83   : > { %v3312_v9 = vpop.eup %3311  ;;  %v2318_v61 = vmul.f32 %v3310_v40, %v3296_v35 }
 0xd84   : > { %v2124_v62 = vmul.f32 %v3312_v9, %v3298_v44  ;;  %v3314_v14 = vpop.eup %3313 }
 0xd85   : > { %3074 = vmatmul.msk.f32.gmra.mxu1 %vm447_vm0, %v2318_v61  ;;  %v2319_v29 = vmul.f32 %v3314_v14, %v3294_v34 }
 0xd86   : > { %3059 = vmatmul.msk.f32.gmra.mxu2 %vm447_vm0, %v2124_v62 }
 0xd8d   : > { %3075 = vmatmul.msk.f32.gmra.mxu1 %vm447_vm0, %v2319_v29 }
 0xdd6   : > { %v2394_v1 = vpop.f32.mrf.mxu1 }
 0xdef   : > { %v2199_v37 = vpop.f32.mrf.mxu2 }
 0xdf0   : > { %v2211_v0 = vadd.f32 %v2199_v37, %v4330_v63 }
 0xdf2   : > { %v2406_v3 = vadd.f32 %v2394_v1, %v2211_v0  ;;  %v4426_v1 = vld [vmem:[%s4608_s7 + $0x8] sm:$0xff] }
 0xdf4   : > { %v2410_v39 = vadd.f32 %v2406_v3, %v4055_v21  ;;  %v2502_v3 = vperm.slane %v4426_v1, 4 }
 0xdf6   : > { %v2414_v5 = vsel %vm447_vm0, %v2410_v39, 0.0 }
 0xdf7   : > { %2415 = vadd.xlane.f32.xlu0 %v2414_v5  ;;  %v2202_v19 = vpop.f32.mrf.mxu2 }
 0xdf8   : > { %v2212_v8 = vadd.f32 %v2202_v19, %v4336_v26  ;;  %v2507_v19 = vperm.slane %v4426_v1, 5 }
 0xdf9   : > { %v2397_v6 = vpop.f32.mrf.mxu1 }
 0xdfa   : > { %v2407_v13 = vadd.f32 %v2397_v6, %v2212_v8  ;;  %v3003_v6 = vld [vmem:[%s4606_s5 + $0xb8] sm:$0xff] }
 0xdfb   : > { %2584 = vmatpush.msrb.mxu0 %v3003_v6 }
 0xdfc   : > { %v2411_v12 = vadd.f32 %v2407_v13, %v4060_v42  ;;  %v3002_v13 = vld [vmem:[%s4606_s5 + $0xb0] sm:$0xff] }
 0xdfd   : > { %2585 = vmatpush.msrb.mxu0 %v3002_v13 }
 0xdfe   : > { %v2417_v20 = vsel %vm447_vm0, %v2411_v12, 0.0 }
 0xdff   : > { %2418 = vadd.xlane.f32.xlu2 %v2417_v20 }
 0xe00   : > { %v2205_v22 = vpop.f32.mrf.mxu2 }
 0xe01   : > { %v2213_v63 = vadd.f32 %v2205_v22, %v4340_v18  ;;  %v3001_v22 = vld [vmem:[%s4606_s5 + $0xa8] sm:$0xff] }
 0xe02   : > { %v2400_v7 = vpop.f32.mrf.mxu1  ;;  %2586 = vmatpush.msrb.mxu0 %v3001_v22 }
 0xe03   : > { %v2408_v16 = vadd.f32 %v2400_v7, %v2213_v63 }
 0xe05   : > { %v2412_v21 = vadd.f32 %v2408_v16, %v4065_v45 }
 0xe07   : > { %v2420_v23 = vsel %vm447_vm0, %v2412_v21, 0.0 }
 0xe08   : > { %2421 = vadd.xlane.f32.xlu1 %v2420_v23  ;;  %v3000_v23 = vld [vmem:[%s4606_s5 + $0xa0] sm:$0xff] }
 0xe09   : > { %v2208_v15 = vpop.f32.mrf.mxu2  ;;  %2587 = vmatpush.msrb.mxu0 %v3000_v23 }
 0xe0a   : > { %v2214_v26 = vadd.f32 %v2208_v15, %v4344_v24  ;;  %v2403_v25 = vpop.f32.mrf.mxu1 }
 0xe0c   : > { %v2409_v27 = vadd.f32 %v2403_v25, %v2214_v26 }
 0xe0e   : > { %v2413_v42 = vadd.f32 %v2409_v27, %v4070_v48 }
 0xe10   : > { %v2423_v28 = vsel %vm447_vm0, %v2413_v42, 0.0 }
 0xe11   : > { %2424 = vadd.xlane.f32.xlu0 %v2423_v28 }
 0xe6a   : > { %v2416_v11 = vpop.xlane.xlu0 %2415 }
 0xe6b   : > { %v2426_v18 = vmul.f32 %v2416_v11, %v3927_v43 }
 0xe6d   : > { %v2430_v4 = vsub.f32 %v2410_v39, %v2426_v18 }
 0xe6f   : > { %v2434_v30 = vmul.f32 %v2430_v4, %v2430_v4 }
 0xe71   : > { %v2438_v45 = vsel %vm447_vm0, %v2434_v30, 0.0 }
 0xe72   : > { %2439 = vadd.xlane.f32.xlu2 %v2438_v45  ;;  %v2419_v33 = vpop.xlane.xlu2 %2418 }
 0xe73   : > { %v2427_v10 = vmul.f32 %v2419_v33, %v3927_v43 }
 0xe75   : > { %v4391_v34 = vsub.f32 %v2411_v12, %v2427_v10 }
 0xe77   : > { %v2435_v24 = vmul.f32 %v4391_v34, %v4391_v34 }
 0xe79   : > { %v2441_v48 = vsel %vm447_vm0, %v2435_v24, 0.0 }
 0xe7a   : > { %2442 = vadd.xlane.f32.xlu1 %v2441_v48 }
 0xe7b   : > { %v2422_v35 = vpop.xlane.xlu1 %2421 }
 0xe7c   : > { %v2428_v17 = vmul.f32 %v2422_v35, %v3927_v43 }
 0xe7e   : > { %v4397_v44 = vsub.f32 %v2412_v21, %v2428_v17 }
 0xe80   : > { %v2436_v46 = vmul.f32 %v4397_v44, %v4397_v44 }
 0xe82   : > { %v2444_v49 = vsel %vm447_vm0, %v2436_v46, 0.0 }
 0xe83   : > { %2445 = vadd.xlane.f32.xlu0 %v2444_v49 }
 0xe84   : > { %v2425_v50 = vpop.xlane.xlu0 %2424 }
 0xe85   : > { %v2429_v51 = vmul.f32 %v2425_v50, %v3927_v43 }
 0xe87   : > { %v4403_v41 = vsub.f32 %v2413_v42, %v2429_v51  ;;  %v2999_v42 = vld [vmem:[%s4606_s5 + $0x98] sm:$0xff] }
 0xe88   : > { %2588 = vmatpush.msrb.mxu0 %v2999_v42 }
 0xe89   : > { %v2437_v52 = vmul.f32 %v4403_v41, %v4403_v41 }
 0xe8b   : > { %v2447_v53 = vsel %vm447_vm0, %v2437_v52, 0.0 }
 0xe8c   : > { %2448 = vadd.xlane.f32.xlu2 %v2447_v53 }
 0xee5   : > { %v2440_v56 = vpop.xlane.xlu2 %2439 }
 0xee6   : > { %v2450_v57 = vmul.f32 %v2440_v56, %v3927_v43  ;;  %v2996_v56 = vld [vmem:[%s4606_s5 + $0x80] sm:$0xff] }
 0xee8   : > { %v2454_v38 = vadd.f32 1e-05, %v2450_v57 }
 0xeea   : > { %3315 = vrsqrt.f32 %v2454_v38  ;;  %vm2464_vm14 = vweird.f32 %v2454_v38 }
 0xeed   : > { %v2443_v31 = vpop.xlane.xlu1 %2442 }
 0xeee   : > { %v2451_v47 = vmul.f32 %v2443_v31, %v3927_v43 }
 0xef0   : > { %v3316_v58 = vpop.eup %3315  ;;  %v2455_v2 = vadd.f32 1e-05, %v2451_v47 }
 0xef1   : > { %v2459_v60 = vmul.f32 %v3316_v58, %v2454_v38  ;;  %vm2465_vm1 = vweird.f32 %v3316_v58 }
 0xef2   : > { %3317 = vrsqrt.f32 %v2455_v2  ;;  %vm2466_vm2 = vmor %vm2464_vm14, %vm2465_vm1  ;;  %vm2474_vm4 = vweird.f32 %v2455_v2 }
 0xef3   : > { %v2460_v36 = vmul.f32 %v3316_v58, %v2459_v60 }
 0xef5   : > { %v2461_v40 = vmul.f32 0.5, %v2460_v36 }
 0xef6   : > { %v2446_v9 = vpop.xlane.xlu0 %2445 }
 0xef7   : > { %v2462_v61 = vsub.f32 1.5, %v2461_v40  ;;  %v2452_v62 = vmul.f32 %v2446_v9, %v3927_v43 }
 0xef8   : > { %v3318_v14 = vpop.eup %3317 }
 0xef9   : > { %v2463_v29 = vmul.f32 %v3316_v58, %v2462_v61  ;;  %v2469_v37 = vmul.f32 %v3318_v14, %v2455_v2  ;;  %v2456_v0 = vadd.f32 1e-05, %v2452_v62  ;;  %vm2475_vm3 = vweird.f32 %v3318_v14 }
 0xefa   : > { %vm2476_vm5 = vmor %vm2474_vm4, %vm2475_vm3 }
 0xefb   : > { %v2467_v39 = vsel %vm2466_vm2, %v3316_v58, %v2463_v29  ;;  %v2470_v5 = vmul.f32 %v3318_v14, %v2469_v37  ;;  %3319 = vrsqrt.f32 %v2456_v0  ;;  %vm2484_vm7 = vweird.f32 %v2456_v0 }
 0xefc   : > { %v2498_v8 = vmul.f32 %v2467_v39, %v2430_v4  ;;  %v2563_v29 = vperm.slane %v4426_v1, 3 }
 0xefd   : > { %v2471_v12 = vmul.f32 0.5, %v2470_v5 }
 0xefe   : > { %v2503_v20 = vmul.f32 %v2502_v3, %v2498_v8 }
 0xeff   : > { %v2472_v63 = vsub.f32 1.5, %v2471_v12  ;;  %v2449_v7 = vpop.xlane.xlu2 %2448 }
 0xf00   : > { %v4439_v16 = vadd.f32 %v2507_v19, %v2503_v20  ;;  %v2453_v21 = vmul.f32 %v2449_v7, %v3927_v43 }
 0xf01   : > { %v3320_v15 = vpop.eup %3319  ;;  %v2473_v26 = vmul.f32 %v3318_v14, %v2472_v63 }
 0xf02   : > { %v2479_v25 = vmul.f32 %v3320_v15, %v2456_v0  ;;  %v2457_v27 = vadd.f32 1e-05, %v2453_v21  ;;  %3080 = vmatmul.msk.f32.vlgmr.msrb.gmra.mxu2 %vm447_vm0, %v4439_v16  ;;  %vm2485_vm6 = vweird.f32 %v3320_v15 }
 0xf03   : > { %v2477_v28 = vsel %vm2476_vm5, %v3318_v14, %v2473_v26  ;;  %vm2486_vm8 = vmor %vm2484_vm7, %vm2485_vm6 }
 0xf04   : > { %v2499_v11 = vmul.f32 %v2477_v28, %v4391_v34  ;;  %v2480_v18 = vmul.f32 %v3320_v15, %v2479_v25  ;;  %3321 = vrsqrt.f32 %v2457_v27  ;;  %vm2494_vm10 = vweird.f32 %v2457_v27 }
 0xf06   : > { %v2481_v4 = vmul.f32 0.5, %v2480_v18  ;;  %v2504_v30 = vmul.f32 %v2502_v3, %v2499_v11 }
 0xf08   : > { %v2482_v45 = vsub.f32 1.5, %v2481_v4  ;;  %v2509_v33 = vadd.f32 %v2507_v19, %v2504_v30 }
 0xf0a   : > { %v3322_v10 = vpop.eup %3321  ;;  %v2483_v24 = vmul.f32 %v3320_v15, %v2482_v45  ;;  %3081 = vmatmul.msk.f32.gmra.mxu2 %vm447_vm0, %v2509_v33 }
 0xf0b   : > { %v2489_v48 = vmul.f32 %v3322_v10, %v2457_v27  ;;  %vm2495_vm9 = vweird.f32 %v3322_v10 }
 0xf0c   : > { %v2487_v35 = vsel %vm2486_vm8, %v3320_v15, %v2483_v24  ;;  %vm2496_vm11 = vmor %vm2494_vm10, %vm2495_vm9 }
 0xf0d   : > { %v2500_v17 = vmul.f32 %v2487_v35, %v4397_v44  ;;  %v2490_v46 = vmul.f32 %v3322_v10, %v2489_v48  ;;  %v2998_v44 = vld [vmem:[%s4606_s5 + $0x90] sm:$0xff] }
 0xf0e   : > { %2589 = vmatpush.msrb.mxu0 %v2998_v44 }
 0xf0f   : > { %v2491_v34 = vmul.f32 0.5, %v2490_v46  ;;  %v2505_v49 = vmul.f32 %v2502_v3, %v2500_v17 }
 0xf10   : > { %2590 = vmatpush.msrb.mxu0 %v2997_v32  ;;  %v2711_v32 = vlaneseq }
 0xf11   : > { %v2492_v50 = vsub.f32 1.5, %v2491_v34  ;;  %v2510_v51 = vadd.f32 %v2507_v19, %v2505_v49 }
 0xf12   : > { %2591 = vmatpush.msrb.mxu0 %v2996_v56 }
 0xf13   : > { %v2493_v52 = vmul.f32 %v3322_v10, %v2492_v50  ;;  %3082 = vmatmul.msk.f32.gmra.mxu2 %vm447_vm0, %v2510_v51 }
 0xf15   : > { %v2497_v53 = vsel %vm2496_vm11, %v3322_v10, %v2493_v52 }
 0xf16   : > { %v2501_v54 = vmul.f32 %v2497_v53, %v4403_v41  ;;  %v2517_v41 = vperm.slane %v4426_v1, 2 }
 0xf18   : > { %v2506_v55 = vmul.f32 %v2502_v3, %v2501_v54 }
 0xf1a   : > { %v2511_v59 = vadd.f32 %v2507_v19, %v2506_v55 }
 0xf1c   : > { %3083 = vmatmul.msk.f32.gmra.mxu2 %vm447_vm0, %v2511_v59 }
 0xf85   : > { %v2547_v57 = vpop.f32.mrf.mxu2 }
 0xf86   : > { %v2548_v38 = vadd.f32 %v2547_v57, %v2517_v41 }
 0xf88   : > { %v2559_v31 = vmax.f32 %v2548_v38, 0.0 }
 0xf8a   : > { %3084 = vmatmul.msk.f32.vlgmr.msrb.gmra.mxu0 %vm1427_vm15, %v2559_v31 }
 0xf8d   : > { %v2550_v47 = vpop.f32.mrf.mxu2 }
 0xf8e   : > { %v2551_v58 = vadd.f32 %v2550_v47, %v2517_v41  ;;  %v4499_v47 = vshrl.u32 %v2711_v32, 7 }
 0xf90   : > { %v2560_v2 = vmax.f32 %v2551_v58, 0.0 }
 0xf92   : > { %3085 = vmatmul.msk.f32.gmra.mxu0 %vm1427_vm15, %v2560_v2 }
 0xf96   : > { %v2553_v60 = vpop.f32.mrf.mxu2 }
 0xf97   : > { %v2554_v36 = vadd.f32 %v2553_v60, %v2517_v41  ;;  %v4505_v60 = vperm.slane %v4426_v1, 6 }
 0xf99   : > { %v2561_v40 = vmax.f32 %v2554_v36, 0.0 }
 0xf9b   : > { %3086 = vmatmul.msk.f32.gmra.mxu0 %vm1427_vm15, %v2561_v40 }
 0xf9f   : > { %v2556_v9 = vpop.f32.mrf.mxu2 }
 0xfa0   : > { %v2557_v61 = vadd.f32 %v2556_v9, %v2517_v41  ;;  %v4508_v9 = vperm.slane %v4426_v1, 7 }
 0xfa2   : > { %v2562_v62 = vmax.f32 %v2557_v61, 0.0 }
 0xfa4   : > { %3087 = vmatmul.msk.f32.gmra.mxu0 %vm1427_vm15, %v2562_v62  ;;  %v4511_v62 = vand.u32 127, %v2711_v32 }
 0xfa6   : > { %vm2715_vm14 = vcmp.eq.s32.totalorder %v4511_v62, %v4499_v47 }
0x1007   : > { %v2593_v14 = vpop.f32.mrf.mxu0 }
0x1008   : > { %v2594_v22 = vadd.f32 %v2593_v14, %v2563_v29  ;;  %v2716_v14 = vadd.s32 4, %v4499_v47 }
0x100a   : > { %v2605_v7 = vadd.f32 %v2594_v22, %v4439_v16  ;;  %vm2717_vm2 = vcmp.eq.s32.totalorder %v4511_v62, %v2716_v14 }
0x100b   : > { %vm2718_vm5 = vmor %vm2715_vm14, %vm2717_vm2 }
0x100c   : > { %v2609_v21 = vsel %vm447_vm0, %v2605_v7, 0.0 }
0x100f   : > { %v2596_v37 = vpop.f32.mrf.mxu0 }
0x1010   : > { %v2597_v0 = vadd.f32 %v2596_v37, %v2563_v29 }
0x1012   : > { %v2606_v3 = vadd.f32 %v2597_v0, %v2509_v33 }
0x1014   : > { %v2612_v39 = vsel %vm447_vm0, %v2606_v3, 0.0 }
0x1015   : > { %2613 = vadd.xlane.f32.xlu2 %v2612_v39 }
0x1018   : > { %v2599_v5 = vpop.f32.mrf.mxu0 }
0x1019   : > { %v2600_v19 = vadd.f32 %v2599_v5, %v2563_v29 }
0x101b   : > { %v2607_v8 = vadd.f32 %v2600_v19, %v2510_v51 }
0x101d   : > { %v2615_v6 = vsel %vm447_vm0, %v2607_v8, 0.0 }
0x101e   : > { %2616 = vadd.xlane.f32.xlu0 %v2615_v6 }
0x1021   : > { %v2602_v13 = vpop.f32.mrf.mxu0 }
0x1022   : > { %v2603_v12 = vadd.f32 %v2602_v13, %v2563_v29 }
0x1024   : > { %v2608_v20 = vadd.f32 %v2603_v12, %v2511_v59 }
0x1026   : > { %v2618_v63 = vsel %vm447_vm0, %v2608_v20, 0.0 }
0x1027   : > { %2619 = vadd.xlane.f32.xlu1 %v2618_v63  ;;  %v2725_v63 = vadd.s32 16, %v4499_v47 }
0x1029   : > { %vm2726_vm11 = vcmp.eq.s32.totalorder %v4511_v62, %v2725_v63 }
0x102f   : > { %2610 = vadd.xlane.f32.xlu1 %v2609_v21 }
0x1088   : > { %v2614_v23 = vpop.xlane.xlu2 %2613 }
0x1089   : > { %v2622_v15 = vmul.f32 %v2614_v23, %v3927_v43 }
0x108b   : > { %v2626_v26 = vsub.f32 %v2606_v3, %v2622_v15  ;;  %v2719_v3 = vadd.s32 8, %v4499_v47 }
0x108d   : > { %v2630_v25 = vmul.f32 %v2626_v26, %v2626_v26  ;;  %vm2720_vm6 = vcmp.eq.s32.totalorder %v4511_v62, %v2719_v3 }
0x108e   : > { %vm2721_vm7 = vmor %vm2718_vm5, %vm2720_vm6 }
0x108f   : > { %v2636_v27 = vsel %vm447_vm0, %v2630_v25, 0.0 }
0x1090   : > { %2637 = vadd.xlane.f32.xlu1 %v2636_v27 }
0x1091   : > { %v2617_v42 = vpop.xlane.xlu0 %2616 }
0x1092   : > { %v2623_v28 = vmul.f32 %v2617_v42, %v3927_v43 }
0x1094   : > { %v4479_v11 = vsub.f32 %v2607_v8, %v2623_v28  ;;  %v2731_v28 = vadd.s32 24, %v4499_v47 }
0x1096   : > { %v2631_v18 = vmul.f32 %v4479_v11, %v4479_v11  ;;  %vm2732_vm2 = vcmp.eq.s32.totalorder %v4511_v62, %v2731_v28 }
0x1098   : > { %v2639_v16 = vsel %vm447_vm0, %v2631_v18, 0.0 }
0x1099   : > { %2640 = vadd.xlane.f32.xlu2 %v2639_v16 }
0x109a   : > { %v2620_v4 = vpop.xlane.xlu1 %2619 }
0x109b   : > { %v2624_v30 = vmul.f32 %v2620_v4, %v3927_v43 }
0x109d   : > { %v4485_v45 = vsub.f32 %v2608_v20, %v2624_v30 }
0x109f   : > { %v2632_v33 = vmul.f32 %v4485_v45, %v4485_v45 }
0x10a1   : > { %v2642_v10 = vsel %vm447_vm0, %v2632_v33, 0.0  ;;  %v2734_v33 = vadd.s32 28, %v4499_v47 }
0x10a2   : > { %2643 = vadd.xlane.f32.xlu0 %v2642_v10  ;;  %v2611_v24 = vpop.xlane.xlu1 %2610 }
0x10a3   : > { %v2621_v48 = vmul.f32 %v2611_v24, %v3927_v43 }
0x10a5   : > { %v4491_v35 = vsub.f32 %v2605_v7, %v2621_v48 }
0x10a7   : > { %v2629_v17 = vmul.f32 %v4491_v35, %v4491_v35 }
0x10a9   : > { %v2633_v46 = vsel %vm447_vm0, %v2629_v17, 0.0 }
0x10aa   : > { %2634 = vadd.xlane.f32.xlu0 %v2633_v46 }
0x1103   : > { %v2638_v34 = vpop.xlane.xlu1 %2637 }
0x1104   : > { %v2646_v49 = vmul.f32 %v2638_v34, %v3927_v43 }
0x1106   : > { %v2650_v50 = vadd.f32 1e-05, %v2646_v49  ;;  %v3447_v49 = vmov 0.0  }
0x1108   : > { %3323 = vrsqrt.f32 %v2650_v50  ;;  %vm2669_vm12 = vweird.f32 %v2650_v50 }
0x110c   : > { %v2641_v51 = vpop.xlane.xlu2 %2640 }
0x110d   : > { %v2647_v52 = vmul.f32 %v2641_v51, %v3927_v43 }
0x110e   : > { %v3324_v53 = vpop.eup %3323 }
0x110f   : > { %v2664_v54 = vmul.f32 %v3324_v53, %v2650_v50  ;;  %v2651_v55 = vadd.f32 1e-05, %v2647_v52  ;;  %vm2670_vm15 = vweird.f32 %v3324_v53 }
0x1110   : > { %vm2671_vm13 = vmor %vm2669_vm12, %vm2670_vm15 }
0x1111   : > { %v2665_v59 = vmul.f32 %v3324_v53, %v2664_v54  ;;  %3325 = vrsqrt.f32 %v2651_v55  ;;  %vm2679_vm3 = vweird.f32 %v2651_v55 }
0x1113   : > { %v2666_v44 = vmul.f32 0.5, %v2665_v59 }
0x1115   : > { %v2667_v56 = vsub.f32 1.5, %v2666_v44  ;;  %v2644_v41 = vpop.xlane.xlu0 %2643 }
0x1116   : > { %v2648_v57 = vmul.f32 %v2644_v41, %v3927_v43 }
0x1117   : > { %v3326_v38 = vpop.eup %3325  ;;  %v2668_v31 = vmul.f32 %v3324_v53, %v2667_v56 }
0x1118   : > { %v2674_v58 = vmul.f32 %v3326_v38, %v2651_v55  ;;  %v2652_v2 = vadd.f32 1e-05, %v2648_v57  ;;  %vm2680_vm1 = vweird.f32 %v3326_v38 }
0x1119   : > { %v2672_v36 = vsel %vm2671_vm13, %v3324_v53, %v2668_v31  ;;  %vm2681_vm4 = vmor %vm2679_vm3, %vm2680_vm1 }
0x111a   : > { %v2675_v40 = vmul.f32 %v3326_v38, %v2674_v58  ;;  %3327 = vrsqrt.f32 %v2652_v2  ;;  %v2694_v61 = vmul.f32 %v2672_v36, %v2626_v26  ;;  %v2728_v26 = vadd.s32 20, %v4499_v47 }
0x111b   : > { %vm2689_vm15 = vweird.f32 %v2652_v2 }
0x111c   : > { %v2676_v29 = vmul.f32 0.5, %v2675_v40  ;;  %v2699_v37 = vmul.f32 %v4505_v60, %v2694_v61  ;;  %vm2729_vm1 = vcmp.eq.s32.totalorder %v4511_v62, %v2728_v26 }
0x111d   : > { %v2635_v0 = vpop.xlane.xlu0 %2634 }
0x111e   : > { %v2677_v39 = vsub.f32 1.5, %v2676_v29  ;;  %v2645_v5 = vmul.f32 %v2635_v0, %v3927_v43  ;;  %v2704_v19 = vadd.f32 %v4508_v9, %v2699_v37  ;;  %v2722_v43 = vadd.s32 12, %v4499_v47 }
0x1120   : > { %v3328_v1 = vpop.eup %3327  ;;  %v2678_v8 = vmul.f32 %v3326_v38, %v2677_v39  ;;  %v2649_v6 = vadd.f32 1e-05, %v2645_v5  ;;  %2708 = vst.msk [vmem:[%s4521_s27 + $0x8] sm:$0xff] %vm447_vm0, %v2704_v19  ;;  %vm2723_vm8 = vcmp.eq.s32.totalorder %v4511_v62, %v2722_v43 }
0x1121   : > { %v2684_v13 = vmul.f32 %v3328_v1, %v2652_v2  ;;  %vm2690_vm9 = vweird.f32 %v3328_v1  ;;  %vm2724_vm10 = vmor %vm2721_vm7, %vm2723_vm8  ;;  %vm2735_vm7 = vcmp.eq.s32.totalorder %v4511_v62, %v2734_v33 }
0x1122   : > { %v2682_v12 = vsel %vm2681_vm4, %v3326_v38, %v2678_v8  ;;  %3329 = vrsqrt.f32 %v2649_v6  ;;  %vm2691_vm12 = vmor %vm2689_vm15, %vm2690_vm9  ;;  %vm2659_vm4 = vweird.f32 %v2649_v6 }
0x1123   : > { %v2685_v20 = vmul.f32 %v3328_v1, %v2684_v13  ;;  %v2695_v22 = vmul.f32 %v2682_v12, %v4479_v11  ;;  %vm2727_vm13 = vmor %vm2724_vm10, %vm2726_vm11 }
0x1124   : > { %vm2730_vm14 = vmor %vm2727_vm13, %vm2729_vm1 }
0x1125   : > { %v2686_v7 = vmul.f32 0.5, %v2685_v20  ;;  %v2700_v21 = vmul.f32 %v4505_v60, %v2695_v22  ;;  %vm2733_vm5 = vmor %vm2730_vm14, %vm2732_vm2 }
0x1126   : > { %vm2736_vm8 = vmor %vm2733_vm5, %vm2735_vm7 }
0x1127   : > { %v2687_v23 = vsub.f32 1.5, %v2686_v7  ;;  %v2705_v15 = vadd.f32 %v4508_v9, %v2700_v21  ;;  %v2737_v50 = vsel %vm2736_vm8, 0.125, %v3447_v49 }
0x1128   : > { %v3330_v25 = vpop.eup %3329 }
0x1129   : > { %v2688_v27 = vmul.f32 %v3328_v1, %v2687_v23  ;;  %v2654_v42 = vmul.f32 %v3330_v25, %v2649_v6  ;;  %2709 = vst.msk [vmem:[%s4521_s27 + $0x10] sm:$0xff] %vm447_vm0, %v2705_v15  ;;  %vm2660_vm3 = vweird.f32 %v3330_v25 }
0x112a   : > { %vm2661_vm6 = vmor %vm2659_vm4, %vm2660_vm3 }
0x112b   : > { %v2692_v11 = vsel %vm2691_vm12, %v3328_v1, %v2688_v27  ;;  %v2655_v18 = vmul.f32 %v3330_v25, %v2654_v42 }
0x112c   : > { %v2696_v16 = vmul.f32 %v2692_v11, %v4485_v45 }
0x112d   : > { %v2656_v4 = vmul.f32 0.5, %v2655_v18 }
0x112e   : > { %v2701_v30 = vmul.f32 %v4505_v60, %v2696_v16 }
0x112f   : > { %v2657_v10 = vsub.f32 1.5, %v2656_v4 }
0x1130   : > { %v2706_v24 = vadd.f32 %v4508_v9, %v2701_v30 }
0x1131   : > { %v2658_v48 = vmul.f32 %v3330_v25, %v2657_v10 }
0x1132   : > { %2753 = vmatpush.msra.mxu3 %v2706_v24  ;;  %2710 = vst.msk [vmem:[%s4521_s27 + $0x18] sm:$0xff] %vm447_vm0, %v2706_v24 }
0x1133   : > { %v2662_v45 = vsel %vm2661_vm6, %v3330_v25, %v2658_v48 }
0x1134   : > { %2754 = vmatpush.msra.mxu3 %v2705_v15  ;;  %v2693_v17 = vmul.f32 %v2662_v45, %v4491_v35 }
0x1136   : > { %2755 = vmatpush.msra.mxu3 %v2704_v19  ;;  %v2698_v46 = vmul.f32 %v4505_v60, %v2693_v17 }
0x1138   : > { %v2703_v34 = vadd.f32 %v4508_v9, %v2698_v46 }
0x113a   : > { %2756 = vmatpush.msra.mxu3 %v2703_v34  ;;  %2707 = vst.msk [vmem:[%s4521_s27] sm:$0xff] %vm447_vm0, %v2703_v34 }
0x113b   : > { %3088 = vmatmul.msk.f32.vlgmr.msra.gmra.mxu3 %vm447_vm0, %v2737_v50 }
0x113c   : > { %3364 = shalt.err (!%p3361_p3)
}
0x113d   : > { %s3448_s27 = smov 128   ;;  %s3449_s14 = smov 8   ;;  %vm2761_vm0 = vcmask 257024  }
0x113e   : > { %3104 = dma.vmem_to_hbm [thread:$0]  (%p3538_p5), %s2782_s26, 512, %s2784_s28, %s2764_s29, %s3448_s27, %s3448_s27, %s3449_s14  }
0x113f   : > { %s2910_s23 = sshll.u32 %s4502_s17, 2  ;;  %s3093_s0 = sshll.u32 %s3521_s13, 2 }
0x1140   : > { %s2796_s2 = scalar_lea.hbm %s4610_s9, %s3093_s0  ;;  %s351_s3 = scalar_lea.vmem [#allocation4], %s2910_s23 }
0x1141   : > { %s2798_s1 = sshll.u32 %s351_s3, 4  ;;  %s2800_s16 = sshll.u32 %s2796_s2, 4  ;;  %s2799_s1 = int_to_ptr.vmem [resolvable:$true] %s2798_s1  ;;  %s2801_s16 = int_to_ptr.hbm [resolvable:$true] %s2800_s16 }
0x1142   : > { %s2769_s21 = scalar_lea.sflag [#allocation5], %s4502_s17  ;;  %s3379_s22 = sshra.s32 %s2801_s16, 4  ;;  %s3380_s22 = int_to_ptr.hbm [resolvable:$true] %s3379_s22 }
0x1143   : > { %s3381_s4 = scalar_lea.hbm %s3380_s22, 4  ;;  %s3385_s28 = scalar_lea.hbm %s4610_s9, 8 }
0x1144   : > { %p3382_p4 = scmp.ne.s32.totalorder %s3380_s22, %s3381_s4  ;;  %p3386_p9 = scmp.lt.s32.totalorder %s3380_s22, %s4610_s9 }
0x1145   : > { %p3387_p10 = scmp.lt.s32.totalorder %s3385_s28, %s3381_s4 }
0x1146   : > { %p3383_p7 = pnand %p3382_p4, %p3538_p5 }
0x1147   : > { %p3388_p11 = por %p3387_p10, %p3386_p9 }
0x1148   : > { %p3384_p8 = pneg %p3383_p7 }
0x114a   : > { %p3389_p12 = pnand %p3388_p11, %p3384_p8 }
0x11be   : > { %v2758_v35 = vpop.f32.mrf.mxu3 }
0x11bf   : > { %2762 = vst.msk [vmem:[%s351_s3] sm:$0xf] %vm2761_vm0, %v2758_v35 }
0x11c0   : > { %3392 = shalt.err (!%p3389_p12)
}
0x11c1   : > { %3105 = dma.vmem_to_hbm [thread:$0]  (%p3538_p5), %s2799_s1, 64, %s2801_s16, %s2769_s21  }
0x11c2 PF: > { %p3115_p13 = scmp.ge.s32.totalorder %s3431_s12, 2  ;;  %s2812_s17 = sand.u32 1, %s3419_s30  }
0x11c3   : > { %s2813_s14 = scalar_lea.sflag [#allocation3], %s2812_s17 }
0x11c4   : > { %p3109_p0 = pnand %p3115_p13, %p3542_p6 }
0x11c6   : > { %p3110_p1 = pneg %p3109_p0 }
0x11c8   : > { %3410 = dma.done.wait (%p3110_p1), %s2813_s14, 512  }
0x11c9   : > { %3412 = vsyncadd (%p3110_p1), %s2813_s14, 4294966784  ;;  %s2823_s23 = scalar_lea.sflag [#allocation5], %s2812_s17 }
0x11ca   : > { %3414 = dma.done.wait (%p3110_p1), %s2823_s23, 64  }
0x11cb   : > { %3416 = vsyncadd (%p3110_p1), %s2823_s23, 4294967232  ;;  %p23_p5 = scmp.ge.s32.totalorder %s3525_s15, 4   ;;  %s4647_s30 = smov %s3423_s10 }
0x11cc   : > { %s4648_s10 = smov %s3427_s11  ;;  %s4649_s11 = smov %s3536_s18 }
0x11cd   : > { %s4650_s12 = smov %s3525_s15  ;;  %25 = sbr.rel (!%p23_p5) target bundleno = 11 (0xb), region = 111 }
0x11d2   :  { %2829 = vsyncpa [#allocation3], 1 }
0x11d3   :  { %2831 = vsyncpa [#allocation3 + $0x1], 1 }
0x11d4   :  { %2832 = vsyncpa [#allocation5], 1 }
0x11d5   :  { %2834 = vsyncpa [#allocation5 + $0x1], 1 }

</bundles_post_ra>
